<compile_context>
chip_gen: v6e
topology: v6e:2x2x1
jax: 0.10.0
libtpu: 0.0.40
codegen_flags: <defaults>
</compile_context>

<pallas_src>
import jax
import jax.numpy as jnp
import numpy as np
from jax.experimental import pallas as pl
from jax.experimental.pallas import tpu as pltpu

# ---------------- problem sizes (implied by the module) ----------------
N_BATCH = 2
C_IN = 3
IMG_H = IMG_W = 224
KCONV = 25                                  # conv kernel == stride
C_OUT = 3
OH = OW = (IMG_H - KCONV) // KCONV + 1      # 8
POOL = 3
PH = PW = (OH - POOL) // POOL + 1           # 2
BACKBONE_FEATS = C_OUT * PH * PW            # 12
OUT_FEATS = IMG_H * IMG_W                   # 50176

KDIM = C_IN * KCONV * KCONV                 # 1875  (im2col contraction dim)


def _n_decoder_tiles():
    """Chip-aware decoder grid: 2 parallel tiles on v7x (one per TensorCore),
    a single lane-dense tile on single-TC v5e/v6e."""
    try:
        kind = jax.devices()[0].device_kind.lower()
    except Exception:
        kind = ""
    return 2 if "v7" in kind else 1


N_DEC_TILES = _n_decoder_tiles()
DEC_TILE = OUT_FEATS // N_DEC_TILES         # 25088 (v7x) or 50176 (v5e/v6e)
assert OUT_FEATS % N_DEC_TILES == 0 and DEC_TILE % 128 == 0


# ---------------- fused Pallas kernel ----------------
def fused_seg_kernel(pat_ref, wconv_ref, bconv_ref, w2_ref, out_ref):
    """Computes one lane-dense decoder output tile of the whole network.

    pat_ref  : (1875, 9*N*4) bf16  pool-folded im2col; col = k*(N*4) + n*4 + ph*2 + pw
    wconv_ref: (3, 1875)     bf16  conv weight (out-channel major)
    bconv_ref: (3, 1)        f32   conv bias
    w2_ref   : (13, TN)      bf16  decoder weight tile (w2.T with bias appended as row 12)
    out_ref  : (N, TN)       f32   decoder output tile
    """
    nb = out_ref.shape[0]
    npc = nb * PH * PW                       # columns per pool-window offset (N*4)

    # Conv2d(3,3,25,25) as an im2col GEMM (channel-major output) + bias + ReLU.
    y = jnp.dot(wconv_ref[...], pat_ref[...], preferred_element_type=jnp.float32)
    y = jnp.maximum(y + bconv_ref[...], 0.0)            # (3, 9*nb*4)

    # MaxPool2d(3,3): the 9 pool-window offsets are contiguous column groups,
    # so the pool is 9 static lane-slice element-wise maxes (no strided access).
    m = y[:, 0:npc]
    for k in range(1, POOL * POOL):
        m = jnp.maximum(m, y[:, k * npc:(k + 1) * npc])  # (3, nb*4), col = n*4+ph*2+pw

    # Flatten to (nb, 13) in torch .view(N, -1) order (feature = c*4 + ph*2 + pw),
    # plus a trailing ones column that picks up the decoder bias folded into w2_ref.
    # NOTE(perf review): a reshape/swapaxes relayout was suggested, but Mosaic does not
    # reliably lower major-dim transposes of tiny 3-D arrays; these static lane slices
    # are hidden under the decoder-weight DMA, so the proven form is kept.
    one = jnp.ones((1, 1), jnp.float32)
    rows = []
    for n in range(nb):
        rows.append(jnp.concatenate(
            [m[c:c + 1, n * PH * PW:(n + 1) * PH * PW] for c in range(C_OUT)] + [one],
            axis=1))                                     # (1, 13)
    feat = jnp.concatenate(rows, axis=0)                 # (nb, 13) f32

    # Decoder Linear on this output tile (bf16 MXU, f32 accumulate); bias comes from
    # the ones column hitting w2_ref's last row.
    out_ref[...] = jnp.dot(feat.astype(w2_ref.dtype), w2_ref[...],
                           preferred_element_type=jnp.float32)


# ---------------- one-time weight preparation (keep OUT of the hot path) ----------------
def prepare_params(wc, bc, w2, b2):
    """Cacheable weight prep: conv weight as a (3,1875) bf16 GEMM matrix, conv bias as a
    (3,1) f32 column, and the decoder weight transposed + bias-folded + cast to bf16.
    Do this once (or store weights in this layout); it must not run per forward call."""
    wmat = wc.reshape(C_OUT, KDIM).astype(jnp.bfloat16)                 # (3, 1875)
    bcol = bc.reshape(C_OUT, 1).astype(jnp.float32)                     # (3, 1)
    w2aug = jnp.concatenate(
        [w2.T, b2.reshape(1, OUT_FEATS)], axis=0).astype(jnp.bfloat16)  # (13, 50176)
    return wmat, bcol, w2aug


# ---------------- jitted forward (hot path) ----------------
def segmentation_naive_forward(x, wmat, bcol, w2aug):
    """x: (N, 3, 224, 224) f32 NCHW.  Returns (N, 50176) f32."""
    n = x.shape[0]

    # Host glue: pool-folded im2col (stride == kernel -> pure reshape/transpose), fused
    # with the bf16 cast as one XLA fusion.  Only conv outputs 0..5 in each spatial dim
    # feed the 3x3/3 pool, so crop to 150.
    crop = PH * POOL * KCONV                              # 150
    xp = x[:, :, :crop, :crop].reshape(n, C_IN, PH, POOL, KCONV, PW, POOL, KCONV)
    # dims (n, ic, ph, kh, kr, pw, kw, kc) -> (ic, kr, kc, kh, kw, n, ph, pw)
    patches_t = xp.transpose(1, 4, 7, 3, 6, 0, 2, 5).reshape(
        KDIM, POOL * POOL * n * PH * PW).astype(jnp.bfloat16)       # (1875, 9*n*4)

    mcols = POOL * POOL * n * PH * PW
    grid = (N_DEC_TILES,)

    return pl.pallas_call(
        fused_seg_kernel,
        out_shape=jax.ShapeDtypeStruct((n, OUT_FEATS), jnp.float32),
        grid=grid,
        in_specs=[
            pl.BlockSpec((KDIM, mcols), lambda j: (0, 0)),                    # patches
            pl.BlockSpec((C_OUT, KDIM), lambda j: (0, 0)),                    # conv weight
            pl.BlockSpec((C_OUT, 1), lambda j: (0, 0)),                       # conv bias
            pl.BlockSpec((BACKBONE_FEATS + 1, DEC_TILE), lambda j: (0, j)),   # decoder W|b
        ],
        out_specs=pl.BlockSpec((n, DEC_TILE), lambda j: (0, j)),
        compiler_params=pltpu.CompilerParams(
            dimension_semantics=("parallel",)),
    )(patches_t, wmat, bcol, w2aug)


# ---------------- pure-JAX reference for sanity check ----------------
def reference_forward(x, wc, bc, w2, b2):
    y = jax.lax.conv_general_dilated(
        x, wc, window_strides=(KCONV, KCONV), padding="VALID",
        dimension_numbers=("NCHW", "OIHW", "NCHW"),
    ) + bc.reshape(1, C_OUT, 1, 1)
    y = jnp.maximum(y, 0.0)
    y = jax.lax.reduce_window(
        y, -jnp.inf, jax.lax.max,
        window_dimensions=(1, 1, POOL, POOL),
        window_strides=(1, 1, POOL, POOL),
        padding="VALID",
    )
    flat = y.reshape(y.shape[0], -1)
    return flat @ w2.T + b2[None, :]


if __name__ == "__main__":
    key = jax.random.PRNGKey(0)
    k_x, k_wc, k_bc, k_w2, k_b2 = jax.random.split(key, 5)

    x = jax.random.normal(k_x, (N_BATCH, C_IN, IMG_H, IMG_W), dtype=jnp.float32)

    fan_c = C_IN * KCONV * KCONV
    lim_c = 1.0 / np.sqrt(fan_c)
    wc = jax.random.uniform(k_wc, (C_OUT, C_IN, KCONV, KCONV),
                            minval=-lim_c, maxval=lim_c, dtype=jnp.float32)
    bc = jax.random.uniform(k_bc, (C_OUT,), minval=-lim_c, maxval=lim_c,
                            dtype=jnp.float32)

    lim_l = 1.0 / np.sqrt(BACKBONE_FEATS)
    w2 = jax.random.uniform(k_w2, (OUT_FEATS, BACKBONE_FEATS),
                            minval=-lim_l, maxval=lim_l, dtype=jnp.float32)
    b2 = jax.random.uniform(k_b2, (OUT_FEATS,), minval=-lim_l, maxval=lim_l,
                            dtype=jnp.float32)

    # One-time weight prep, cached outside the jitted hot path.
    params = jax.block_until_ready(prepare_params(wc, bc, w2, b2))

    fwd = jax.jit(segmentation_naive_forward)
    out = jax.block_until_ready(fwd(x, *params))
    assert out.shape == (N_BATCH, OUT_FEATS), out.shape

    ref = jax.block_until_ready(reference_forward(x, wc, bc, w2, b2))
    max_err = float(jnp.max(jnp.abs(out - ref)))
    assert max_err < 1e-1, f"mismatch vs reference: {max_err}"

    print("KERNEL_OK")
</pallas_src>

<mosaic_0001>
module attributes {stable_mosaic.version = 11 : i64} {
  func.func @fused_seg_kernel(%arg0: i32, %arg1: memref<1875x72xbf16, #tpu.memory_space<vmem>>, %arg2: memref<3x1875xbf16, #tpu.memory_space<vmem>>, %arg3: memref<3x1xf32, #tpu.memory_space<vmem>>, %arg4: memref<13x50176xbf16, #tpu.memory_space<vmem>>, %arg5: memref<2x50176xf32, #tpu.memory_space<vmem>>) attributes {dimension_semantics = [#tpu.dimension_semantics<parallel>], iteration_bounds = array<i64: 1>, scalar_prefetch = 0 : i64, scratch_operands = 0 : i64, tpu.core_type = #tpu.core_type<tc>, window_params = [{pipeline_mode = #tpu.pipeline_mode<synchronous>, transform_indices = @transform_0, window_bounds = array<i64: 1875, 72>}, {pipeline_mode = #tpu.pipeline_mode<synchronous>, transform_indices = @transform_1, window_bounds = array<i64: 3, 1875>}, {pipeline_mode = #tpu.pipeline_mode<synchronous>, transform_indices = @transform_2, window_bounds = array<i64: 3, 1>}, {transform_indices = @transform_3, window_bounds = array<i64: 13, 50176>}, {transform_indices = @transform_4, window_bounds = array<i64: 2, 50176>}]} {
    %c0 = arith.constant 0 : index
    %c0_0 = arith.constant 0 : index
    %0 = vector.load %arg2[%c0, %c0_0] : memref<3x1875xbf16, #tpu.memory_space<vmem>>, vector<3x1875xbf16>
    %c0_1 = arith.constant 0 : index
    %c0_2 = arith.constant 0 : index
    %1 = vector.load %arg1[%c0_1, %c0_2] : memref<1875x72xbf16, #tpu.memory_space<vmem>>, vector<1875x72xbf16>
    %cst = arith.constant dense<0.000000e+00> : vector<3x72xf32>
    %2 = tpu.matmul %0, %1, %cst {dimension_numbers = #tpu.dot_dimension_numbers<[1], [0], [0], [1], [0, 0, 1, 1], [], []>} : vector<3x1875xbf16>, vector<1875x72xbf16>, vector<3x72xf32> -> vector<3x72xf32>
    %c0_3 = arith.constant 0 : index
    %c0_4 = arith.constant 0 : index
    %3 = vector.load %arg3[%c0_3, %c0_4] : memref<3x1xf32, #tpu.memory_space<vmem>>, vector<3x1xf32>
    %4 = vector.broadcast %3 : vector<3x1xf32> to vector<3x72xf32>
    %5 = arith.addf %2, %4 : vector<3x72xf32>
    %cst_5 = arith.constant 0.000000e+00 : f32
    %6 = vector.broadcast %cst_5 : f32 to vector<3x72xf32>
    %7 = arith.maximumf %5, %6 : vector<3x72xf32>
    %8 = vector.extract_strided_slice %7 {offsets = [0, 0], sizes = [3, 8], strides = [1, 1]} : vector<3x72xf32> to vector<3x8xf32>
    %9 = vector.extract_strided_slice %7 {offsets = [0, 8], sizes = [3, 8], strides = [1, 1]} : vector<3x72xf32> to vector<3x8xf32>
    %10 = arith.maximumf %8, %9 : vector<3x8xf32>
    %11 = vector.extract_strided_slice %7 {offsets = [0, 16], sizes = [3, 8], strides = [1, 1]} : vector<3x72xf32> to vector<3x8xf32>
    %12 = arith.maximumf %10, %11 : vector<3x8xf32>
    %13 = vector.extract_strided_slice %7 {offsets = [0, 24], sizes = [3, 8], strides = [1, 1]} : vector<3x72xf32> to vector<3x8xf32>
    %14 = arith.maximumf %12, %13 : vector<3x8xf32>
    %15 = vector.extract_strided_slice %7 {offsets = [0, 32], sizes = [3, 8], strides = [1, 1]} : vector<3x72xf32> to vector<3x8xf32>
    %16 = arith.maximumf %14, %15 : vector<3x8xf32>
    %17 = vector.extract_strided_slice %7 {offsets = [0, 40], sizes = [3, 8], strides = [1, 1]} : vector<3x72xf32> to vector<3x8xf32>
    %18 = arith.maximumf %16, %17 : vector<3x8xf32>
    %19 = vector.extract_strided_slice %7 {offsets = [0, 48], sizes = [3, 8], strides = [1, 1]} : vector<3x72xf32> to vector<3x8xf32>
    %20 = arith.maximumf %18, %19 : vector<3x8xf32>
    %21 = vector.extract_strided_slice %7 {offsets = [0, 56], sizes = [3, 8], strides = [1, 1]} : vector<3x72xf32> to vector<3x8xf32>
    %22 = arith.maximumf %20, %21 : vector<3x8xf32>
    %23 = vector.extract_strided_slice %7 {offsets = [0, 64], sizes = [3, 8], strides = [1, 1]} : vector<3x72xf32> to vector<3x8xf32>
    %24 = arith.maximumf %22, %23 : vector<3x8xf32>
    %cst_6 = arith.constant 1.000000e+00 : f32
    %25 = vector.broadcast %cst_6 : f32 to vector<1x1xf32>
    %26 = vector.extract_strided_slice %24 {offsets = [0, 0], sizes = [1, 4], strides = [1, 1]} : vector<3x8xf32> to vector<1x4xf32>
    %27 = vector.extract_strided_slice %24 {offsets = [1, 0], sizes = [1, 4], strides = [1, 1]} : vector<3x8xf32> to vector<1x4xf32>
    %28 = vector.extract_strided_slice %24 {offsets = [2, 0], sizes = [1, 4], strides = [1, 1]} : vector<3x8xf32> to vector<1x4xf32>
    %29 = tpu.concatenate %26, %27, %28, %25 in 1 : vector<1x4xf32>, vector<1x4xf32>, vector<1x4xf32>, vector<1x1xf32> -> vector<1x13xf32>
    %30 = vector.extract_strided_slice %24 {offsets = [0, 4], sizes = [1, 4], strides = [1, 1]} : vector<3x8xf32> to vector<1x4xf32>
    %31 = vector.extract_strided_slice %24 {offsets = [1, 4], sizes = [1, 4], strides = [1, 1]} : vector<3x8xf32> to vector<1x4xf32>
    %32 = vector.extract_strided_slice %24 {offsets = [2, 4], sizes = [1, 4], strides = [1, 1]} : vector<3x8xf32> to vector<1x4xf32>
    %33 = tpu.concatenate %30, %31, %32, %25 in 1 : vector<1x4xf32>, vector<1x4xf32>, vector<1x4xf32>, vector<1x1xf32> -> vector<1x13xf32>
    %34 = tpu.concatenate %29, %33 in 0 : vector<1x13xf32>, vector<1x13xf32> -> vector<2x13xf32>
    %35 = arith.truncf %34 : vector<2x13xf32> to vector<2x13xbf16>
    %c0_7 = arith.constant 0 : index
    %c0_8 = arith.constant 0 : index
    %36 = vector.load %arg4[%c0_7, %c0_8] : memref<13x50176xbf16, #tpu.memory_space<vmem>>, vector<13x50176xbf16>
    %cst_9 = arith.constant dense<0.000000e+00> : vector<2x50176xf32>
    %37 = tpu.matmul %35, %36, %cst_9 {dimension_numbers = #tpu.dot_dimension_numbers<[1], [0], [0], [1], [0, 0, 1, 1], [], []>} : vector<2x13xbf16>, vector<13x50176xbf16>, vector<2x50176xf32> -> vector<2x50176xf32>
    %c0_10 = arith.constant 0 : index
    %c0_11 = arith.constant 0 : index
    %38 = vector.load %arg5[%c0_10, %c0_11] : memref<2x50176xf32, #tpu.memory_space<vmem>>, vector<2x50176xf32>
    tpu.vector_store %arg5[%c0_10, %c0_11], %37 {strides = array<i32>} : memref<2x50176xf32, #tpu.memory_space<vmem>>, vector<2x50176xf32>,
    return
  }
  func.func @transform_0(%arg0: i32) -> (i32, i32) {
    %c0_i32 = arith.constant 0 : i32
    %c0_i32_0 = arith.constant 0 : i32
    %c0_i32_1 = arith.constant 0 : i32
    return %c0_i32, %c0_i32_0 : i32, i32
  }
  func.func @transform_1(%arg0: i32) -> (i32, i32) {
    %c0_i32 = arith.constant 0 : i32
    %c0_i32_0 = arith.constant 0 : i32
    %c0_i32_1 = arith.constant 0 : i32
    return %c0_i32, %c0_i32_0 : i32, i32
  }
  func.func @transform_2(%arg0: i32) -> (i32, i32) {
    %c0_i32 = arith.constant 0 : i32
    %c0_i32_0 = arith.constant 0 : i32
    %c0_i32_1 = arith.constant 0 : i32
    return %c0_i32, %c0_i32_0 : i32, i32
  }
  func.func @transform_3(%arg0: i32) -> (i32, i32) {
    %c0_i32 = arith.constant 0 : i32
    %c0_i32_0 = arith.constant 0 : i32
    return %c0_i32, %arg0 : i32, i32
  }
  func.func @transform_4(%arg0: i32) -> (i32, i32) {
    %c0_i32 = arith.constant 0 : i32
    %c0_i32_0 = arith.constant 0 : i32
    return %c0_i32, %arg0 : i32, i32
  }
}

</mosaic_0001>

<bundles_post_ra>
// kernel: segmentation_naive_forward.1
= control target key start
LH: loop header
LB: loop body
LE: loop exit
PB: predicated region body
PF: predicated region fallthrough
CT: control target
= control target key end

     0   :  { %v15948_v2 = vmov 0   ;;  %v272_v28 = vlaneseq  ;;  %v15949_v36 = vmov 1983009808   ;;  %vm1058_vm0 = vcmask 1040384   ;;  %s18733_s0 = inlined_call_operand.vmem [shape: bf16[1875,72], index: 0, kind: input, shape index: {}]   ;;  %s18734_s1 = inlined_call_operand.vmem [shape: bf16[3,1875], index: 1, kind: input, shape index: {}]   ;;  %s18735_s2 = inlined_call_operand.vmem [shape: f32[3,1], index: 2, kind: input, shape index: {}]   ;;  %s18736_s3 = inlined_call_operand.vmem [shape: bf16[13,50176], index: 3, kind: input, shape index: {}]   ;;  %s18737_s4 = inlined_call_operand.hbm [shape: f32[2,50176], index: 4, kind: output, shape index: {}]  }
   0x1   :  { %v15804_v0 = vld [vmem:[%s18733_s0 + $0x78] sm:$0xff]   ;;  %15798 = vset.pattern.permute.xlu0 %v15948_v2  ;;  %v15808_v5 = vld [vmem:[%s18733_s0 + $0x70] sm:$0xff]   ;;  %v15812_v9 = vld [vmem:[%s18733_s0 + $0x68] sm:$0xff]   ;;  %v270_v37 = vunpack.c.l.s4 %v15949_v36  ;;  %vm1059_vm1 = vcmask 1041408   ;;  %vm15952_vm2 = vmmov 0  }
   0x2   :  { %v15805_v1 = vld [vmem:[%s18733_s0 + $0x38] sm:$0xff]   ;;  %15604 = vmatprep.subr.bf16.mxu0 %v15804_v0  ;;  %v15809_v6 = vld [vmem:[%s18733_s0 + $0x30] sm:$0xff]   ;;  %v15813_v10 = vld [vmem:[%s18733_s0 + $0x28] sm:$0xff]   ;;  %v273_v33 = vshrl.u32 %v272_v28, 7 }
   0x3   :  { %v15806_v3 = vld [vmem:[%s18733_s0 + $0xf8] sm:$0xff]   ;;  %15605 = vmatpush3.bf16.msra.mxu0 %v15805_v1  ;;  %v15810_v7 = vld [vmem:[%s18733_s0 + $0xf0] sm:$0xff]   ;;  %v15814_v11 = vld [vmem:[%s18733_s0 + $0xe8] sm:$0xff]   ;;  %v271_v39 = vunpack.c.0.s8 %v270_v37 }
   0x4   :  { %v15807_v4 = vld [vmem:[%s18733_s0 + $0xb8] sm:$0xff]   ;;  %15626 = vmatprep.subr.bf16.mxu1 %v15806_v3  ;;  %15606 = vmatprep.subr.bf16.mxu0 %v15808_v5  ;;  %v15811_v8 = vld [vmem:[%s18733_s0 + $0xb0] sm:$0xff]   ;;  %v15815_v12 = vld [vmem:[%s18733_s0 + $0xa8] sm:$0xff]  }
   0x5   :  { %15627 = vmatpush3.bf16.msra.mxu1 %v15807_v4  ;;  %v15816_v13 = vld [vmem:[%s18733_s0 + $0x60] sm:$0xff]   ;;  %v15820_v17 = vld [vmem:[%s18733_s0 + $0x58] sm:$0xff]   ;;  %v15824_v21 = vld [vmem:[%s18733_s0 + $0x50] sm:$0xff]   ;;  %v16096_v42 = vsub.s32 %v271_v39, %v273_v33 }
   0x6   :  { %15628 = vmatprep.subr.bf16.mxu1 %v15810_v7  ;;  %v15817_v14 = vld [vmem:[%s18733_s0 + $0x20] sm:$0xff]   ;;  %v15821_v18 = vld [vmem:[%s18733_s0 + $0x18] sm:$0xff]   ;;  %v15825_v22 = vld [vmem:[%s18733_s0 + $0x10] sm:$0xff]  }
   0x7   :  { %15607 = vmatpush3.bf16.msra.mxu0 %v15809_v6  ;;  %v15818_v15 = vld [vmem:[%s18733_s0 + $0xe0] sm:$0xff]   ;;  %v15822_v19 = vld [vmem:[%s18733_s0 + $0xd8] sm:$0xff]   ;;  %v15826_v23 = vld [vmem:[%s18733_s0 + $0xd0] sm:$0xff]  }
   0x8   :  { %15608 = vmatprep.subr.bf16.mxu0 %v15812_v9  ;;  %v15819_v16 = vld [vmem:[%s18733_s0 + $0xa0] sm:$0xff]   ;;  %v15823_v20 = vld [vmem:[%s18733_s0 + $0x98] sm:$0xff]   ;;  %v15827_v24 = vld [vmem:[%s18733_s0 + $0x90] sm:$0xff]  }
   0x9   :  { %15629 = vmatpush3.bf16.msra.mxu1 %v15811_v8  ;;  %v15828_v25 = vld [vmem:[%s18733_s0 + $0x48] sm:$0xff]   ;;  %v15832_v30 = vld [vmem:[%s18733_s0 + $0x40] sm:$0xff]   ;;  %v15836_v38 = vld [vmem:[%s18733_s0 + $0x178] sm:$0xff]  }
   0xa   :  { %15630 = vmatprep.subr.bf16.mxu1 %v15814_v11  ;;  %v15829_v26 = vld [vmem:[%s18733_s0 + $0x8] sm:$0xff]   ;;  %v15833_v31 = vld [vmem:[%s18733_s0] sm:$0xff]   ;;  %v15839_v41 = vld [vmem:[%s18733_s0 + $0x1f8] sm:$0xff]  }
   0xb   :  { %15609 = vmatpush3.bf16.msra.mxu0 %v15813_v10  ;;  %v15830_v27 = vld [vmem:[%s18733_s0 + $0xc8] sm:$0xff]   ;;  %v15834_v32 = vld [vmem:[%s18733_s0 + $0xc0] sm:$0xff]   ;;  %v15838_v45 = vld [vmem:[%s18733_s0 + $0x138] sm:$0xff]  }
   0xc   :  { %15610 = vmatprep.subr.bf16.mxu0 %v15816_v13  ;;  %v15831_v29 = vld [vmem:[%s18733_s0 + $0x88] sm:$0xff]   ;;  %v19_v34 = vld [vmem:[%s18734_s1] sm:$0xff]  ;;  %v15840_v46 = vld [vmem:[%s18733_s0 + $0x1b8] sm:$0xff]  }
   0xd   :  { %15631 = vmatpush3.bf16.msra.mxu1 %v15815_v12  ;;  %v15835_v35 = vld [vmem:[%s18733_s0 + $0x80] sm:$0xff]   ;;  %v268_v40 = vcombine.high %v19_v34, %v19_v34  ;;  %v275_v43 = vrot.slane %v19_v34, %v16096_v42  ;;  %v15841_v49 = vld [vmem:[%s18733_s0 + $0x170] sm:$0xff]   ;;  %v15845_v53 = vld [vmem:[%s18733_s0 + $0x168] sm:$0xff]  }
   0xe   :  { %15632 = vmatprep.subr.bf16.mxu1 %v15818_v15  ;;  %v15843_v50 = vld [vmem:[%s18733_s0 + $0x1f0] sm:$0xff]   ;;  %v15847_v54 = vld [vmem:[%s18733_s0 + $0x1e8] sm:$0xff]   ;;  %v15849_v57 = vld [vmem:[%s18733_s0 + $0x160] sm:$0xff]  }
   0xf   :  { %15611 = vmatpush3.bf16.msra.mxu0 %v15817_v14  ;;  %v282_v44 = vrot.slane %v268_v40, %v16096_v42  ;;  %v283_v47 = vcombine.high %v275_v43, %v275_v43  ;;  %v15842_v51 = vld [vmem:[%s18733_s0 + $0x130] sm:$0xff]   ;;  %v15846_v55 = vld [vmem:[%s18733_s0 + $0x128] sm:$0xff]   ;;  %v15851_v58 = vld [vmem:[%s18733_s0 + $0x1e0] sm:$0xff]  }
  0x10   :  { %15612 = vmatprep.subr.bf16.mxu0 %v15820_v17  ;;  %v15844_v52 = vld [vmem:[%s18733_s0 + $0x1b0] sm:$0xff]   ;;  %v15848_v56 = vld [vmem:[%s18733_s0 + $0x1a8] sm:$0xff]   ;;  %v15850_v59 = vld [vmem:[%s18733_s0 + $0x120] sm:$0xff]  }
  0x11   :  { %15633 = vmatpush3.bf16.msra.mxu1 %v15819_v16  ;;  %v284_v48 = vcombine.high %v282_v44, %v282_v44  ;;  %1097 = vmatprep.mubr.bf16.mxu0 %v283_v47  ;;  %v15852_v60 = vld [vmem:[%s18733_s0 + $0x1a0] sm:$0xff]   ;;  %v15853_v61 = vld [vmem:[%s18733_s0 + $0x158] sm:$0xff]   ;;  %v15857_v1 = vld [vmem:[%s18733_s0 + $0x150] sm:$0xff]  }
  0x12   :  { %15634 = vmatprep.subr.bf16.mxu1 %v15822_v19  ;;  %v15855_v62 = vld [vmem:[%s18733_s0 + $0x1d8] sm:$0xff]   ;;  %v15859_v3 = vld [vmem:[%s18733_s0 + $0x1d0] sm:$0xff]   ;;  %v15861_v6 = vld [vmem:[%s18733_s0 + $0x148] sm:$0xff]  }
  0x13   :  { %15613 = vmatpush3.bf16.msra.mxu0 %v15821_v18  ;;  %1137 = vmatprep.mubr.bf16.mxu1 %v284_v48  ;;  %v15854_v63 = vld [vmem:[%s18733_s0 + $0x118] sm:$0xff]   ;;  %v15858_v4 = vld [vmem:[%s18733_s0 + $0x110] sm:$0xff]   ;;  %v15863_v7 = vld [vmem:[%s18733_s0 + $0x1c8] sm:$0xff]  }
  0x14   :  { %15614 = vmatprep.subr.bf16.mxu0 %v15824_v21  ;;  %v15856_v0 = vld [vmem:[%s18733_s0 + $0x198] sm:$0xff]   ;;  %v15860_v5 = vld [vmem:[%s18733_s0 + $0x190] sm:$0xff]   ;;  %v15862_v8 = vld [vmem:[%s18733_s0 + $0x108] sm:$0xff]  }
  0x15   :  { %15635 = vmatpush3.bf16.msra.mxu1 %v15823_v20  ;;  %v15864_v9 = vld [vmem:[%s18733_s0 + $0x188] sm:$0xff]   ;;  %v15865_v11 = vld [vmem:[%s18733_s0 + $0x140] sm:$0xff]   ;;  %v15869_v19 = vld [vmem:[%s18733_s0 + $0x278] sm:$0xff]  }
  0x16   :  { %15636 = vmatprep.subr.bf16.mxu1 %v15826_v23  ;;  %v20_v10 = vld [vmem:[%s18734_s1 + $0x8] sm:$0xff]  ;;  %v15867_v14 = vld [vmem:[%s18733_s0 + $0x1c0] sm:$0xff]   ;;  %v15872_v21 = vld [vmem:[%s18733_s0 + $0x2f8] sm:$0xff]  }
  0x17   :  { %15615 = vmatpush3.bf16.msra.mxu0 %v15825_v22  ;;  %v292_v12 = vrot.slane %v20_v10, %v16096_v42  ;;  %v285_v13 = vcombine.high %v20_v10, %v20_v10  ;;  %v15866_v15 = vld [vmem:[%s18733_s0 + $0x100] sm:$0xff]   ;;  %v15871_v22 = vld [vmem:[%s18733_s0 + $0x238] sm:$0xff]   ;;  %v15878_v28 = vld [vmem:[%s18733_s0 + $0x268] sm:$0xff]  }
  0x18   :  { %15616 = vmatprep.subr.bf16.mxu0 %v15828_v25  ;;  %v15868_v18 = vld [vmem:[%s18733_s0 + $0x180] sm:$0xff]   ;;  %v15873_v23 = vld [vmem:[%s18733_s0 + $0x2b8] sm:$0xff]   ;;  %v15876_v25 = vld [vmem:[%s18733_s0 + $0x2f0] sm:$0xff]  }
  0x19   :  { %15637 = vmatpush3.bf16.msra.mxu1 %v15827_v24  ;;  %v300_v16 = vcombine.high %v292_v12, %v292_v12  ;;  %v299_v17 = vrot.slane %v285_v13, %v16096_v42  ;;  %v15874_v24 = vld [vmem:[%s18733_s0 + $0x270] sm:$0xff]   ;;  %v15884_v33 = vld [vmem:[%s18733_s0 + $0x2e0] sm:$0xff]   ;;  %v15886_v36 = vld [vmem:[%s18733_s0 + $0x258] sm:$0xff]  }
  0x1a   :  { %15638 = vmatprep.subr.bf16.mxu1 %v15830_v27  ;;  %v15877_v27 = vld [vmem:[%s18733_s0 + $0x2b0] sm:$0xff]   ;;  %v15883_v34 = vld [vmem:[%s18733_s0 + $0x220] sm:$0xff]   ;;  %v15888_v37 = vld [vmem:[%s18733_s0 + $0x2d8] sm:$0xff]  }
  0x1b   :  { %15617 = vmatpush3.bf16.msra.mxu0 %v15829_v26  ;;  %v301_v20 = vcombine.high %v299_v17, %v299_v17  ;;  %v15875_v26 = vld [vmem:[%s18733_s0 + $0x230] sm:$0xff]   ;;  %v15889_v39 = vld [vmem:[%s18733_s0 + $0x298] sm:$0xff]   ;;  %v15895_v47 = vld [vmem:[%s18733_s0 + $0x208] sm:$0xff]  }
  0x1c   :  { %15618 = vmatprep.subr.bf16.mxu0 %v15832_v30  ;;  %v15879_v30 = vld [vmem:[%s18733_s0 + $0x228] sm:$0xff]   ;;  %v15890_v40 = vld [vmem:[%s18733_s0 + $0x250] sm:$0xff]   ;;  %v15915_v10 = vld [vmem:[%s18733_s0 + $0x398] sm:$0xff]  }
  0x1d   :  { %15639 = vmatpush3.bf16.msra.mxu1 %v15831_v29  ;;  %v15880_v29 = vld [vmem:[%s18733_s0 + $0x2e8] sm:$0xff]   ;;  %v15918_v13 = vld [vmem:[%s18733_s0 + $0x390] sm:$0xff]  }
  0x1e   :  { %15640 = vmatprep.subr.bf16.mxu1 %v15834_v32  ;;  %v15882_v32 = vld [vmem:[%s18733_s0 + $0x260] sm:$0xff]   ;;  %v15897_v48 = vld [vmem:[%s18733_s0 + $0x288] sm:$0xff]  }
  0x1f   :  { %15619 = vmatpush3.bf16.msra.mxu0 %v15833_v31  ;;  %v15881_v31 = vld [vmem:[%s18733_s0 + $0x2a8] sm:$0xff]  }
  0x20   :  { %15648 = vmatprep.subr.bf16.mxu0 %v15836_v38  ;;  %v15887_v38 = vld [vmem:[%s18733_s0 + $0x218] sm:$0xff]  }
  0x21   :  { %15641 = vmatpush3.bf16.msra.mxu1 %v15835_v35  ;;  %v15885_v35 = vld [vmem:[%s18733_s0 + $0x2a0] sm:$0xff]  }
  0x22   :  { %15670 = vmatprep.subr.bf16.mxu1 %v15839_v41  ;;  %1098 = vmatmul.mubr.bf16.vlgmr.msra.gmra.mxu0 %v275_v43  ;;  %v15892_v41 = vld [vmem:[%s18733_s0 + $0x2d0] sm:$0xff]  }
  0x23   :  { %15649 = vmatpush3.bf16.msra.mxu0 %v15838_v45  ;;  %1177 = vmatprep.mubr.bf16.mxu0 %v300_v16  ;;  %v15891_v43 = vld [vmem:[%s18733_s0 + $0x210] sm:$0xff]   ;;  %v15894_v45 = vld [vmem:[%s18733_s0 + $0x248] sm:$0xff]  }
  0x24   :  { %1138 = vmatmul.mubr.bf16.vlgmr.msra.gmra.mxu1 %v282_v44  ;;  %15650 = vmatprep.subr.bf16.mxu0 %v15841_v49  ;;  %v15893_v44 = vld [vmem:[%s18733_s0 + $0x290] sm:$0xff]  }
  0x25   :  { %15671 = vmatpush3.bf16.msra.mxu1 %v15840_v46  ;;  %1217 = vmatprep.mubr.bf16.mxu1 %v301_v20  ;;  %v15896_v46 = vld [vmem:[%s18733_s0 + $0x2c8] sm:$0xff]   ;;  %v21_v49 = vld [vmem:[%s18734_s1 + $0x10] sm:$0xff] }
  0x26   :  { %15672 = vmatprep.subr.bf16.mxu1 %v15843_v50  ;;  %v15898_v50 = vld [vmem:[%s18733_s0 + $0x240] sm:$0xff]  }
  0x27   :  { %15651 = vmatpush3.bf16.msra.mxu0 %v15842_v51  ;;  %v309_v51 = vrot.slane %v21_v49, %v16096_v42 }
  0x28   :  { %15652 = vmatprep.subr.bf16.mxu0 %v15845_v53  ;;  %v15900_v53 = vld [vmem:[%s18733_s0 + $0x2c0] sm:$0xff]  }
  0x29   :  { %15673 = vmatpush3.bf16.msra.mxu1 %v15844_v52  ;;  %v302_v52 = vcombine.high %v21_v49, %v21_v49 }
  0x2a   :  { %15674 = vmatprep.subr.bf16.mxu1 %v15847_v54  ;;  %v317_v54 = vcombine.high %v309_v51, %v309_v51 }
  0x2b   :  { %15653 = vmatpush3.bf16.msra.mxu0 %v15846_v55  ;;  %v316_v55 = vrot.slane %v302_v52, %v16096_v42 }
  0x2c   :  { %15654 = vmatprep.subr.bf16.mxu0 %v15849_v57 }
  0x2d   :  { %15675 = vmatpush3.bf16.msra.mxu1 %v15848_v56  ;;  %v15950_v56 = vmov 65535  }
  0x2e   :  { %15676 = vmatprep.subr.bf16.mxu1 %v15851_v58  ;;  %v1060_v57 = vsel %vm1058_vm0, 4294967295, %v15950_v56  ;;  %v15899_v58 = vld [vmem:[%s18733_s0 + $0x200] sm:$0xff]  }
  0x2f   :  { %15655 = vmatpush3.bf16.msra.mxu0 %v15850_v59  ;;  %v15901_v59 = vld [vmem:[%s18733_s0 + $0x280] sm:$0xff]  }
  0x30   :  { %15656 = vmatprep.subr.bf16.mxu0 %v15853_v61  ;;  %v15902_v61 = vld [vmem:[%s18733_s0 + $0x378] sm:$0xff]  }
  0x31   :  { %15677 = vmatpush3.bf16.msra.mxu1 %v15852_v60  ;;  %v318_v60 = vcombine.high %v316_v55, %v316_v55 }
  0x32   :  { %15678 = vmatprep.subr.bf16.mxu1 %v15855_v62  ;;  %v1061_v62 = vsel %vm1059_vm1, %v1060_v57, 0 }
  0x33   :  { %15657 = vmatpush3.bf16.msra.mxu0 %v15854_v63  ;;  %v258_v63 = vld [vmem:[%s18735_s2] sm:$0x7] }
  0x34   :  { %15658 = vmatprep.subr.bf16.mxu0 %v15857_v1  ;;  %261 = vperm.xlu0 %15798, %v258_v63   ;;  %v15904_v1 = vld [vmem:[%s18733_s0 + $0x338] sm:$0xff]  }
  0x35   :  { %15679 = vmatpush3.bf16.msra.mxu1 %v15856_v0  ;;  %v15909_v0 = vld [vmem:[%s18733_s0 + $0x3a8] ss:$0 sps:$4 sm:$0x33]  }
  0x36   :  { %15680 = vmatprep.subr.bf16.mxu1 %v15859_v3  ;;  %v15905_v3 = vld [vmem:[%s18733_s0 + $0x370] sm:$0xff]  }
  0x37   :  { %15659 = vmatpush3.bf16.msra.mxu0 %v15858_v4  ;;  %v15951_v4 = vmov 0.0  }
  0x38   :  { %15660 = vmatprep.subr.bf16.mxu0 %v15861_v6  ;;  %v15906_v6 = vld [vmem:[%s18733_s0 + $0x330] sm:$0xff]  }
  0x39   :  { %15681 = vmatpush3.bf16.msra.mxu1 %v15860_v5  ;;  %v1063_v5 = vand.u32 %v15909_v0, %v1061_v62 }
  0x3a   :  { %15682 = vmatprep.subr.bf16.mxu1 %v15863_v7  ;;  %v15912_v7 = vld [vmem:[%s18733_s0 + $0x3a0] sm:$0xff]  }
  0x3b   :  { %15661 = vmatpush3.bf16.msra.mxu0 %v15862_v8  ;;  %v15907_v8 = vld [vmem:[%s18733_s0 + $0x368] sm:$0xff]  }
  0x3c   :  { %15662 = vmatprep.subr.bf16.mxu0 %v15865_v11  ;;  %v15910_v11 = vld [vmem:[%s18733_s0 + $0x360] sm:$0xff]  }
  0x3d   :  { %15683 = vmatpush3.bf16.msra.mxu1 %v15864_v9  ;;  %v15908_v9 = vld [vmem:[%s18733_s0 + $0x328] sm:$0xff]  }
  0x3e   :  { %15684 = vmatprep.subr.bf16.mxu1 %v15867_v14  ;;  %v15913_v14 = vld [vmem:[%s18733_s0 + $0x358] sm:$0xff]  }
  0x3f   :  { %15663 = vmatpush3.bf16.msra.mxu0 %v15866_v15  ;;  %v22_v15 = vld [vmem:[%s18734_s1 + $0x18] sm:$0x3f] }
  0x40   :  { %15692 = vmatprep.subr.bf16.mxu0 %v15869_v19 }
  0x41   :  { %15685 = vmatpush3.bf16.msra.mxu1 %v15868_v18 }
  0x42   :  { %15714 = vmatprep.subr.bf16.mxu1 %v15872_v21  ;;  %1178 = vmatmul.mubr.bf16.vlgmr.msra.gmra.mxu0 %v292_v12  ;;  %v15911_v12 = vld [vmem:[%s18733_s0 + $0x320] sm:$0xff]  }
  0x43   :  { %15693 = vmatpush3.bf16.msra.mxu0 %v15871_v22  ;;  %1257 = vmatprep.mubr.bf16.mxu0 %v317_v54 }
  0x44   :  { %1218 = vmatmul.mubr.bf16.vlgmr.msra.gmra.mxu1 %v299_v17  ;;  %15694 = vmatprep.subr.bf16.mxu0 %v15874_v24 }
  0x45   :  { %15715 = vmatpush3.bf16.msra.mxu1 %v15873_v23  ;;  %1297 = vmatprep.mubr.bf16.mxu1 %v318_v60 }
  0x46   :  { %15716 = vmatprep.subr.bf16.mxu1 %v15876_v25 }
  0x47   :  { %15695 = vmatpush3.bf16.msra.mxu0 %v15875_v26 }
  0x48   :  { %15696 = vmatprep.subr.bf16.mxu0 %v15878_v28 }
  0x49   :  { %15717 = vmatpush3.bf16.msra.mxu1 %v15877_v27 }
  0x4a   :  { %15718 = vmatprep.subr.bf16.mxu1 %v15880_v29 }
  0x4b   :  { %15697 = vmatpush3.bf16.msra.mxu0 %v15879_v30 }
  0x4c   :  { %15698 = vmatprep.subr.bf16.mxu0 %v15882_v32 }
  0x4d   :  { %15719 = vmatpush3.bf16.msra.mxu1 %v15881_v31 }
  0x4e   :  { %15720 = vmatprep.subr.bf16.mxu1 %v15884_v33 }
  0x4f   :  { %15699 = vmatpush3.bf16.msra.mxu0 %v15883_v34 }
  0x50   :  { %15700 = vmatprep.subr.bf16.mxu0 %v15886_v36 }
  0x51   :  { %15721 = vmatpush3.bf16.msra.mxu1 %v15885_v35 }
  0x52   :  { %15722 = vmatprep.subr.bf16.mxu1 %v15888_v37 }
  0x53   :  { %15701 = vmatpush3.bf16.msra.mxu0 %v15887_v38 }
  0x54   :  { %15702 = vmatprep.subr.bf16.mxu0 %v15890_v40 }
  0x55   :  { %15723 = vmatpush3.bf16.msra.mxu1 %v15889_v39 }
  0x56   :  { %15724 = vmatprep.subr.bf16.mxu1 %v15892_v41 }
  0x57   :  { %15703 = vmatpush3.bf16.msra.mxu0 %v15891_v43 }
  0x58   :  { %15704 = vmatprep.subr.bf16.mxu0 %v15894_v45 }
  0x59   :  { %15725 = vmatpush3.bf16.msra.mxu1 %v15893_v44 }
  0x5a   :  { %15726 = vmatprep.subr.bf16.mxu1 %v15896_v46 }
  0x5b   :  { %15705 = vmatpush3.bf16.msra.mxu0 %v15895_v47 }
  0x5c   :  { %15706 = vmatprep.subr.bf16.mxu0 %v15898_v50 }
  0x5d   :  { %15727 = vmatpush3.bf16.msra.mxu1 %v15897_v48 }
  0x5e   :  { %15728 = vmatprep.subr.bf16.mxu1 %v15900_v53 }
  0x5f   :  { %15707 = vmatpush3.bf16.msra.mxu0 %v15899_v58 }
  0x60   :  { %15736 = vmatprep.subr.bf16.mxu0 %v15902_v61 }
  0x61   :  { %15729 = vmatpush3.bf16.msra.mxu1 %v15901_v59 }
  0x62   :  { %15765 = vmatprep.subr.bf16.mxu1 %v15951_v4  ;;  %1258 = vmatmul.mubr.bf16.vlgmr.msra.gmra.mxu0 %v309_v51 }
  0x63   :  { %15737 = vmatpush3.bf16.msra.mxu0 %v15904_v1 }
  0x64   :  { %1298 = vmatmul.mubr.bf16.vlgmr.msra.gmra.mxu1 %v316_v55  ;;  %15738 = vmatprep.subr.bf16.mxu0 %v15905_v3 }
  0x65   :  { %15766 = vmatpush3.bf16.msra.mxu1 %v1063_v5  ;;  %15777 = vmatprep.mubr.msk.bf16.mxu1 %vm15952_vm2, %v15951_v4 }
  0x66   :  { %15767 = vmatprep.subr.bf16.mxu1 %v15951_v4 }
  0x67   :  { %15739 = vmatpush3.bf16.msra.mxu0 %v15906_v6 }
  0x68   :  { %15740 = vmatprep.subr.bf16.mxu0 %v15907_v8 }
  0x69   :  { %15768 = vmatpush3.bf16.msra.mxu1 %v15912_v7 }
  0x6a   :  { %15769 = vmatprep.subr.bf16.mxu1 %v15951_v4 }
  0x6b   :  { %15741 = vmatpush3.bf16.msra.mxu0 %v15908_v9 }
  0x6c   :  { %15742 = vmatprep.subr.bf16.mxu0 %v15910_v11 }
  0x6d   :  { %15770 = vmatpush3.bf16.msra.mxu1 %v15915_v10 }
  0x6e   :  { %15771 = vmatprep.subr.bf16.mxu1 %v15951_v4 }
  0x6f   :  { %9 = vsyncpa [#allocation3], 0  ;;  %15743 = vmatpush3.bf16.msra.mxu0 %v15911_v12  ;;  %v15914_v16 = vld [vmem:[%s18733_s0 + $0x318] sm:$0xff]   ;;  %v15921_v17 = vld [vmem:[%s18733_s0 + $0x388] sm:$0xff]   ;;  %v326_v18 = vrot.slane %v22_v15, %v16096_v42  ;;  %v319_v21 = vcombine.high %v22_v15, %v22_v15  ;;  %vm1054_vm3 = vcmask 678912   ;;  %s15954_s24 = smov 120  }
  0x70   :  { %15744 = vmatprep.subr.bf16.mxu0 %v15913_v14  ;;  %v15916_v19 = vld [vmem:[%s18733_s0 + $0x350] sm:$0xff]   ;;  %v15924_v23 = vld [vmem:[%s18733_s0 + $0x380] sm:$0xff]   ;;  %v15919_v24 = vld [vmem:[%s18733_s0 + $0x348] sm:$0xff]   ;;  %s15955_s25 = smov 104   ;;  %s15956_s26 = smov 96   ;;  %vm3413_vm4 = vcmask 1045504  }
  0x71   :  { %15772 = vmatpush3.bf16.msra.mxu1 %v15918_v13  ;;  %v334_v20 = vcombine.high %v326_v18, %v326_v18  ;;  %v15917_v22 = vld [vmem:[%s18733_s0 + $0x310] sm:$0xff]   ;;  %v333_v25 = vrot.slane %v319_v21, %v16096_v42  ;;  %v15920_v26 = vld [vmem:[%s18733_s0 + $0x308] sm:$0xff]   ;;  %v15922_v27 = vld [vmem:[%s18733_s0 + $0x340] sm:$0xff]   ;;  %s15957_s27 = smov 88   ;;  %s15958_s28 = smov 80   ;;  %vm3414_vm5 = vcmask 1046528  }
  0x72   :  { %15773 = vmatprep.subr.bf16.mxu1 %v15951_v4  ;;  %v15923_v28 = vld [vmem:[%s18733_s0 + $0x300] sm:$0xff]   ;;  %s15953_s0 = smov 112   ;;  %s15959_s29 = smov 72   ;;  %vm1428_vm6 = vcmask 31744   ;;  %vm1430_vm7 = vcmask 64512   ;;  %vm1432_vm8 = vcmask 97280  }
  0x73   :  { %15745 = vmatpush3.bf16.msra.mxu0 %v15914_v16  ;;  %1337 = vmatprep.mubr.bf16.mxu0 %v334_v20  ;;  %s15960_s30 = smov 64   ;;  %s15961_s19 = smov 124   ;;  %vm3409_vm9 = vcmask 105472  }
  0x74   :  { %15746 = vmatprep.subr.bf16.mxu0 %v15916_v19  ;;  %s15962_s20 = smov 8   ;;  %s15963_s21 = smov 4  }
  0x75   :  { %15774 = vmatpush3.bf16.msra.mxu1 %v15921_v17 }
  0x76   :  { %15775 = vmatprep.subr.bf16.mxu1 %v15951_v4 }
  0x77   :  { %15747 = vmatpush3.bf16.msra.mxu0 %v15917_v22 }
  0x78   :  { %15748 = vmatprep.subr.bf16.mxu0 %v15919_v24 }
  0x79   :  { %15776 = vmatpush3.bf16.msra.mxu1 %v15924_v23  ;;  %v3415_v23 = vsel %vm3413_vm4, 4294967295, %v15950_v56 }
  0x7b   :  { %15749 = vmatpush3.bf16.msra.mxu0 %v15920_v26  ;;  %v16375_v26 = vsel %vm3414_vm5, %v3415_v23, 0  ;;  %v1651_v23 = vld [vmem:[%s18736_s3 + $0x650] sm:$0x77] }
  0x7c   :  { %15778 = vmatmul.mubr.msk.bf16.vlgmr.msra.gmra.mxu1 %vm1054_vm3, %v333_v25  ;;  %15750 = vmatprep.subr.bf16.mxu0 %v15922_v27 }
  0x7d   :  { %4625 = vmatprep.mubr.bf16.mxu1 %v15948_v2 }
  0x7f   :  { %15751 = vmatpush3.bf16.msra.mxu0 %v15923_v28 }
  0x82   :  { %1338 = vmatmul.mubr.bf16.vlgmr.msra.gmra.mxu0 %v326_v18 }
  0x83   :  { %4666 = vmatprep.mubr.bf16.mxu0 %v15948_v2 }
  0xaf   :  { %v262_v31 = vpop.permute.xlu0 %261 }
  0xe2   :  { %v15620_v29 = vpop.f32.mrf.mxu0 }
  0xe4   :  { %v15642_v30 = vpop.f32.mrf.mxu1  ;;  %v15621_v32 = vpop.f32.mrf.mxu0 }
  0xe5   :  { %v15622_v34 = vadd.f32 %v15621_v32, %v15620_v29  ;;  %v1449_v29 = vld [vmem:[%s18736_s3] sm:$0xff] }
  0xe6   :  { %v15643_v33 = vpop.f32.mrf.mxu1  ;;  %v15623_v36 = vpop.f32.mrf.mxu0 }
  0xe7   :  { %v15644_v35 = vadd.f32 %v15643_v33, %v15642_v30  ;;  %v1100_v38 = vadd.f32 %v15622_v34, %v262_v31  ;;  %v1645_v30 = vld [vmem:[%s18736_s3 + $0x620] sm:$0x77]  ;;  %v1450_v31 = vld [vmem:[%s18736_s3 + $0x8] sm:$0xff] }
  0xe8   :  { %v15645_v37 = vpop.f32.mrf.mxu1  ;;  %v15624_v39 = vpop.f32.mrf.mxu0  ;;  %v15017_v56 = vcombine.high %v1449_v29, %v1645_v30  ;;  %v1646_v33 = vld [vmem:[%s18736_s3 + $0x628] sm:$0x77]  ;;  %v15016_v34 = vcombine.low %v1449_v29, %v1645_v30 }
  0xe9   :  { %v1140_v41 = vadd.f32 %v15644_v35, %v1100_v38  ;;  %v15018_v35 = vcombine.low %v1450_v31, %v1646_v33  ;;  %v15019_v36 = vcombine.high %v1450_v31, %v1646_v33 }
  0xea   :  { %v15646_v40 = vpop.f32.mrf.mxu1  ;;  %v3421_v38 = vand.u32 %v15017_v56, %v16375_v26 }
  0xeb   :  { %v3427_v40 = vand.u32 %v15019_v36, %v16375_v26  ;;  %v1458_v36 = vld [vmem:[%s18736_s3 + $0x48] sm:$0xff] }
  0xec   :  { %4607 = vmatprep.subr.bf16.mxu1 %v3421_v38 }
  0xed   :  { %4648 = vmatprep.subr.bf16.mxu0 %v3427_v40 }
 0x102   :  { %v15664_v43 = vpop.f32.mrf.mxu0 }
 0x104   :  { %v15686_v44 = vpop.f32.mrf.mxu1  ;;  %v15665_v45 = vpop.f32.mrf.mxu0 }
 0x105   :  { %v15666_v60 = vadd.f32 %v15665_v45, %v15664_v43  ;;  %v3424_v43 = vand.u32 %v15018_v35, %v16375_v26  ;;  %v1653_v35 = vld [vmem:[%s18736_s3 + $0x660] sm:$0x77] }
 0x106   :  { %v15687_v46 = vpop.f32.mrf.mxu1  ;;  %v15667_v47 = vpop.f32.mrf.mxu0 }
 0x107   :  { %v1180_v62 = vadd.f32 %v15666_v60, %v1140_v41  ;;  %v15688_v63 = vadd.f32 %v15687_v46, %v15686_v44  ;;  %v3418_v41 = vand.u32 %v15016_v34, %v16375_v26  ;;  %4649 = vmatpush1.bf16.msra.mxu0 %v3424_v43  ;;  %v1451_v47 = vld [vmem:[%s18736_s3 + $0x10] sm:$0xff]  ;;  %v1457_v34 = vld [vmem:[%s18736_s3 + $0x40] sm:$0xff] }
 0x108   :  { %v15689_v48 = vpop.f32.mrf.mxu1  ;;  %v15668_v49 = vpop.f32.mrf.mxu0  ;;  %v15033_v40 = vcombine.high %v1457_v34, %v1653_v35 }
 0x109   :  { %v1220_v4 = vadd.f32 %v15688_v63, %v1180_v62  ;;  %4608 = vmatpush1.bf16.msra.mxu1 %v3418_v41  ;;  %v1647_v48 = vld [vmem:[%s18736_s3 + $0x630] sm:$0x77]  ;;  %v1452_v49 = vld [vmem:[%s18736_s3 + $0x18] sm:$0xff] }
 0x10a   :  { %v15690_v50 = vpop.f32.mrf.mxu1 }
 0x10b   :  { %v15020_v50 = vcombine.low %v1451_v47, %v1647_v48 }
 0x122   :  { %v15708_v51 = vpop.f32.mrf.mxu0 }
 0x124   :  { %v15730_v52 = vpop.f32.mrf.mxu1  ;;  %v15709_v53 = vpop.f32.mrf.mxu0 }
 0x125   :  { %v15710_v1 = vadd.f32 %v15709_v53, %v15708_v51  ;;  %v15021_v51 = vcombine.high %v1451_v47, %v1647_v48  ;;  %v1459_v47 = vld [vmem:[%s18736_s3 + $0x50] sm:$0xff] }
 0x126   :  { %v15731_v54 = vpop.f32.mrf.mxu1  ;;  %v15711_v55 = vpop.f32.mrf.mxu0  ;;  %v1655_v48 = vld [vmem:[%s18736_s3 + $0x670] sm:$0x77] }
 0x127   :  { %v1260_v6 = vadd.f32 %v15710_v1, %v1220_v4  ;;  %v15732_v7 = vadd.f32 %v15731_v54, %v15730_v52  ;;  %v1648_v52 = vld [vmem:[%s18736_s3 + $0x638] sm:$0x77]  ;;  %v1453_v1 = vld [vmem:[%s18736_s3 + $0x20] sm:$0xff] }
 0x128   :  { %v15733_v57 = vpop.f32.mrf.mxu1  ;;  %v15712_v58 = vpop.f32.mrf.mxu0  ;;  %v15022_v55 = vcombine.low %v1452_v49, %v1648_v52  ;;  %v1649_v4 = vld [vmem:[%s18736_s3 + $0x640] sm:$0x77] }
 0x129   :  { %v1300_v10 = vadd.f32 %v15732_v7, %v1260_v6  ;;  %v15023_v57 = vcombine.high %v1452_v49, %v1648_v52  ;;  %v3433_v58 = vand.u32 %v15021_v51, %v16375_v26  ;;  %v1650_v6 = vld [vmem:[%s18736_s3 + $0x648] sm:$0x77]  ;;  %v1460_v49 = vld [vmem:[%s18736_s3 + $0x58] sm:$0xff]  ;;  %v15032_v51 = vcombine.low %v1457_v34, %v1653_v35  ;;  %v1467_v34 = vld [vmem:[%s18736_s3 + $0x90] sm:$0xff] }
 0x12a   :  { %v15734_v59 = vpop.f32.mrf.mxu1  ;;  %v1663_v35 = vld [vmem:[%s18736_s3 + $0x6b0] sm:$0x77] }
 0x12b   :  { %v3439_v60 = vand.u32 %v15023_v57, %v16375_v26  ;;  %4689 = vmatprep.subr.bf16.mxu1 %v3433_v58 }
 0x12d   :  { %4730 = vmatprep.subr.bf16.mxu0 %v3439_v60  ;;  %v1461_v60 = vld [vmem:[%s18736_s3 + $0x60] sm:$0xff] }
 0x13c   :  { %v1379_v61 = vpop.f32.mrf.mxu1 }
 0x13e   :  { %v15779_v0 = vpop.f32.mrf.mxu1 }
 0x140   :  { %v1382_v3 = vpop.f32.mrf.mxu1 }
 0x142   :  { %v15780_v5 = vpop.f32.mrf.mxu1  ;;  %v15752_v8 = vpop.f32.mrf.mxu0 }
 0x143   :  { %v1454_v5 = vld [vmem:[%s18736_s3 + $0x28] sm:$0xff] }
 0x144   :  { %v15753_v9 = vpop.f32.mrf.mxu0 }
 0x145   :  { %v15754_v11 = vadd.f32 %v15753_v9, %v15752_v8 }
 0x146   :  { %v15755_v12 = vpop.f32.mrf.mxu0 }
 0x147   :  { %v1340_v13 = vadd.f32 %v15754_v11, %v1300_v10 }
 0x148   :  { %v15756_v14 = vpop.f32.mrf.mxu0 }
 0x149   :  { %v1380_v15 = vadd.f32 %v1379_v61, %v1340_v13  ;;  %v15025_v14 = vcombine.high %v1453_v1, %v1649_v4 }
 0x14b   :  { %v1385_v16 = vmax.f32 %v1380_v15, 0.0  ;;  %v15027_v15 = vcombine.high %v1454_v5, %v1650_v6 }
 0x14d   :  { %1391 = vrot.lane.b32.xlu1 %v1385_v16, %s15953_s0  ;;  %1387 = vrot.lane.b32.xlu0 %v1385_v16, %s15954_s24 }
 0x151   :  { %1395 = vrot.lane.b32.xlu1 %v1385_v16, %s15955_s25  ;;  %1399 = vrot.lane.b32.xlu0 %v1385_v16, %s15956_s26 }
 0x155   :  { %1403 = vrot.lane.b32.xlu1 %v1385_v16, %s15957_s27  ;;  %1407 = vrot.lane.b32.xlu0 %v1385_v16, %s15958_s28 }
 0x159   :  { %1411 = vrot.lane.b32.xlu1 %v1385_v16, %s15959_s29  ;;  %1415 = vrot.lane.b32.xlu0 %v1385_v16, %s15960_s30 }
 0x1bf   :  { %v1392_v17 = vpop.permute.xlu1 %1391  ;;  %v1388_v18 = vpop.permute.xlu0 %1387 }
 0x1c0   :  { %v1390_v19 = vmax.f32 %v1385_v16, %v1388_v18  ;;  %v3436_v18 = vand.u32 %v15022_v55, %v16375_v26  ;;  %v3466_v55 = vand.u32 %v15032_v51, %v16375_v26  ;;  %v15052_v51 = vcombine.low %v1467_v34, %v1663_v35 }
 0x1c2   :  { %v1394_v20 = vmax.f32 %v1390_v19, %v1392_v17  ;;  %v3430_v17 = vand.u32 %v15020_v50, %v16375_v26  ;;  %v1656_v50 = vld [vmem:[%s18736_s3 + $0x678] sm:$0x77] }
 0x1c3   :  { %v1396_v21 = vpop.permute.xlu1 %1395  ;;  %v1400_v22 = vpop.permute.xlu0 %1399 }
 0x1c4   :  { %v1398_v24 = vmax.f32 %v1394_v20, %v1396_v21  ;;  %v3445_v20 = vand.u32 %v15025_v14, %v16375_v26  ;;  %v3451_v21 = vand.u32 %v15027_v15, %v16375_v26 }
 0x1c6   :  { %v1402_v25 = vmax.f32 %v1398_v24, %v1400_v22  ;;  %v1455_v22 = vld [vmem:[%s18736_s3 + $0x30] sm:$0xff]  ;;  %v1456_v24 = vld [vmem:[%s18736_s3 + $0x38] sm:$0xff] }
 0x1c7   :  { %v1404_v27 = vpop.permute.xlu1 %1403  ;;  %v1408_v28 = vpop.permute.xlu0 %1407  ;;  %v15029_v29 = vcombine.high %v1455_v22, %v1651_v23  ;;  %v15028_v38 = vcombine.low %v1455_v22, %v1651_v23  ;;  %v1465_v22 = vld [vmem:[%s18736_s3 + $0x80] sm:$0xff] }
 0x1c8   :  { %v1406_v32 = vmax.f32 %v1402_v25, %v1404_v27  ;;  %v1652_v25 = vld [vmem:[%s18736_s3 + $0x658] sm:$0x77]  ;;  %v15024_v27 = vcombine.low %v1453_v1, %v1649_v4  ;;  %v15038_v1 = vcombine.low %v1460_v49, %v1656_v50  ;;  %v1661_v23 = vld [vmem:[%s18736_s3 + $0x6a0] sm:$0x77] }
 0x1c9   :  { %v15031_v30 = vcombine.high %v1456_v24, %v1652_v25  ;;  %v3457_v56 = vand.u32 %v15029_v29, %v16375_v26  ;;  %v3454_v43 = vand.u32 %v15028_v38, %v16375_v26  ;;  %v15049_v29 = vcombine.high %v1465_v22, %v1661_v23 }
 0x1ca   :  { %v1410_v37 = vmax.f32 %v1406_v32, %v1408_v28  ;;  %v15026_v28 = vcombine.low %v1454_v5, %v1650_v6  ;;  %v3442_v31 = vand.u32 %v15024_v27, %v16375_v26  ;;  %v3484_v6 = vand.u32 %v15038_v1, %v16375_v26 }
 0x1cb   :  { %v1412_v39 = vpop.permute.xlu1 %1411  ;;  %v1416_v45 = vpop.permute.xlu0 %1415  ;;  %v3463_v33 = vand.u32 %v15031_v30, %v16375_v26  ;;  %v15048_v38 = vcombine.low %v1465_v22, %v1661_v23  ;;  %v1475_v22 = vld [vmem:[%s18736_s3 + $0xd0] sm:$0xff] }
 0x1cc   :  { %v1414_v44 = vmax.f32 %v1410_v37, %v1412_v39  ;;  %v3448_v32 = vand.u32 %v15026_v28, %v16375_v26  ;;  %v1654_v37 = vld [vmem:[%s18736_s3 + $0x668] sm:$0x77]  ;;  %v15030_v39 = vcombine.low %v1456_v24, %v1652_v25  ;;  %v1671_v23 = vld [vmem:[%s18736_s3 + $0x6f0] sm:$0x77] }
 0x1cd   :  { %v15035_v41 = vcombine.high %v1458_v36, %v1654_v37  ;;  %v15034_v52 = vcombine.low %v1458_v36, %v1654_v37  ;;  %v1466_v24 = vld [vmem:[%s18736_s3 + $0x88] sm:$0xff]  ;;  %v1468_v36 = vld [vmem:[%s18736_s3 + $0x98] sm:$0xff] }
 0x1ce   :  { %v1418_v46 = vmax.f32 %v1414_v44, %v1416_v45  ;;  %v3460_v44 = vand.u32 %v15030_v39, %v16375_v26  ;;  %v3469_v45 = vand.u32 %v15033_v40, %v16375_v26  ;;  %v1662_v25 = vld [vmem:[%s18736_s3 + $0x6a8] sm:$0x77]  ;;  %v1664_v37 = vld [vmem:[%s18736_s3 + $0x6b8] sm:$0x77]  ;;  %v15053_v40 = vcombine.high %v1467_v34, %v1663_v35  ;;  %v1477_v34 = vld [vmem:[%s18736_s3 + $0xe0] sm:$0xff] }
 0x1cf   :  { %v3472_v57 = vand.u32 %v15034_v52, %v16375_v26  ;;  %v15051_v30 = vcombine.high %v1466_v24, %v1662_v25  ;;  %v15050_v39 = vcombine.low %v1466_v24, %v1662_v25  ;;  %v15054_v52 = vcombine.low %v1468_v36, %v1664_v37  ;;  %v1476_v24 = vld [vmem:[%s18736_s3 + $0xd8] sm:$0xff]  ;;  %v1673_v35 = vld [vmem:[%s18736_s3 + $0x700] sm:$0x77] }
 0x1d0   :  { %1434 = vrot.lane.b32.xlu1 %v1418_v46, %s15961_s19  ;;  %v1424_v53 = vrot.slane %v1418_v46, 2  ;;  %v1420_v54 = vrot.slane %v1418_v46, 1  ;;  %v1672_v25 = vld [vmem:[%s18736_s3 + $0x6f8] sm:$0x77] }
 0x1d2   :  { %v15799_v59 = vpack.i.bf16 %v1420_v54, %v1424_v53 }
 0x1d4   :  { %1425 = vrot.lane.b32.xlu1 %v1424_v53, %s15962_s20  ;;  %15800 = vrot.lane.b32.xlu0 %v15799_v59, %s15963_s21  ;;  %v15037_v53 = vcombine.high %v1459_v47, %v1655_v48 }
 0x1d6   :  { %v3481_v58 = vand.u32 %v15037_v53, %v16375_v26 }
 0x242   :  { %v1435_v61 = vpop.permute.xlu1 %1434 }
 0x243   :  { %v1441_v3 = vsel %vm1428_vm6, %v1435_v61, %v1420_v54  ;;  %v15039_v54 = vcombine.high %v1460_v49, %v1656_v50  ;;  %v1657_v61 = vld [vmem:[%s18736_s3 + $0x680] sm:$0x77]  ;;  %v1470_v49 = vld [vmem:[%s18736_s3 + $0xa8] sm:$0xff] }
 0x244   :  { %v1666_v50 = vld [vmem:[%s18736_s3 + $0x6c8] sm:$0x77] }
 0x245   :  { %v3487_v59 = vand.u32 %v15039_v54, %v16375_v26  ;;  %v15059_v54 = vcombine.high %v1470_v49, %v1666_v50  ;;  %v15058_v1 = vcombine.low %v1470_v49, %v1666_v50  ;;  %v1480_v49 = vld [vmem:[%s18736_s3 + $0xf8] sm:$0xff] }
 0x246   :  { %v15801_v62 = vpop.permute.xlu0 %15800  ;;  %v1426_v7 = vpop.permute.xlu1 %1425  ;;  %v1676_v50 = vld [vmem:[%s18736_s3 + $0x718] sm:$0x77] }
 0x247   :  { %v15803_v63 = vunpack.i.h.bf16 %v15801_v62  ;;  %v15802_v0 = vunpack.i.l.bf16 %v15801_v62  ;;  %v1462_v62 = vld [vmem:[%s18736_s3 + $0x68] sm:$0xff] }
 0x249   :  { %v1429_v8 = vsel %vm1428_vm6, %v1418_v46, %v15803_v63  ;;  %v1442_v9 = vsel %vm1430_vm7, %v1441_v3, %v15802_v0  ;;  %v3475_v46 = vand.u32 %v15035_v41, %v16375_v26  ;;  %v1658_v63 = vld [vmem:[%s18736_s3 + $0x688] sm:$0x77]  ;;  %v15036_v0 = vcombine.low %v1459_v47, %v1655_v48  ;;  %v1469_v47 = vld [vmem:[%s18736_s3 + $0xa0] sm:$0xff] }
 0x24a   :  { %v1431_v10 = vsel %vm1430_vm7, %v1429_v8, %v1426_v7  ;;  %v1443_v11 = vsel %vm1432_vm8, %v1442_v9, 1.0  ;;  %v15041_v3 = vcombine.high %v1461_v60, %v1657_v61  ;;  %v15043_v4 = vcombine.high %v1462_v62, %v1658_v63  ;;  %v1463_v9 = vld [vmem:[%s18736_s3 + $0x70] sm:$0xff]  ;;  %v1665_v48 = vld [vmem:[%s18736_s3 + $0x6c0] sm:$0x77] }
 0x24b   :  { %v1433_v12 = vsel %vm1432_vm8, %v1431_v10, 1.0  ;;  %v1445_v13 = vrot.slane %v1443_v11, 7  ;;  %v3478_v5 = vand.u32 %v15036_v0, %v16375_v26  ;;  %v1659_v10 = vld [vmem:[%s18736_s3 + $0x690] sm:$0x77]  ;;  %v1464_v11 = vld [vmem:[%s18736_s3 + $0x78] sm:$0xff]  ;;  %v15042_v14 = vcombine.low %v1462_v62, %v1658_v63 }
 0x24c   :  { %v3493_v7 = vand.u32 %v15041_v3, %v16375_v26  ;;  %v3499_v8 = vand.u32 %v15043_v4, %v16375_v26  ;;  %v15045_v15 = vcombine.high %v1463_v9, %v1659_v10  ;;  %v15044_v27 = vcombine.low %v1463_v9, %v1659_v10  ;;  %v1472_v62 = vld [vmem:[%s18736_s3 + $0xb8] sm:$0xff]  ;;  %v1473_v9 = vld [vmem:[%s18736_s3 + $0xc0] sm:$0xff] }
 0x24d   :  { %v1447_v16 = vsel %vm1058_vm0, %v1433_v12, %v1445_v13  ;;  %v1660_v12 = vld [vmem:[%s18736_s3 + $0x698] sm:$0x77]  ;;  %v15040_v13 = vcombine.low %v1461_v60, %v1657_v61  ;;  %v15055_v41 = vcombine.high %v1468_v36, %v1664_v37  ;;  %v15057_v53 = vcombine.high %v1469_v47, %v1665_v48  ;;  %v1471_v60 = vld [vmem:[%s18736_s3 + $0xb0] sm:$0xff]  ;;  %v1669_v10 = vld [vmem:[%s18736_s3 + $0x6e0] sm:$0x77] }
 0x24e   :  { %v16422_v19 = vpack.c.bf16 %v1447_v16, %v1447_v16  ;;  %v15047_v16 = vcombine.high %v1464_v11, %v1660_v12  ;;  %v15046_v28 = vcombine.low %v1464_v11, %v1660_v12  ;;  %v1667_v61 = vld [vmem:[%s18736_s3 + $0x6d0] sm:$0x77]  ;;  %v1668_v63 = vld [vmem:[%s18736_s3 + $0x6d8] sm:$0x77]  ;;  %v15056_v0 = vcombine.low %v1469_v47, %v1665_v48  ;;  %v1474_v11 = vld [vmem:[%s18736_s3 + $0xc8] sm:$0xff] }
 0x24f   :  { %v15061_v3 = vcombine.high %v1471_v60, %v1667_v61  ;;  %v15063_v4 = vcombine.high %v1472_v62, %v1668_v63  ;;  %v1670_v12 = vld [vmem:[%s18736_s3 + $0x6e8] sm:$0x77]  ;;  %v1479_v47 = vld [vmem:[%s18736_s3 + $0xf0] sm:$0xff] }
 0x250   :  { %15408 = vmatmul.mubr.msk.bf16.vlgmr.msra.gmra.mxu1 %vm3409_vm9, %v16422_v19  ;;  %15409 = vmatmul.mubr.msk.bf16.vlgmr.msra.gmra.mxu0 %vm3409_vm9, %v16422_v19  ;;  %v1478_v36 = vld [vmem:[%s18736_s3 + $0xe8] sm:$0xff]  ;;  %v1675_v48 = vld [vmem:[%s18736_s3 + $0x710] sm:$0x77] }
 0x251   :  { %4690 = vmatpush1.bf16.msra.mxu1 %v3430_v17  ;;  %4731 = vmatpush1.bf16.msra.mxu0 %v3436_v18  ;;  %v3490_v17 = vand.u32 %v15040_v13, %v16375_v26  ;;  %v3496_v18 = vand.u32 %v15042_v14, %v16375_v26  ;;  %v15060_v13 = vcombine.low %v1471_v60, %v1667_v61  ;;  %v1674_v37 = vld [vmem:[%s18736_s3 + $0x708] sm:$0x77]  ;;  %v1481_v60 = vld [vmem:[%s18736_s3 + $0x100] sm:$0xff] }
 0x252   :  { %4707 = vmatprep.mubr.bf16.mxu1 %v15948_v2  ;;  %4748 = vmatprep.mubr.bf16.mxu0 %v15948_v2  ;;  %v15062_v14 = vcombine.low %v1472_v62, %v1668_v63  ;;  %v1677_v61 = vld [vmem:[%s18736_s3 + $0x720] sm:$0x77]  ;;  %v1482_v62 = vld [vmem:[%s18736_s3 + $0x108] sm:$0xff] }
 0x253   :  { %4771 = vmatprep.subr.bf16.mxu1 %v3445_v20  ;;  %4812 = vmatprep.subr.bf16.mxu0 %v3451_v21  ;;  %v3505_v20 = vand.u32 %v15045_v15, %v16375_v26  ;;  %v3511_v21 = vand.u32 %v15047_v16, %v16375_v26  ;;  %v15065_v15 = vcombine.high %v1473_v9, %v1669_v10  ;;  %v1678_v63 = vld [vmem:[%s18736_s3 + $0x728] sm:$0x77] }
 0x254   :  { %v15067_v16 = vcombine.high %v1474_v11, %v1670_v12 }
 0x258   :  { %15410 = vmatmul.mubr.msk.bf16.vlgmr.msra.gmra.mxu1 %vm3409_vm9, %v16422_v19  ;;  %15411 = vmatmul.mubr.msk.bf16.vlgmr.msra.gmra.mxu0 %vm3409_vm9, %v16422_v19 }
 0x259   :  { %4772 = vmatpush1.bf16.msra.mxu1 %v3442_v31  ;;  %4813 = vmatpush1.bf16.msra.mxu0 %v3448_v32  ;;  %v3502_v31 = vand.u32 %v15044_v27, %v16375_v26  ;;  %v3508_v32 = vand.u32 %v15046_v28, %v16375_v26  ;;  %v15064_v27 = vcombine.low %v1473_v9, %v1669_v10  ;;  %v1483_v9 = vld [vmem:[%s18736_s3 + $0x110] sm:$0xff] }
 0x25a   :  { %4789 = vmatprep.mubr.bf16.mxu1 %v15948_v2  ;;  %4830 = vmatprep.mubr.bf16.mxu0 %v15948_v2  ;;  %v15066_v28 = vcombine.low %v1474_v11, %v1670_v12  ;;  %v1679_v10 = vld [vmem:[%s18736_s3 + $0x730] sm:$0x77]  ;;  %v1484_v11 = vld [vmem:[%s18736_s3 + $0x118] sm:$0xff] }
 0x25b   :  { %4853 = vmatprep.subr.bf16.mxu1 %v3457_v56  ;;  %4894 = vmatprep.subr.bf16.mxu0 %v3463_v33  ;;  %v3517_v56 = vand.u32 %v15049_v29, %v16375_v26  ;;  %v3523_v33 = vand.u32 %v15051_v30, %v16375_v26  ;;  %v15069_v29 = vcombine.high %v1475_v22, %v1671_v23  ;;  %v1680_v12 = vld [vmem:[%s18736_s3 + $0x738] sm:$0x77] }
 0x25c   :  { %v15071_v30 = vcombine.high %v1476_v24, %v1672_v25 }
 0x260   :  { %15412 = vmatmul.mubr.msk.bf16.vlgmr.msra.gmra.mxu1 %vm3409_vm9, %v16422_v19  ;;  %15413 = vmatmul.mubr.msk.bf16.vlgmr.msra.gmra.mxu0 %vm3409_vm9, %v16422_v19 }
 0x261   :  { %4854 = vmatpush1.bf16.msra.mxu1 %v3454_v43  ;;  %4895 = vmatpush1.bf16.msra.mxu0 %v3460_v44  ;;  %v3514_v43 = vand.u32 %v15048_v38, %v16375_v26  ;;  %v3520_v44 = vand.u32 %v15050_v39, %v16375_v26  ;;  %v15068_v38 = vcombine.low %v1475_v22, %v1671_v23  ;;  %v1485_v22 = vld [vmem:[%s18736_s3 + $0x120] sm:$0xff] }
 0x262   :  { %4871 = vmatprep.mubr.bf16.mxu1 %v15948_v2  ;;  %4912 = vmatprep.mubr.bf16.mxu0 %v15948_v2  ;;  %v15070_v39 = vcombine.low %v1476_v24, %v1672_v25  ;;  %v1681_v23 = vld [vmem:[%s18736_s3 + $0x740] sm:$0x77]  ;;  %v1486_v24 = vld [vmem:[%s18736_s3 + $0x128] sm:$0xff] }
 0x263   :  { %4935 = vmatprep.subr.bf16.mxu1 %v3469_v45  ;;  %4976 = vmatprep.subr.bf16.mxu0 %v3475_v46  ;;  %v3529_v45 = vand.u32 %v15053_v40, %v16375_v26  ;;  %v3535_v46 = vand.u32 %v15055_v41, %v16375_v26  ;;  %v15073_v40 = vcombine.high %v1477_v34, %v1673_v35  ;;  %v1682_v25 = vld [vmem:[%s18736_s3 + $0x748] sm:$0x77] }
 0x264   :  { %v15075_v41 = vcombine.high %v1478_v36, %v1674_v37 }
 0x268   :  { %15414 = vmatmul.mubr.msk.bf16.vlgmr.msra.gmra.mxu1 %vm3409_vm9, %v16422_v19  ;;  %15415 = vmatmul.mubr.msk.bf16.vlgmr.msra.gmra.mxu0 %vm3409_vm9, %v16422_v19 }
 0x269   :  { %4936 = vmatpush1.bf16.msra.mxu1 %v3466_v55  ;;  %4977 = vmatpush1.bf16.msra.mxu0 %v3472_v57  ;;  %v3526_v55 = vand.u32 %v15052_v51, %v16375_v26  ;;  %v3532_v57 = vand.u32 %v15054_v52, %v16375_v26  ;;  %v15072_v51 = vcombine.low %v1477_v34, %v1673_v35  ;;  %v1487_v34 = vld [vmem:[%s18736_s3 + $0x130] sm:$0xff] }
 0x26a   :  { %4953 = vmatprep.mubr.bf16.mxu1 %v15948_v2  ;;  %4994 = vmatprep.mubr.bf16.mxu0 %v15948_v2  ;;  %v15074_v52 = vcombine.low %v1478_v36, %v1674_v37  ;;  %v1683_v35 = vld [vmem:[%s18736_s3 + $0x750] sm:$0x77]  ;;  %v1488_v36 = vld [vmem:[%s18736_s3 + $0x138] sm:$0xff] }
 0x26b   :  { %5017 = vmatprep.subr.bf16.mxu1 %v3481_v58  ;;  %5058 = vmatprep.subr.bf16.mxu0 %v3487_v59  ;;  %v3541_v58 = vand.u32 %v15057_v53, %v16375_v26  ;;  %v3547_v59 = vand.u32 %v15059_v54, %v16375_v26  ;;  %v15077_v53 = vcombine.high %v1479_v47, %v1675_v48  ;;  %v1684_v37 = vld [vmem:[%s18736_s3 + $0x758] sm:$0x77] }
 0x26c   :  { %v15079_v54 = vcombine.high %v1480_v49, %v1676_v50 }
 0x270   :  { %15416 = vmatmul.mubr.msk.bf16.vlgmr.msra.gmra.mxu1 %vm3409_vm9, %v16422_v19  ;;  %15417 = vmatmul.mubr.msk.bf16.vlgmr.msra.gmra.mxu0 %vm3409_vm9, %v16422_v19 }
 0x271   :  { %5018 = vmatpush1.bf16.msra.mxu1 %v3478_v5  ;;  %5059 = vmatpush1.bf16.msra.mxu0 %v3484_v6  ;;  %v3538_v5 = vand.u32 %v15056_v0, %v16375_v26  ;;  %v3544_v6 = vand.u32 %v15058_v1, %v16375_v26  ;;  %v15076_v0 = vcombine.low %v1479_v47, %v1675_v48  ;;  %v1489_v47 = vld [vmem:[%s18736_s3 + $0x140] sm:$0xff] }
 0x272   :  { %5035 = vmatprep.mubr.bf16.mxu1 %v15948_v2  ;;  %5076 = vmatprep.mubr.bf16.mxu0 %v15948_v2  ;;  %v15078_v1 = vcombine.low %v1480_v49, %v1676_v50  ;;  %v1685_v48 = vld [vmem:[%s18736_s3 + $0x760] sm:$0x77]  ;;  %v1490_v49 = vld [vmem:[%s18736_s3 + $0x148] sm:$0xff] }
 0x273   :  { %5099 = vmatprep.subr.bf16.mxu1 %v3493_v7  ;;  %5140 = vmatprep.subr.bf16.mxu0 %v3499_v8  ;;  %v3553_v7 = vand.u32 %v15061_v3, %v16375_v26  ;;  %v3559_v8 = vand.u32 %v15063_v4, %v16375_v26  ;;  %v15081_v3 = vcombine.high %v1481_v60, %v1677_v61  ;;  %v1686_v50 = vld [vmem:[%s18736_s3 + $0x768] sm:$0x77] }
 0x274   :  { %v15083_v4 = vcombine.high %v1482_v62, %v1678_v63 }
 0x278   :  { %15418 = vmatmul.mubr.msk.bf16.vlgmr.msra.gmra.mxu1 %vm3409_vm9, %v16422_v19  ;;  %15419 = vmatmul.mubr.msk.bf16.vlgmr.msra.gmra.mxu0 %vm3409_vm9, %v16422_v19 }
 0x279   :  { %5100 = vmatpush1.bf16.msra.mxu1 %v3490_v17  ;;  %5141 = vmatpush1.bf16.msra.mxu0 %v3496_v18  ;;  %v3550_v17 = vand.u32 %v15060_v13, %v16375_v26  ;;  %v3556_v18 = vand.u32 %v15062_v14, %v16375_v26  ;;  %v15080_v13 = vcombine.low %v1481_v60, %v1677_v61  ;;  %v1491_v60 = vld [vmem:[%s18736_s3 + $0x150] sm:$0xff] }
 0x27a   :  { %5117 = vmatprep.mubr.bf16.mxu1 %v15948_v2  ;;  %5158 = vmatprep.mubr.bf16.mxu0 %v15948_v2  ;;  %v15082_v14 = vcombine.low %v1482_v62, %v1678_v63  ;;  %v1687_v61 = vld [vmem:[%s18736_s3 + $0x770] sm:$0x77]  ;;  %v1492_v62 = vld [vmem:[%s18736_s3 + $0x158] sm:$0xff] }
 0x27b   :  { %5181 = vmatprep.subr.bf16.mxu1 %v3505_v20  ;;  %5222 = vmatprep.subr.bf16.mxu0 %v3511_v21  ;;  %v3565_v20 = vand.u32 %v15065_v15, %v16375_v26  ;;  %v3571_v21 = vand.u32 %v15067_v16, %v16375_v26  ;;  %v15085_v15 = vcombine.high %v1483_v9, %v1679_v10  ;;  %v1688_v63 = vld [vmem:[%s18736_s3 + $0x778] sm:$0x77] }
 0x27c   :  { %v15087_v16 = vcombine.high %v1484_v11, %v1680_v12 }
 0x280   :  { %15420 = vmatmul.mubr.msk.bf16.vlgmr.msra.gmra.mxu1 %vm3409_vm9, %v16422_v19  ;;  %15421 = vmatmul.mubr.msk.bf16.vlgmr.msra.gmra.mxu0 %vm3409_vm9, %v16422_v19 }
 0x281   :  { %5182 = vmatpush1.bf16.msra.mxu1 %v3502_v31  ;;  %5223 = vmatpush1.bf16.msra.mxu0 %v3508_v32  ;;  %v3562_v31 = vand.u32 %v15064_v27, %v16375_v26  ;;  %v3568_v32 = vand.u32 %v15066_v28, %v16375_v26  ;;  %v15084_v27 = vcombine.low %v1483_v9, %v1679_v10  ;;  %v1493_v9 = vld [vmem:[%s18736_s3 + $0x160] sm:$0xff] }
 0x282   :  { %5199 = vmatprep.mubr.bf16.mxu1 %v15948_v2  ;;  %5240 = vmatprep.mubr.bf16.mxu0 %v15948_v2  ;;  %v15086_v28 = vcombine.low %v1484_v11, %v1680_v12  ;;  %v1689_v10 = vld [vmem:[%s18736_s3 + $0x780] sm:$0x77]  ;;  %v1494_v11 = vld [vmem:[%s18736_s3 + $0x168] sm:$0xff] }
 0x283   :  { %5263 = vmatprep.subr.bf16.mxu1 %v3517_v56  ;;  %5304 = vmatprep.subr.bf16.mxu0 %v3523_v33  ;;  %v3577_v56 = vand.u32 %v15069_v29, %v16375_v26  ;;  %v3583_v33 = vand.u32 %v15071_v30, %v16375_v26  ;;  %v15089_v29 = vcombine.high %v1485_v22, %v1681_v23  ;;  %v1690_v12 = vld [vmem:[%s18736_s3 + $0x788] sm:$0x77] }
 0x284   :  { %v15091_v30 = vcombine.high %v1486_v24, %v1682_v25 }
 0x288   :  { %15422 = vmatmul.mubr.msk.bf16.vlgmr.msra.gmra.mxu1 %vm3409_vm9, %v16422_v19  ;;  %15423 = vmatmul.mubr.msk.bf16.vlgmr.msra.gmra.mxu0 %vm3409_vm9, %v16422_v19 }
 0x289   :  { %5264 = vmatpush1.bf16.msra.mxu1 %v3514_v43  ;;  %5305 = vmatpush1.bf16.msra.mxu0 %v3520_v44  ;;  %v3574_v43 = vand.u32 %v15068_v38, %v16375_v26  ;;  %v3580_v44 = vand.u32 %v15070_v39, %v16375_v26  ;;  %v15088_v38 = vcombine.low %v1485_v22, %v1681_v23  ;;  %v1495_v22 = vld [vmem:[%s18736_s3 + $0x170] sm:$0xff] }
 0x28a   :  { %5281 = vmatprep.mubr.bf16.mxu1 %v15948_v2  ;;  %5322 = vmatprep.mubr.bf16.mxu0 %v15948_v2  ;;  %v15090_v39 = vcombine.low %v1486_v24, %v1682_v25  ;;  %v1691_v23 = vld [vmem:[%s18736_s3 + $0x790] sm:$0x77]  ;;  %v1496_v24 = vld [vmem:[%s18736_s3 + $0x178] sm:$0xff] }
 0x28b   :  { %5345 = vmatprep.subr.bf16.mxu1 %v3529_v45  ;;  %5386 = vmatprep.subr.bf16.mxu0 %v3535_v46  ;;  %v3589_v45 = vand.u32 %v15073_v40, %v16375_v26  ;;  %v3595_v46 = vand.u32 %v15075_v41, %v16375_v26  ;;  %v15093_v40 = vcombine.high %v1487_v34, %v1683_v35  ;;  %v1692_v25 = vld [vmem:[%s18736_s3 + $0x798] sm:$0x77] }
 0x28c   :  { %v15095_v41 = vcombine.high %v1488_v36, %v1684_v37 }
 0x290   :  { %15424 = vmatmul.mubr.msk.bf16.vlgmr.msra.gmra.mxu1 %vm3409_vm9, %v16422_v19  ;;  %15425 = vmatmul.mubr.msk.bf16.vlgmr.msra.gmra.mxu0 %vm3409_vm9, %v16422_v19 }
 0x291   :  { %5346 = vmatpush1.bf16.msra.mxu1 %v3526_v55  ;;  %5387 = vmatpush1.bf16.msra.mxu0 %v3532_v57  ;;  %v3586_v55 = vand.u32 %v15072_v51, %v16375_v26  ;;  %v3592_v57 = vand.u32 %v15074_v52, %v16375_v26  ;;  %v15092_v51 = vcombine.low %v1487_v34, %v1683_v35  ;;  %v1497_v34 = vld [vmem:[%s18736_s3 + $0x180] sm:$0xff] }
 0x292   :  { %5363 = vmatprep.mubr.bf16.mxu1 %v15948_v2  ;;  %5404 = vmatprep.mubr.bf16.mxu0 %v15948_v2  ;;  %v15094_v52 = vcombine.low %v1488_v36, %v1684_v37  ;;  %v1693_v35 = vld [vmem:[%s18736_s3 + $0x7a0] sm:$0x77]  ;;  %v1498_v36 = vld [vmem:[%s18736_s3 + $0x188] sm:$0xff] }
 0x293   :  { %5427 = vmatprep.subr.bf16.mxu1 %v3541_v58  ;;  %5468 = vmatprep.subr.bf16.mxu0 %v3547_v59  ;;  %v3601_v58 = vand.u32 %v15077_v53, %v16375_v26  ;;  %v3607_v59 = vand.u32 %v15079_v54, %v16375_v26  ;;  %v15097_v53 = vcombine.high %v1489_v47, %v1685_v48  ;;  %v1694_v37 = vld [vmem:[%s18736_s3 + $0x7a8] sm:$0x77] }
 0x294   :  { %v15099_v54 = vcombine.high %v1490_v49, %v1686_v50 }
 0x298   :  { %15426 = vmatmul.mubr.msk.bf16.vlgmr.msra.gmra.mxu1 %vm3409_vm9, %v16422_v19  ;;  %15427 = vmatmul.mubr.msk.bf16.vlgmr.msra.gmra.mxu0 %vm3409_vm9, %v16422_v19 }
 0x299   :  { %5428 = vmatpush1.bf16.msra.mxu1 %v3538_v5  ;;  %5469 = vmatpush1.bf16.msra.mxu0 %v3544_v6  ;;  %v3598_v5 = vand.u32 %v15076_v0, %v16375_v26  ;;  %v3604_v6 = vand.u32 %v15078_v1, %v16375_v26  ;;  %v15096_v0 = vcombine.low %v1489_v47, %v1685_v48  ;;  %v1499_v47 = vld [vmem:[%s18736_s3 + $0x190] sm:$0xff] }
 0x29a   :  { %5445 = vmatprep.mubr.bf16.mxu1 %v15948_v2  ;;  %5486 = vmatprep.mubr.bf16.mxu0 %v15948_v2  ;;  %v15098_v1 = vcombine.low %v1490_v49, %v1686_v50  ;;  %v1695_v48 = vld [vmem:[%s18736_s3 + $0x7b0] sm:$0x77]  ;;  %v1500_v49 = vld [vmem:[%s18736_s3 + $0x198] sm:$0xff] }
 0x29b   :  { %5509 = vmatprep.subr.bf16.mxu1 %v3553_v7  ;;  %5550 = vmatprep.subr.bf16.mxu0 %v3559_v8  ;;  %v3613_v7 = vand.u32 %v15081_v3, %v16375_v26  ;;  %v3619_v8 = vand.u32 %v15083_v4, %v16375_v26  ;;  %v15101_v3 = vcombine.high %v1491_v60, %v1687_v61  ;;  %v1696_v50 = vld [vmem:[%s18736_s3 + $0x7b8] sm:$0x77] }
 0x29c   :  { %v15103_v4 = vcombine.high %v1492_v62, %v1688_v63 }
 0x2a0   :  { %15428 = vmatmul.mubr.msk.bf16.vlgmr.msra.gmra.mxu1 %vm3409_vm9, %v16422_v19  ;;  %15429 = vmatmul.mubr.msk.bf16.vlgmr.msra.gmra.mxu0 %vm3409_vm9, %v16422_v19 }
 0x2a1   :  { %5510 = vmatpush1.bf16.msra.mxu1 %v3550_v17  ;;  %5551 = vmatpush1.bf16.msra.mxu0 %v3556_v18  ;;  %v3610_v17 = vand.u32 %v15080_v13, %v16375_v26  ;;  %v3616_v18 = vand.u32 %v15082_v14, %v16375_v26  ;;  %v15100_v13 = vcombine.low %v1491_v60, %v1687_v61  ;;  %v1501_v60 = vld [vmem:[%s18736_s3 + $0x1a0] sm:$0xff] }
 0x2a2   :  { %5527 = vmatprep.mubr.bf16.mxu1 %v15948_v2  ;;  %5568 = vmatprep.mubr.bf16.mxu0 %v15948_v2  ;;  %v15102_v14 = vcombine.low %v1492_v62, %v1688_v63  ;;  %v1697_v61 = vld [vmem:[%s18736_s3 + $0x7c0] sm:$0x77]  ;;  %v1502_v62 = vld [vmem:[%s18736_s3 + $0x1a8] sm:$0xff] }
 0x2a3   :  { %5591 = vmatprep.subr.bf16.mxu1 %v3565_v20  ;;  %5632 = vmatprep.subr.bf16.mxu0 %v3571_v21  ;;  %v3625_v20 = vand.u32 %v15085_v15, %v16375_v26  ;;  %v3631_v21 = vand.u32 %v15087_v16, %v16375_v26  ;;  %v15105_v15 = vcombine.high %v1493_v9, %v1689_v10  ;;  %v1698_v63 = vld [vmem:[%s18736_s3 + $0x7c8] sm:$0x77] }
 0x2a4   :  { %v15107_v16 = vcombine.high %v1494_v11, %v1690_v12 }
 0x2a8   :  { %15430 = vmatmul.mubr.msk.bf16.vlgmr.msra.gmra.mxu1 %vm3409_vm9, %v16422_v19  ;;  %15431 = vmatmul.mubr.msk.bf16.vlgmr.msra.gmra.mxu0 %vm3409_vm9, %v16422_v19 }
 0x2a9   :  { %5592 = vmatpush1.bf16.msra.mxu1 %v3562_v31  ;;  %5633 = vmatpush1.bf16.msra.mxu0 %v3568_v32  ;;  %v3622_v31 = vand.u32 %v15084_v27, %v16375_v26  ;;  %v3628_v32 = vand.u32 %v15086_v28, %v16375_v26  ;;  %v15104_v27 = vcombine.low %v1493_v9, %v1689_v10  ;;  %v1503_v9 = vld [vmem:[%s18736_s3 + $0x1b0] sm:$0xff] }
 0x2aa   :  { %5609 = vmatprep.mubr.bf16.mxu1 %v15948_v2  ;;  %5650 = vmatprep.mubr.bf16.mxu0 %v15948_v2  ;;  %v15106_v28 = vcombine.low %v1494_v11, %v1690_v12  ;;  %v1699_v10 = vld [vmem:[%s18736_s3 + $0x7d0] sm:$0x77] }
 0x2ab   :  { %5673 = vmatprep.subr.bf16.mxu1 %v3577_v56  ;;  %5714 = vmatprep.subr.bf16.mxu0 %v3583_v33  ;;  %v3637_v56 = vand.u32 %v15089_v29, %v16375_v26  ;;  %v3643_v33 = vand.u32 %v15091_v30, %v16375_v26  ;;  %v15109_v29 = vcombine.high %v1495_v22, %v1691_v23 }
 0x2ac   :  { %v15111_v30 = vcombine.high %v1496_v24, %v1692_v25 }
 0x2b0   :  { %15432 = vmatmul.mubr.msk.bf16.vlgmr.msra.gmra.mxu1 %vm3409_vm9, %v16422_v19  ;;  %15433 = vmatmul.mubr.msk.bf16.vlgmr.msra.gmra.mxu0 %vm3409_vm9, %v16422_v19 }
 0x2b1   :  { %5674 = vmatpush1.bf16.msra.mxu1 %v3574_v43  ;;  %5715 = vmatpush1.bf16.msra.mxu0 %v3580_v44  ;;  %v3634_v43 = vand.u32 %v15088_v38, %v16375_v26  ;;  %v3640_v44 = vand.u32 %v15090_v39, %v16375_v26  ;;  %v15108_v38 = vcombine.low %v1495_v22, %v1691_v23 }
 0x2b2   :  { %5691 = vmatprep.mubr.bf16.mxu1 %v15948_v2  ;;  %5732 = vmatprep.mubr.bf16.mxu0 %v15948_v2  ;;  %v15110_v39 = vcombine.low %v1496_v24, %v1692_v25 }
 0x2b3   :  { %5755 = vmatprep.subr.bf16.mxu1 %v3589_v45  ;;  %5796 = vmatprep.subr.bf16.mxu0 %v3595_v46  ;;  %v3649_v45 = vand.u32 %v15093_v40, %v16375_v26  ;;  %v3655_v46 = vand.u32 %v15095_v41, %v16375_v26  ;;  %v15113_v40 = vcombine.high %v1497_v34, %v1693_v35 }
 0x2b4   :  { %v15115_v41 = vcombine.high %v1498_v36, %v1694_v37 }
 0x2b8   :  { %15434 = vmatmul.mubr.msk.bf16.vlgmr.msra.gmra.mxu1 %vm3409_vm9, %v16422_v19  ;;  %15435 = vmatmul.mubr.msk.bf16.vlgmr.msra.gmra.mxu0 %vm3409_vm9, %v16422_v19 }
 0x2b9   :  { %5756 = vmatpush1.bf16.msra.mxu1 %v3586_v55  ;;  %5797 = vmatpush1.bf16.msra.mxu0 %v3592_v57  ;;  %v3646_v55 = vand.u32 %v15092_v51, %v16375_v26  ;;  %v3652_v57 = vand.u32 %v15094_v52, %v16375_v26  ;;  %v15112_v51 = vcombine.low %v1497_v34, %v1693_v35  ;;  %v1505_v35 = vld [vmem:[%s18736_s3 + $0x1c0] sm:$0xff] }
 0x2ba   :  { %5773 = vmatprep.mubr.bf16.mxu1 %v15948_v2  ;;  %5814 = vmatprep.mubr.bf16.mxu0 %v15948_v2  ;;  %v15114_v52 = vcombine.low %v1498_v36, %v1694_v37  ;;  %v1701_v36 = vld [vmem:[%s18736_s3 + $0x7e0] sm:$0x77] }
 0x2bb   :  { %5837 = vmatprep.subr.bf16.mxu1 %v3601_v58  ;;  %5878 = vmatprep.subr.bf16.mxu0 %v3607_v59  ;;  %v3661_v58 = vand.u32 %v15097_v53, %v16375_v26  ;;  %v3667_v59 = vand.u32 %v15099_v54, %v16375_v26  ;;  %v15117_v53 = vcombine.high %v1499_v47, %v1695_v48 }
 0x2bc   :  { %v15119_v54 = vcombine.high %v1500_v49, %v1696_v50 }
 0x2c0   :  { %15436 = vmatmul.mubr.msk.bf16.vlgmr.msra.gmra.mxu1 %vm3409_vm9, %v16422_v19  ;;  %15437 = vmatmul.mubr.msk.bf16.vlgmr.msra.gmra.mxu0 %vm3409_vm9, %v16422_v19 }
 0x2c1   :  { %5838 = vmatpush1.bf16.msra.mxu1 %v3598_v5  ;;  %5879 = vmatpush1.bf16.msra.mxu0 %v3604_v6  ;;  %v3658_v5 = vand.u32 %v15096_v0, %v16375_v26  ;;  %v3664_v6 = vand.u32 %v15098_v1, %v16375_v26  ;;  %v15116_v0 = vcombine.low %v1499_v47, %v1695_v48 }
 0x2c2   :  { %5855 = vmatprep.mubr.bf16.mxu1 %v15948_v2  ;;  %5896 = vmatprep.mubr.bf16.mxu0 %v15948_v2  ;;  %v15118_v1 = vcombine.low %v1500_v49, %v1696_v50 }
 0x2c3   :  { %5919 = vmatprep.subr.bf16.mxu1 %v3613_v7  ;;  %5960 = vmatprep.subr.bf16.mxu0 %v3619_v8  ;;  %v3673_v7 = vand.u32 %v15101_v3, %v16375_v26  ;;  %v3679_v8 = vand.u32 %v15103_v4, %v16375_v26  ;;  %v15121_v3 = vcombine.high %v1501_v60, %v1697_v61 }
 0x2c4   :  { %v15123_v4 = vcombine.high %v1502_v62, %v1698_v63 }
 0x2c8   :  { %15438 = vmatmul.mubr.msk.bf16.vlgmr.msra.gmra.mxu1 %vm3409_vm9, %v16422_v19  ;;  %15439 = vmatmul.mubr.msk.bf16.vlgmr.msra.gmra.mxu0 %vm3409_vm9, %v16422_v19 }
 0x2c9   :  { %5920 = vmatpush1.bf16.msra.mxu1 %v3610_v17  ;;  %5961 = vmatpush1.bf16.msra.mxu0 %v3616_v18  ;;  %v3670_v17 = vand.u32 %v15100_v13, %v16375_v26  ;;  %v3676_v18 = vand.u32 %v15102_v14, %v16375_v26  ;;  %v1504_v13 = vld [vmem:[%s18736_s3 + $0x1b8] sm:$0xff] }
 0x2ca   :  { %5937 = vmatprep.mubr.bf16.mxu1 %v15948_v2  ;;  %5978 = vmatprep.mubr.bf16.mxu0 %v15948_v2  ;;  %v1700_v14 = vld [vmem:[%s18736_s3 + $0x7d8] sm:$0x77] }
 0x2cb   :  { %6001 = vmatprep.subr.bf16.mxu1 %v3625_v20  ;;  %6042 = vmatprep.subr.bf16.mxu0 %v3631_v21  ;;  %v3685_v20 = vand.u32 %v15105_v15, %v16375_v26  ;;  %v3691_v21 = vand.u32 %v15107_v16, %v16375_v26  ;;  %v15120_v15 = vcombine.low %v1501_v60, %v1697_v61 }
 0x2cc   :  { %v15122_v16 = vcombine.low %v1502_v62, %v1698_v63  ;;  %v15127_v23 = vcombine.high %v1504_v13, %v1700_v14  ;;  %v1507_v62 = vld [vmem:[%s18736_s3 + $0x1d0] sm:$0xff] }
 0x2cd   :  { %v1703_v63 = vld [vmem:[%s18736_s3 + $0x7f0] sm:$0x77] }
 0x2ce   :  { %v3751_v34 = vand.u32 %v15127_v23, %v16375_v26 }
 0x2d0   :  { %15440 = vmatmul.mubr.msk.bf16.vlgmr.msra.gmra.mxu1 %vm3409_vm9, %v16422_v19  ;;  %15441 = vmatmul.mubr.msk.bf16.vlgmr.msra.gmra.mxu0 %vm3409_vm9, %v16422_v19 }
 0x2d1   :  { %6002 = vmatpush1.bf16.msra.mxu1 %v3622_v31  ;;  %6043 = vmatpush1.bf16.msra.mxu0 %v3628_v32  ;;  %v3682_v31 = vand.u32 %v15104_v27, %v16375_v26  ;;  %v3688_v32 = vand.u32 %v15106_v28, %v16375_v26 }
 0x2d2   :  { %6019 = vmatprep.mubr.bf16.mxu1 %v15948_v2  ;;  %6060 = vmatprep.mubr.bf16.mxu0 %v15948_v2 }
 0x2d3   :  { %6083 = vmatprep.subr.bf16.mxu1 %v3637_v56  ;;  %6124 = vmatprep.subr.bf16.mxu0 %v3643_v33  ;;  %v3697_v56 = vand.u32 %v15109_v29, %v16375_v26  ;;  %v3703_v33 = vand.u32 %v15111_v30, %v16375_v26  ;;  %v3730_v29 = vand.u32 %v15120_v15, %v16375_v26 }
 0x2d4   :  { %v3736_v30 = vand.u32 %v15122_v16, %v16375_v26 }
 0x2d8   :  { %15442 = vmatmul.mubr.msk.bf16.vlgmr.msra.gmra.mxu1 %vm3409_vm9, %v16422_v19  ;;  %15443 = vmatmul.mubr.msk.bf16.vlgmr.msra.gmra.mxu0 %vm3409_vm9, %v16422_v19 }
 0x2d9   :  { %6084 = vmatpush1.bf16.msra.mxu1 %v3634_v43  ;;  %6125 = vmatpush1.bf16.msra.mxu0 %v3640_v44  ;;  %v3694_v43 = vand.u32 %v15108_v38, %v16375_v26  ;;  %v3700_v44 = vand.u32 %v15110_v39, %v16375_v26  ;;  %v1506_v39 = vld [vmem:[%s18736_s3 + $0x1c8] sm:$0xff] }
 0x2da   :  { %6101 = vmatprep.mubr.bf16.mxu1 %v15948_v2  ;;  %6142 = vmatprep.mubr.bf16.mxu0 %v15948_v2 }
 0x2db   :  { %6165 = vmatprep.subr.bf16.mxu1 %v3649_v45  ;;  %6206 = vmatprep.subr.bf16.mxu0 %v3655_v46  ;;  %v3709_v45 = vand.u32 %v15113_v40, %v16375_v26  ;;  %v3715_v46 = vand.u32 %v15115_v41, %v16375_v26  ;;  %v1702_v40 = vld [vmem:[%s18736_s3 + $0x7e8] sm:$0x77]  ;;  %v15124_v41 = vcombine.low %v1503_v9, %v1699_v10 }
 0x2dc   :  { %v15131_v49 = vcombine.high %v1506_v39, %v1702_v40 }
 0x2de   :  { %v3763_v61 = vand.u32 %v15131_v49, %v16375_v26 }
 0x2e0   :  { %15444 = vmatmul.mubr.msk.bf16.vlgmr.msra.gmra.mxu1 %vm3409_vm9, %v16422_v19  ;;  %15445 = vmatmul.mubr.msk.bf16.vlgmr.msra.gmra.mxu0 %vm3409_vm9, %v16422_v19 }
 0x2e1   :  { %6166 = vmatpush1.bf16.msra.mxu1 %v3646_v55  ;;  %6207 = vmatpush1.bf16.msra.mxu0 %v3652_v57  ;;  %v3706_v55 = vand.u32 %v15112_v51, %v16375_v26  ;;  %v3712_v57 = vand.u32 %v15114_v52, %v16375_v26 }
 0x2e2   :  { %6183 = vmatprep.mubr.bf16.mxu1 %v15948_v2  ;;  %6224 = vmatprep.mubr.bf16.mxu0 %v15948_v2 }
 0x2e3   :  { %6247 = vmatprep.subr.bf16.mxu1 %v3661_v58  ;;  %6288 = vmatprep.subr.bf16.mxu0 %v3667_v59  ;;  %v3721_v58 = vand.u32 %v15117_v53, %v16375_v26  ;;  %v3727_v59 = vand.u32 %v15119_v54, %v16375_v26  ;;  %v3742_v54 = vand.u32 %v15124_v41, %v16375_v26 }
 0x2e8   :  { %15446 = vmatmul.mubr.msk.bf16.vlgmr.msra.gmra.mxu1 %vm3409_vm9, %v16422_v19  ;;  %15447 = vmatmul.mubr.msk.bf16.vlgmr.msra.gmra.mxu0 %vm3409_vm9, %v16422_v19 }
 0x2e9   :  { %6248 = vmatpush1.bf16.msra.mxu1 %v3658_v5  ;;  %6289 = vmatpush1.bf16.msra.mxu0 %v3664_v6  ;;  %v3718_v5 = vand.u32 %v15116_v0, %v16375_v26  ;;  %v3724_v6 = vand.u32 %v15118_v1, %v16375_v26 }
 0x2ea   :  { %6265 = vmatprep.mubr.bf16.mxu1 %v15948_v2  ;;  %6306 = vmatprep.mubr.bf16.mxu0 %v15948_v2 }
 0x2eb   :  { %6329 = vmatprep.subr.bf16.mxu1 %v3673_v7  ;;  %6370 = vmatprep.subr.bf16.mxu0 %v3679_v8  ;;  %v3733_v7 = vand.u32 %v15121_v3, %v16375_v26  ;;  %v3739_v8 = vand.u32 %v15123_v4, %v16375_v26  ;;  %v1508_v3 = vld [vmem:[%s18736_s3 + $0x1d8] sm:$0xff] }
 0x2ec   :  { %v1704_v4 = vld [vmem:[%s18736_s3 + $0x7f8] sm:$0x77] }
 0x2f0   :  { %15448 = vmatmul.mubr.msk.bf16.vlgmr.msra.gmra.mxu1 %vm3409_vm9, %v16422_v19  ;;  %15449 = vmatmul.mubr.msk.bf16.vlgmr.msra.gmra.mxu0 %vm3409_vm9, %v16422_v19 }
 0x2f1   :  { %6330 = vmatpush1.bf16.msra.mxu1 %v3670_v17  ;;  %6371 = vmatpush1.bf16.msra.mxu0 %v3676_v18 }
 0x2f2   :  { %6347 = vmatprep.mubr.bf16.mxu1 %v15948_v2  ;;  %6388 = vmatprep.mubr.bf16.mxu0 %v15948_v2 }
 0x2f3   :  { %6411 = vmatprep.subr.bf16.mxu1 %v3685_v20  ;;  %6452 = vmatprep.subr.bf16.mxu0 %v3691_v21  ;;  %v15125_v20 = vcombine.high %v1503_v9, %v1699_v10  ;;  %v15133_v9 = vcombine.high %v1507_v62, %v1703_v63 }
 0x2f5   :  { %v3769_v23 = vand.u32 %v15133_v9, %v16375_v26 }
 0x2f8   :  { %15450 = vmatmul.mubr.msk.bf16.vlgmr.msra.gmra.mxu1 %vm3409_vm9, %v16422_v19  ;;  %15451 = vmatmul.mubr.msk.bf16.vlgmr.msra.gmra.mxu0 %vm3409_vm9, %v16422_v19 }
 0x2f9   :  { %6412 = vmatpush1.bf16.msra.mxu1 %v3682_v31  ;;  %6453 = vmatpush1.bf16.msra.mxu0 %v3688_v32 }
 0x2fa   :  { %6429 = vmatprep.mubr.bf16.mxu1 %v15948_v2  ;;  %6470 = vmatprep.mubr.bf16.mxu0 %v15948_v2 }
 0x2fb   :  { %6493 = vmatprep.subr.bf16.mxu1 %v3697_v56  ;;  %6534 = vmatprep.subr.bf16.mxu0 %v3703_v33  ;;  %v3745_v33 = vand.u32 %v15125_v20, %v16375_v26 }
 0x300   :  { %15452 = vmatmul.mubr.msk.bf16.vlgmr.msra.gmra.mxu1 %vm3409_vm9, %v16422_v19  ;;  %15453 = vmatmul.mubr.msk.bf16.vlgmr.msra.gmra.mxu0 %vm3409_vm9, %v16422_v19 }
 0x301   :  { %6494 = vmatpush1.bf16.msra.mxu1 %v3694_v43  ;;  %6535 = vmatpush1.bf16.msra.mxu0 %v3700_v44  ;;  %v15126_v43 = vcombine.low %v1504_v13, %v1700_v14 }
 0x302   :  { %6511 = vmatprep.mubr.bf16.mxu1 %v15948_v2  ;;  %6552 = vmatprep.mubr.bf16.mxu0 %v15948_v2 }
 0x303   :  { %6575 = vmatprep.subr.bf16.mxu1 %v3709_v45  ;;  %6616 = vmatprep.subr.bf16.mxu0 %v3715_v46  ;;  %v15129_v46 = vcombine.high %v1505_v35, %v1701_v36 }
 0x305   :  { %v3757_v60 = vand.u32 %v15129_v46, %v16375_v26 }
 0x308   :  { %15454 = vmatmul.mubr.msk.bf16.vlgmr.msra.gmra.mxu1 %vm3409_vm9, %v16422_v19  ;;  %15455 = vmatmul.mubr.msk.bf16.vlgmr.msra.gmra.mxu0 %vm3409_vm9, %v16422_v19 }
 0x309   :  { %6576 = vmatpush1.bf16.msra.mxu1 %v3706_v55  ;;  %6617 = vmatpush1.bf16.msra.mxu0 %v3712_v57  ;;  %v3748_v55 = vand.u32 %v15126_v43, %v16375_v26 }
 0x30a   :  { %6593 = vmatprep.mubr.bf16.mxu1 %v15948_v2  ;;  %6634 = vmatprep.mubr.bf16.mxu0 %v15948_v2 }
 0x30b   :  { %6657 = vmatprep.subr.bf16.mxu1 %v3721_v58  ;;  %6698 = vmatprep.subr.bf16.mxu0 %v3727_v59 }
 0x310   :  { %v4627_v11 = vpop.f32.mrf.mxu1  ;;  %v4668_v12 = vpop.f32.mrf.mxu0  ;;  %15456 = vmatmul.mubr.msk.bf16.vlgmr.msra.gmra.mxu1 %vm3409_vm9, %v16422_v19  ;;  %15457 = vmatmul.mubr.msk.bf16.vlgmr.msra.gmra.mxu0 %vm3409_vm9, %v16422_v19 }
 0x311   :  { %6658 = vmatpush1.bf16.msra.mxu1 %v3718_v5  ;;  %6699 = vmatpush1.bf16.msra.mxu0 %v3724_v6  ;;  %v15128_v5 = vcombine.low %v1505_v35, %v1701_v36  ;;  %v15130_v6 = vcombine.low %v1506_v39, %v1702_v40 }
 0x312   :  { %v4629_v17 = vpop.f32.mrf.mxu1  ;;  %v4670_v18 = vpop.f32.mrf.mxu0  ;;  %6675 = vmatprep.mubr.bf16.mxu1 %v15948_v2  ;;  %6716 = vmatprep.mubr.bf16.mxu0 %v15948_v2 }
 0x313   :  { %v13021_v21 = vcombine.low %v4627_v11, %v4629_v17  ;;  %v13022_v22 = vcombine.low %v4668_v12, %v4670_v18  ;;  %6739 = vmatprep.subr.bf16.mxu1 %v3733_v7  ;;  %6780 = vmatprep.subr.bf16.mxu0 %v3739_v8  ;;  %v15135_v12 = vcombine.high %v1508_v3, %v1704_v4 }
 0x314   :  { %v4631_v24 = vpop.f32.mrf.mxu1  ;;  %v4672_v25 = vpop.f32.mrf.mxu0  ;;  %v3754_v17 = vand.u32 %v15128_v5, %v16375_v26  ;;  %v3760_v18 = vand.u32 %v15130_v6, %v16375_v26 }
 0x315   :  { %v13029_v27 = vrot.slane %v13021_v21, %v16096_v42  ;;  %v13036_v28 = vrot.slane %v13022_v22, %v16096_v42  ;;  %v3775_v24 = vand.u32 %v15135_v12, %v16375_v26  ;;  %v1509_v25 = vld [vmem:[%s18736_s3 + $0x1e0] sm:$0xff] }
 0x316   :  { %v4632_v31 = vpop.f32.mrf.mxu1  ;;  %v4673_v32 = vpop.f32.mrf.mxu0 }
 0x317   :  { %v13037_v56 = vcombine.low %v13029_v27, %v13036_v28  ;;  %v1705_v27 = vld [vmem:[%s18736_s3 + $0x800] sm:$0x77]  ;;  %v1706_v31 = vld [vmem:[%s18736_s3 + $0x808] sm:$0x77]  ;;  %v15132_v32 = vcombine.low %v1507_v62, %v1703_v63 }
 0x318   :  { %v4709_v37 = vpop.f32.mrf.mxu1  ;;  %v4750_v38 = vpop.f32.mrf.mxu0  ;;  %15458 = vmatmul.mubr.msk.bf16.vlgmr.msra.gmra.mxu1 %vm3409_vm9, %v16422_v19  ;;  %15459 = vmatmul.mubr.msk.bf16.vlgmr.msra.gmra.mxu0 %vm3409_vm9, %v16422_v19  ;;  %v15137_v35 = vcombine.high %v1509_v25, %v1705_v27 }
 0x319   :  { %14785 = vst [vmem:[#allocation2] sm:$0xff] %v13037_v56  ;;  %6740 = vmatpush1.bf16.msra.mxu1 %v3730_v29  ;;  %6781 = vmatpush1.bf16.msra.mxu0 %v3736_v30  ;;  %v1510_v30 = vld [vmem:[%s18736_s3 + $0x1e8] sm:$0xff]  ;;  %v15134_v56 = vcombine.low %v1508_v3, %v1704_v4 }
 0x31a   :  { %v4711_v44 = vpop.f32.mrf.mxu1  ;;  %v4752_v45 = vpop.f32.mrf.mxu0  ;;  %6757 = vmatprep.mubr.bf16.mxu1 %v15948_v2  ;;  %6798 = vmatprep.mubr.bf16.mxu0 %v15948_v2  ;;  %v3781_v49 = vand.u32 %v15137_v35, %v16375_v26 }
 0x31b   :  { %v13038_v47 = vcombine.low %v4709_v37, %v4711_v44  ;;  %v13039_v48 = vcombine.low %v4750_v38, %v4752_v45  ;;  %6821 = vmatprep.subr.bf16.mxu1 %v3745_v33  ;;  %6862 = vmatprep.subr.bf16.mxu0 %v3751_v34  ;;  %v15139_v38 = vcombine.high %v1510_v30, %v1706_v31 }
 0x31c   :  { %v4713_v50 = vpop.f32.mrf.mxu1  ;;  %v4754_v51 = vpop.f32.mrf.mxu0  ;;  %v3766_v44 = vand.u32 %v15132_v32, %v16375_v26  ;;  %v3772_v45 = vand.u32 %v15134_v56, %v16375_v26 }
 0x31d   :  { %v13046_v52 = vrot.slane %v13038_v47, %v16096_v42  ;;  %v13053_v53 = vrot.slane %v13039_v48, %v16096_v42  ;;  %v3787_v50 = vand.u32 %v15139_v38, %v16375_v26  ;;  %v1511_v51 = vld [vmem:[%s18736_s3 + $0x1f0] sm:$0xff] }
 0x31e   :  { %v4714_v57 = vpop.f32.mrf.mxu1  ;;  %v4755_v58 = vpop.f32.mrf.mxu0 }
 0x31f   :  { %v13054_v59 = vcombine.low %v13046_v52, %v13053_v53  ;;  %v1707_v52 = vld [vmem:[%s18736_s3 + $0x810] sm:$0x77]  ;;  %v1708_v57 = vld [vmem:[%s18736_s3 + $0x818] sm:$0x77]  ;;  %v15136_v58 = vcombine.low %v1509_v25, %v1705_v27 }
 0x320   :  { %v4791_v0 = vpop.f32.mrf.mxu1  ;;  %v4832_v1 = vpop.f32.mrf.mxu0  ;;  %15460 = vmatmul.mubr.msk.bf16.vlgmr.msra.gmra.mxu1 %vm3409_vm9, %v16422_v19  ;;  %15461 = vmatmul.mubr.msk.bf16.vlgmr.msra.gmra.mxu0 %vm3409_vm9, %v16422_v19  ;;  %v15141_v62 = vcombine.high %v1511_v51, %v1707_v52 }
 0x321   :  { %14786 = vst [vmem:[#allocation2 + $0x8] sm:$0xff] %v13054_v59  ;;  %6822 = vmatpush1.bf16.msra.mxu1 %v3742_v54  ;;  %6863 = vmatpush1.bf16.msra.mxu0 %v3748_v55  ;;  %v1512_v55 = vld [vmem:[%s18736_s3 + $0x1f8] sm:$0xff]  ;;  %v15138_v59 = vcombine.low %v1510_v30, %v1706_v31 }
 0x322   :  { %v4793_v7 = vpop.f32.mrf.mxu1  ;;  %v4834_v8 = vpop.f32.mrf.mxu0  ;;  %6839 = vmatprep.mubr.bf16.mxu1 %v15948_v2  ;;  %6880 = vmatprep.mubr.bf16.mxu0 %v15948_v2  ;;  %v3793_v12 = vand.u32 %v15141_v62, %v16375_v26 }
 0x323   :  { %v13055_v10 = vcombine.low %v4791_v0, %v4793_v7  ;;  %v13056_v11 = vcombine.low %v4832_v1, %v4834_v8  ;;  %6903 = vmatprep.subr.bf16.mxu1 %v3757_v60  ;;  %6944 = vmatprep.subr.bf16.mxu0 %v3763_v61  ;;  %v15143_v1 = vcombine.high %v1512_v55, %v1708_v57 }
 0x324   :  { %v4795_v13 = vpop.f32.mrf.mxu1  ;;  %v4836_v14 = vpop.f32.mrf.mxu0  ;;  %v3778_v7 = vand.u32 %v15136_v58, %v16375_v26  ;;  %v3784_v8 = vand.u32 %v15138_v59, %v16375_v26 }
 0x325   :  { %v13063_v15 = vrot.slane %v13055_v10, %v16096_v42  ;;  %v13070_v16 = vrot.slane %v13056_v11, %v16096_v42  ;;  %v3799_v13 = vand.u32 %v15143_v1, %v16375_v26  ;;  %v1513_v14 = vld [vmem:[%s18736_s3 + $0x200] sm:$0xff] }
 0x326   :  { %v4796_v20 = vpop.f32.mrf.mxu1  ;;  %v4837_v21 = vpop.f32.mrf.mxu0 }
 0x327   :  { %v13071_v22 = vcombine.low %v13063_v15, %v13070_v16  ;;  %v1709_v15 = vld [vmem:[%s18736_s3 + $0x820] sm:$0x77]  ;;  %v1710_v20 = vld [vmem:[%s18736_s3 + $0x828] sm:$0x77]  ;;  %v15140_v21 = vcombine.low %v1511_v51, %v1707_v52 }
 0x328   :  { %v4873_v28 = vpop.f32.mrf.mxu1  ;;  %v4914_v29 = vpop.f32.mrf.mxu0  ;;  %15462 = vmatmul.mubr.msk.bf16.vlgmr.msra.gmra.mxu1 %vm3409_vm9, %v16422_v19  ;;  %15463 = vmatmul.mubr.msk.bf16.vlgmr.msra.gmra.mxu0 %vm3409_vm9, %v16422_v19  ;;  %v15145_v25 = vcombine.high %v1513_v14, %v1709_v15 }
 0x329   :  { %14787 = vst [vmem:[#allocation2 + $0x10] sm:$0xff] %v13071_v22  ;;  %6904 = vmatpush1.bf16.msra.mxu1 %v3754_v17  ;;  %6945 = vmatpush1.bf16.msra.mxu0 %v3760_v18  ;;  %v1514_v18 = vld [vmem:[%s18736_s3 + $0x208] sm:$0xff]  ;;  %v15142_v22 = vcombine.low %v1512_v55, %v1708_v57 }
 0x32a   :  { %v4875_v33 = vpop.f32.mrf.mxu1  ;;  %v4916_v34 = vpop.f32.mrf.mxu0  ;;  %6921 = vmatprep.mubr.bf16.mxu1 %v15948_v2  ;;  %6962 = vmatprep.mubr.bf16.mxu0 %v15948_v2  ;;  %v3805_v38 = vand.u32 %v15145_v25, %v16375_v26 }
 0x32b   :  { %v13072_v36 = vcombine.low %v4873_v28, %v4875_v33  ;;  %v13073_v37 = vcombine.low %v4914_v29, %v4916_v34  ;;  %6985 = vmatprep.subr.bf16.mxu1 %v3769_v23  ;;  %7026 = vmatprep.subr.bf16.mxu0 %v3775_v24  ;;  %v15147_v29 = vcombine.high %v1514_v18, %v1710_v20 }
 0x32c   :  { %v4877_v39 = vpop.f32.mrf.mxu1  ;;  %v4918_v40 = vpop.f32.mrf.mxu0  ;;  %v3790_v33 = vand.u32 %v15140_v21, %v16375_v26  ;;  %v3796_v34 = vand.u32 %v15142_v22, %v16375_v26 }
 0x32d   :  { %v13080_v41 = vrot.slane %v13072_v36, %v16096_v42  ;;  %v13087_v43 = vrot.slane %v13073_v37, %v16096_v42  ;;  %v3811_v39 = vand.u32 %v15147_v29, %v16375_v26  ;;  %v1515_v40 = vld [vmem:[%s18736_s3 + $0x210] sm:$0xff] }
 0x32e   :  { %v4878_v46 = vpop.f32.mrf.mxu1  ;;  %v4919_v47 = vpop.f32.mrf.mxu0 }
 0x32f   :  { %v13088_v48 = vcombine.low %v13080_v41, %v13087_v43  ;;  %v1711_v41 = vld [vmem:[%s18736_s3 + $0x830] sm:$0x77]  ;;  %v1712_v46 = vld [vmem:[%s18736_s3 + $0x838] sm:$0x77]  ;;  %v15144_v47 = vcombine.low %v1513_v14, %v1709_v15 }
 0x330   :  { %v4955_v53 = vpop.f32.mrf.mxu1  ;;  %v4996_v54 = vpop.f32.mrf.mxu0  ;;  %15464 = vmatmul.mubr.msk.bf16.vlgmr.msra.gmra.mxu1 %vm3409_vm9, %v16422_v19  ;;  %15465 = vmatmul.mubr.msk.bf16.vlgmr.msra.gmra.mxu0 %vm3409_vm9, %v16422_v19  ;;  %v15149_v51 = vcombine.high %v1515_v40, %v1711_v41 }
 0x331   :  { %14788 = vst [vmem:[#allocation2 + $0x18] sm:$0xff] %v13088_v48  ;;  %6986 = vmatpush1.bf16.msra.mxu1 %v3766_v44  ;;  %7027 = vmatpush1.bf16.msra.mxu0 %v3772_v45  ;;  %v1516_v45 = vld [vmem:[%s18736_s3 + $0x218] sm:$0xff]  ;;  %v15146_v48 = vcombine.low %v1514_v18, %v1710_v20 }
 0x332   :  { %v4957_v60 = vpop.f32.mrf.mxu1  ;;  %v4998_v61 = vpop.f32.mrf.mxu0  ;;  %7003 = vmatprep.mubr.bf16.mxu1 %v15948_v2  ;;  %7044 = vmatprep.mubr.bf16.mxu0 %v15948_v2  ;;  %v3817_v1 = vand.u32 %v15149_v51, %v16375_v26 }
 0x333   :  { %v13089_v63 = vcombine.low %v4955_v53, %v4957_v60  ;;  %v13090_v0 = vcombine.low %v4996_v54, %v4998_v61  ;;  %7067 = vmatprep.subr.bf16.mxu1 %v3781_v49  ;;  %7108 = vmatprep.subr.bf16.mxu0 %v3787_v50  ;;  %v15151_v54 = vcombine.high %v1516_v45, %v1712_v46 }
 0x334   :  { %v4959_v3 = vpop.f32.mrf.mxu1  ;;  %v5000_v4 = vpop.f32.mrf.mxu0  ;;  %v3802_v60 = vand.u32 %v15144_v47, %v16375_v26  ;;  %v3808_v61 = vand.u32 %v15146_v48, %v16375_v26 }
 0x335   :  { %v13097_v5 = vrot.slane %v13089_v63, %v16096_v42  ;;  %v13104_v6 = vrot.slane %v13090_v0, %v16096_v42  ;;  %v3823_v3 = vand.u32 %v15151_v54, %v16375_v26  ;;  %v1517_v4 = vld [vmem:[%s18736_s3 + $0x220] sm:$0xff] }
 0x336   :  { %v4960_v9 = vpop.f32.mrf.mxu1  ;;  %v5001_v10 = vpop.f32.mrf.mxu0 }
 0x337   :  { %v13105_v11 = vcombine.low %v13097_v5, %v13104_v6  ;;  %v1713_v5 = vld [vmem:[%s18736_s3 + $0x840] sm:$0x77]  ;;  %v1714_v9 = vld [vmem:[%s18736_s3 + $0x848] sm:$0x77]  ;;  %v15148_v10 = vcombine.low %v1515_v40, %v1711_v41 }
 0x338   :  { %v5037_v16 = vpop.f32.mrf.mxu1  ;;  %v5078_v17 = vpop.f32.mrf.mxu0  ;;  %15466 = vmatmul.mubr.msk.bf16.vlgmr.msra.gmra.mxu1 %vm3409_vm9, %v16422_v19  ;;  %15467 = vmatmul.mubr.msk.bf16.vlgmr.msra.gmra.mxu0 %vm3409_vm9, %v16422_v19  ;;  %v15153_v14 = vcombine.high %v1517_v4, %v1713_v5 }
 0x339   :  { %14789 = vst [vmem:[#allocation2 + $0x20] sm:$0xff] %v13105_v11  ;;  %7068 = vmatpush1.bf16.msra.mxu1 %v3778_v7  ;;  %7109 = vmatpush1.bf16.msra.mxu0 %v3784_v8  ;;  %v1518_v8 = vld [vmem:[%s18736_s3 + $0x228] sm:$0xff]  ;;  %v15150_v11 = vcombine.low %v1516_v45, %v1712_v46 }
 0x33a   :  { %v5039_v23 = vpop.f32.mrf.mxu1  ;;  %v5080_v24 = vpop.f32.mrf.mxu0  ;;  %7085 = vmatprep.mubr.bf16.mxu1 %v15948_v2  ;;  %7126 = vmatprep.mubr.bf16.mxu0 %v15948_v2  ;;  %v3829_v29 = vand.u32 %v15153_v14, %v16375_v26 }
 0x33b   :  { %v13106_v27 = vcombine.low %v5037_v16, %v5039_v23  ;;  %v13107_v28 = vcombine.low %v5078_v17, %v5080_v24  ;;  %7149 = vmatprep.subr.bf16.mxu1 %v3793_v12  ;;  %7190 = vmatprep.subr.bf16.mxu0 %v3799_v13  ;;  %v15155_v17 = vcombine.high %v1518_v8, %v1714_v9 }
 0x33c   :  { %v5041_v30 = vpop.f32.mrf.mxu1  ;;  %v5082_v31 = vpop.f32.mrf.mxu0  ;;  %v3814_v23 = vand.u32 %v15148_v10, %v16375_v26  ;;  %v3820_v24 = vand.u32 %v15150_v11, %v16375_v26 }
 0x33d   :  { %v13114_v32 = vrot.slane %v13106_v27, %v16096_v42  ;;  %v13121_v56 = vrot.slane %v13107_v28, %v16096_v42  ;;  %v3835_v30 = vand.u32 %v15155_v17, %v16375_v26  ;;  %v1519_v31 = vld [vmem:[%s18736_s3 + $0x230] sm:$0xff] }
 0x33e   :  { %v5042_v35 = vpop.f32.mrf.mxu1  ;;  %v5083_v36 = vpop.f32.mrf.mxu0 }
 0x33f   :  { %v13122_v37 = vcombine.low %v13114_v32, %v13121_v56  ;;  %v1715_v32 = vld [vmem:[%s18736_s3 + $0x850] sm:$0x77]  ;;  %v1716_v35 = vld [vmem:[%s18736_s3 + $0x858] sm:$0x77]  ;;  %v15152_v36 = vcombine.low %v1517_v4, %v1713_v5 }
 0x340   :  { %v5119_v43 = vpop.f32.mrf.mxu1  ;;  %v5160_v44 = vpop.f32.mrf.mxu0  ;;  %15468 = vmatmul.mubr.msk.bf16.vlgmr.msra.gmra.mxu1 %vm3409_vm9, %v16422_v19  ;;  %15469 = vmatmul.mubr.msk.bf16.vlgmr.msra.gmra.mxu0 %vm3409_vm9, %v16422_v19  ;;  %v15157_v40 = vcombine.high %v1519_v31, %v1715_v32 }
 0x341   :  { %14790 = vst [vmem:[#allocation2 + $0x28] sm:$0xff] %v13122_v37  ;;  %7150 = vmatpush1.bf16.msra.mxu1 %v3790_v33  ;;  %7191 = vmatpush1.bf16.msra.mxu0 %v3796_v34  ;;  %v1520_v34 = vld [vmem:[%s18736_s3 + $0x238] sm:$0xff]  ;;  %v15154_v37 = vcombine.low %v1518_v8, %v1714_v9 }
 0x342   :  { %v5121_v49 = vpop.f32.mrf.mxu1  ;;  %v5162_v50 = vpop.f32.mrf.mxu0  ;;  %7167 = vmatprep.mubr.bf16.mxu1 %v15948_v2  ;;  %7208 = vmatprep.mubr.bf16.mxu0 %v15948_v2  ;;  %v3841_v54 = vand.u32 %v15157_v40, %v16375_v26 }
 0x343   :  { %v13123_v52 = vcombine.low %v5119_v43, %v5121_v49  ;;  %v13124_v53 = vcombine.low %v5160_v44, %v5162_v50  ;;  %7231 = vmatprep.subr.bf16.mxu1 %v3805_v38  ;;  %7272 = vmatprep.subr.bf16.mxu0 %v3811_v39  ;;  %v15159_v44 = vcombine.high %v1520_v34, %v1716_v35 }
 0x344   :  { %v5123_v55 = vpop.f32.mrf.mxu1  ;;  %v5164_v57 = vpop.f32.mrf.mxu0  ;;  %v3826_v49 = vand.u32 %v15152_v36, %v16375_v26  ;;  %v3832_v50 = vand.u32 %v15154_v37, %v16375_v26 }
 0x345   :  { %v13131_v58 = vrot.slane %v13123_v52, %v16096_v42  ;;  %v13138_v59 = vrot.slane %v13124_v53, %v16096_v42  ;;  %v3847_v55 = vand.u32 %v15159_v44, %v16375_v26  ;;  %v1521_v57 = vld [vmem:[%s18736_s3 + $0x240] sm:$0xff] }
 0x346   :  { %v5124_v62 = vpop.f32.mrf.mxu1  ;;  %v5165_v63 = vpop.f32.mrf.mxu0 }
 0x347   :  { %v13139_v0 = vcombine.low %v13131_v58, %v13138_v59  ;;  %v1717_v58 = vld [vmem:[%s18736_s3 + $0x860] sm:$0x77]  ;;  %v1718_v62 = vld [vmem:[%s18736_s3 + $0x868] sm:$0x77]  ;;  %v15156_v63 = vcombine.low %v1519_v31, %v1715_v32 }
 0x348   :  { %v5201_v6 = vpop.f32.mrf.mxu1  ;;  %v5242_v7 = vpop.f32.mrf.mxu0  ;;  %15470 = vmatmul.mubr.msk.bf16.vlgmr.msra.gmra.mxu1 %vm3409_vm9, %v16422_v19  ;;  %15471 = vmatmul.mubr.msk.bf16.vlgmr.msra.gmra.mxu0 %vm3409_vm9, %v16422_v19  ;;  %v15161_v4 = vcombine.high %v1521_v57, %v1717_v58 }
 0x349   :  { %14791 = vst [vmem:[#allocation2 + $0x30] sm:$0xff] %v13139_v0  ;;  %7232 = vmatpush1.bf16.msra.mxu1 %v3802_v60  ;;  %7273 = vmatpush1.bf16.msra.mxu0 %v3808_v61  ;;  %v1522_v61 = vld [vmem:[%s18736_s3 + $0x248] sm:$0xff]  ;;  %v15158_v0 = vcombine.low %v1520_v34, %v1716_v35 }
 0x34a   :  { %v5203_v12 = vpop.f32.mrf.mxu1  ;;  %v5244_v13 = vpop.f32.mrf.mxu0  ;;  %7249 = vmatprep.mubr.bf16.mxu1 %v15948_v2  ;;  %7290 = vmatprep.mubr.bf16.mxu0 %v15948_v2  ;;  %v3853_v17 = vand.u32 %v15161_v4, %v16375_v26 }
 0x34b   :  { %v13140_v15 = vcombine.low %v5201_v6, %v5203_v12  ;;  %v13141_v16 = vcombine.low %v5242_v7, %v5244_v13  ;;  %7313 = vmatprep.subr.bf16.mxu1 %v3817_v1  ;;  %7354 = vmatprep.subr.bf16.mxu0 %v3823_v3  ;;  %v15163_v7 = vcombine.high %v1522_v61, %v1718_v62 }
 0x34c   :  { %v5205_v18 = vpop.f32.mrf.mxu1  ;;  %v5246_v20 = vpop.f32.mrf.mxu0  ;;  %v3838_v12 = vand.u32 %v15156_v63, %v16375_v26  ;;  %v3844_v13 = vand.u32 %v15158_v0, %v16375_v26 }
 0x34d   :  { %v13148_v21 = vrot.slane %v13140_v15, %v16096_v42  ;;  %v13155_v22 = vrot.slane %v13141_v16, %v16096_v42  ;;  %v3859_v18 = vand.u32 %v15163_v7, %v16375_v26  ;;  %v1523_v20 = vld [vmem:[%s18736_s3 + $0x250] sm:$0xff] }
 0x34e   :  { %v5206_v25 = vpop.f32.mrf.mxu1  ;;  %v5247_v27 = vpop.f32.mrf.mxu0 }
 0x34f   :  { %v13156_v28 = vcombine.low %v13148_v21, %v13155_v22  ;;  %v1719_v21 = vld [vmem:[%s18736_s3 + $0x870] sm:$0x77]  ;;  %v1720_v25 = vld [vmem:[%s18736_s3 + $0x878] sm:$0x77]  ;;  %v15160_v27 = vcombine.low %v1521_v57, %v1717_v58 }
 0x350   :  { %v5283_v56 = vpop.f32.mrf.mxu1  ;;  %v5324_v33 = vpop.f32.mrf.mxu0  ;;  %15472 = vmatmul.mubr.msk.bf16.vlgmr.msra.gmra.mxu1 %vm3409_vm9, %v16422_v19  ;;  %15473 = vmatmul.mubr.msk.bf16.vlgmr.msra.gmra.mxu0 %vm3409_vm9, %v16422_v19  ;;  %v15165_v31 = vcombine.high %v1523_v20, %v1719_v21 }
 0x351   :  { %14792 = vst [vmem:[#allocation2 + $0x38] sm:$0xff] %v13156_v28  ;;  %7314 = vmatpush1.bf16.msra.mxu1 %v3814_v23  ;;  %7355 = vmatpush1.bf16.msra.mxu0 %v3820_v24  ;;  %v1524_v24 = vld [vmem:[%s18736_s3 + $0x258] sm:$0xff]  ;;  %v15162_v28 = vcombine.low %v1522_v61, %v1718_v62 }
 0x352   :  { %v5285_v38 = vpop.f32.mrf.mxu1  ;;  %v5326_v39 = vpop.f32.mrf.mxu0  ;;  %7331 = vmatprep.mubr.bf16.mxu1 %v15948_v2  ;;  %7372 = vmatprep.mubr.bf16.mxu0 %v15948_v2  ;;  %v3865_v44 = vand.u32 %v15165_v31, %v16375_v26 }
 0x353   :  { %v13157_v41 = vcombine.low %v5283_v56, %v5285_v38  ;;  %v13158_v43 = vcombine.low %v5324_v33, %v5326_v39  ;;  %7395 = vmatprep.subr.bf16.mxu1 %v3829_v29  ;;  %7436 = vmatprep.subr.bf16.mxu0 %v3835_v30  ;;  %v15167_v33 = vcombine.high %v1524_v24, %v1720_v25 }
 0x354   :  { %v5287_v45 = vpop.f32.mrf.mxu1  ;;  %v5328_v46 = vpop.f32.mrf.mxu0  ;;  %v3850_v38 = vand.u32 %v15160_v27, %v16375_v26  ;;  %v3856_v39 = vand.u32 %v15162_v28, %v16375_v26 }
 0x355   :  { %v13165_v47 = vrot.slane %v13157_v41, %v16096_v42  ;;  %v13172_v48 = vrot.slane %v13158_v43, %v16096_v42  ;;  %v3871_v45 = vand.u32 %v15167_v33, %v16375_v26  ;;  %v1525_v46 = vld [vmem:[%s18736_s3 + $0x260] sm:$0xff] }
 0x356   :  { %v5288_v51 = vpop.f32.mrf.mxu1  ;;  %v5329_v52 = vpop.f32.mrf.mxu0 }
 0x357   :  { %v13173_v53 = vcombine.low %v13165_v47, %v13172_v48  ;;  %v1721_v47 = vld [vmem:[%s18736_s3 + $0x880] sm:$0x77]  ;;  %v1722_v51 = vld [vmem:[%s18736_s3 + $0x888] sm:$0x77]  ;;  %v15164_v52 = vcombine.low %v1523_v20, %v1719_v21 }
 0x358   :  { %v5365_v59 = vpop.f32.mrf.mxu1  ;;  %v5406_v60 = vpop.f32.mrf.mxu0  ;;  %15474 = vmatmul.mubr.msk.bf16.vlgmr.msra.gmra.mxu1 %vm3409_vm9, %v16422_v19  ;;  %15475 = vmatmul.mubr.msk.bf16.vlgmr.msra.gmra.mxu0 %vm3409_vm9, %v16422_v19  ;;  %v15169_v57 = vcombine.high %v1525_v46, %v1721_v47 }
 0x359   :  { %14793 = vst [vmem:[#allocation2 + $0x40] sm:$0xff] %v13173_v53  ;;  %7396 = vmatpush1.bf16.msra.mxu1 %v3826_v49  ;;  %7437 = vmatpush1.bf16.msra.mxu0 %v3832_v50  ;;  %v1526_v50 = vld [vmem:[%s18736_s3 + $0x268] sm:$0xff]  ;;  %v15166_v53 = vcombine.low %v1524_v24, %v1720_v25 }
 0x35a   :  { %v5367_v1 = vpop.f32.mrf.mxu1  ;;  %v5408_v3 = vpop.f32.mrf.mxu0  ;;  %7413 = vmatprep.mubr.bf16.mxu1 %v15948_v2  ;;  %7454 = vmatprep.mubr.bf16.mxu0 %v15948_v2  ;;  %v3877_v7 = vand.u32 %v15169_v57, %v16375_v26 }
 0x35b   :  { %v13174_v5 = vcombine.low %v5365_v59, %v5367_v1  ;;  %v13175_v6 = vcombine.low %v5406_v60, %v5408_v3  ;;  %7477 = vmatprep.subr.bf16.mxu1 %v3841_v54  ;;  %7518 = vmatprep.subr.bf16.mxu0 %v3847_v55  ;;  %v15171_v60 = vcombine.high %v1526_v50, %v1722_v51 }
 0x35c   :  { %v5369_v8 = vpop.f32.mrf.mxu1  ;;  %v5410_v9 = vpop.f32.mrf.mxu0  ;;  %v3862_v1 = vand.u32 %v15164_v52, %v16375_v26  ;;  %v3868_v3 = vand.u32 %v15166_v53, %v16375_v26 }
 0x35d   :  { %v13182_v10 = vrot.slane %v13174_v5, %v16096_v42  ;;  %v13189_v11 = vrot.slane %v13175_v6, %v16096_v42  ;;  %v3883_v8 = vand.u32 %v15171_v60, %v16375_v26  ;;  %v1527_v9 = vld [vmem:[%s18736_s3 + $0x270] sm:$0xff] }
 0x35e   :  { %v5370_v14 = vpop.f32.mrf.mxu1  ;;  %v5411_v15 = vpop.f32.mrf.mxu0 }
 0x35f   :  { %v13190_v16 = vcombine.low %v13182_v10, %v13189_v11  ;;  %v1723_v10 = vld [vmem:[%s18736_s3 + $0x890] sm:$0x77]  ;;  %v1724_v14 = vld [vmem:[%s18736_s3 + $0x898] sm:$0x77]  ;;  %v15168_v15 = vcombine.low %v1525_v46, %v1721_v47 }
 0x360   :  { %v5447_v22 = vpop.f32.mrf.mxu1  ;;  %v5488_v23 = vpop.f32.mrf.mxu0  ;;  %15476 = vmatmul.mubr.msk.bf16.vlgmr.msra.gmra.mxu1 %vm3409_vm9, %v16422_v19  ;;  %15477 = vmatmul.mubr.msk.bf16.vlgmr.msra.gmra.mxu0 %vm3409_vm9, %v16422_v19  ;;  %v15173_v20 = vcombine.high %v1527_v9, %v1723_v10 }
 0x361   :  { %14794 = vst [vmem:[#allocation2 + $0x48] sm:$0xff] %v13190_v16  ;;  %7478 = vmatpush1.bf16.msra.mxu1 %v3838_v12  ;;  %7519 = vmatpush1.bf16.msra.mxu0 %v3844_v13  ;;  %v1528_v13 = vld [vmem:[%s18736_s3 + $0x278] sm:$0xff]  ;;  %v15170_v16 = vcombine.low %v1526_v50, %v1722_v51 }
 0x362   :  { %v5449_v29 = vpop.f32.mrf.mxu1  ;;  %v5490_v30 = vpop.f32.mrf.mxu0  ;;  %7495 = vmatprep.mubr.bf16.mxu1 %v15948_v2  ;;  %7536 = vmatprep.mubr.bf16.mxu0 %v15948_v2  ;;  %v3889_v33 = vand.u32 %v15173_v20, %v16375_v26 }
 0x363   :  { %v13191_v32 = vcombine.low %v5447_v22, %v5449_v29  ;;  %v13192_v56 = vcombine.low %v5488_v23, %v5490_v30  ;;  %7559 = vmatprep.subr.bf16.mxu1 %v3853_v17  ;;  %7600 = vmatprep.subr.bf16.mxu0 %v3859_v18  ;;  %v15175_v23 = vcombine.high %v1528_v13, %v1724_v14 }
 0x364   :  { %v5451_v34 = vpop.f32.mrf.mxu1  ;;  %v5492_v35 = vpop.f32.mrf.mxu0  ;;  %v3874_v29 = vand.u32 %v15168_v15, %v16375_v26  ;;  %v3880_v30 = vand.u32 %v15170_v16, %v16375_v26 }
 0x365   :  { %v13199_v36 = vrot.slane %v13191_v32, %v16096_v42  ;;  %v13206_v37 = vrot.slane %v13192_v56, %v16096_v42  ;;  %v3895_v34 = vand.u32 %v15175_v23, %v16375_v26  ;;  %v1529_v35 = vld [vmem:[%s18736_s3 + $0x280] sm:$0xff] }
 0x366   :  { %v5452_v40 = vpop.f32.mrf.mxu1  ;;  %v5493_v41 = vpop.f32.mrf.mxu0 }
 0x367   :  { %v13207_v43 = vcombine.low %v13199_v36, %v13206_v37  ;;  %v1725_v36 = vld [vmem:[%s18736_s3 + $0x8a0] sm:$0x77]  ;;  %v1726_v40 = vld [vmem:[%s18736_s3 + $0x8a8] sm:$0x77]  ;;  %v15172_v41 = vcombine.low %v1527_v9, %v1723_v10 }
 0x368   :  { %v5529_v48 = vpop.f32.mrf.mxu1  ;;  %v5570_v49 = vpop.f32.mrf.mxu0  ;;  %15478 = vmatmul.mubr.msk.bf16.vlgmr.msra.gmra.mxu1 %vm3409_vm9, %v16422_v19  ;;  %15479 = vmatmul.mubr.msk.bf16.vlgmr.msra.gmra.mxu0 %vm3409_vm9, %v16422_v19  ;;  %v15177_v46 = vcombine.high %v1529_v35, %v1725_v36 }
 0x369   :  { %14795 = vst [vmem:[#allocation2 + $0x50] sm:$0xff] %v13207_v43  ;;  %7560 = vmatpush1.bf16.msra.mxu1 %v3850_v38  ;;  %7601 = vmatpush1.bf16.msra.mxu0 %v3856_v39  ;;  %v1530_v39 = vld [vmem:[%s18736_s3 + $0x288] sm:$0xff]  ;;  %v15174_v43 = vcombine.low %v1528_v13, %v1724_v14 }
 0x36a   :  { %v5531_v54 = vpop.f32.mrf.mxu1  ;;  %v5572_v55 = vpop.f32.mrf.mxu0  ;;  %7577 = vmatprep.mubr.bf16.mxu1 %v15948_v2  ;;  %7618 = vmatprep.mubr.bf16.mxu0 %v15948_v2  ;;  %v3901_v60 = vand.u32 %v15177_v46, %v16375_v26 }
 0x36b   :  { %v13208_v58 = vcombine.low %v5529_v48, %v5531_v54  ;;  %v13209_v59 = vcombine.low %v5570_v49, %v5572_v55  ;;  %7641 = vmatprep.subr.bf16.mxu1 %v3865_v44  ;;  %7682 = vmatprep.subr.bf16.mxu0 %v3871_v45  ;;  %v15179_v49 = vcombine.high %v1530_v39, %v1726_v40 }
 0x36c   :  { %v5533_v61 = vpop.f32.mrf.mxu1  ;;  %v5574_v62 = vpop.f32.mrf.mxu0  ;;  %v3886_v54 = vand.u32 %v15172_v41, %v16375_v26  ;;  %v3892_v55 = vand.u32 %v15174_v43, %v16375_v26 }
 0x36d   :  { %v13216_v63 = vrot.slane %v13208_v58, %v16096_v42  ;;  %v13223_v0 = vrot.slane %v13209_v59, %v16096_v42  ;;  %v3907_v61 = vand.u32 %v15179_v49, %v16375_v26  ;;  %v1531_v62 = vld [vmem:[%s18736_s3 + $0x290] sm:$0xff] }
 0x36e   :  { %v5534_v4 = vpop.f32.mrf.mxu1  ;;  %v5575_v5 = vpop.f32.mrf.mxu0 }
 0x36f   :  { %v13224_v6 = vcombine.low %v13216_v63, %v13223_v0  ;;  %v1727_v63 = vld [vmem:[%s18736_s3 + $0x8b0] sm:$0x77]  ;;  %v1728_v4 = vld [vmem:[%s18736_s3 + $0x8b8] sm:$0x77]  ;;  %v15176_v5 = vcombine.low %v1529_v35, %v1725_v36 }
 0x370   :  { %v5611_v11 = vpop.f32.mrf.mxu1  ;;  %v5652_v12 = vpop.f32.mrf.mxu0  ;;  %15480 = vmatmul.mubr.msk.bf16.vlgmr.msra.gmra.mxu1 %vm3409_vm9, %v16422_v19  ;;  %15481 = vmatmul.mubr.msk.bf16.vlgmr.msra.gmra.mxu0 %vm3409_vm9, %v16422_v19  ;;  %v15181_v9 = vcombine.high %v1531_v62, %v1727_v63 }
 0x371   :  { %14796 = vst [vmem:[#allocation2 + $0x58] sm:$0xff] %v13224_v6  ;;  %7642 = vmatpush1.bf16.msra.mxu1 %v3862_v1  ;;  %7683 = vmatpush1.bf16.msra.mxu0 %v3868_v3  ;;  %v1532_v3 = vld [vmem:[%s18736_s3 + $0x298] sm:$0xff]  ;;  %v15178_v6 = vcombine.low %v1530_v39, %v1726_v40 }
 0x372   :  { %v5613_v17 = vpop.f32.mrf.mxu1  ;;  %v5654_v18 = vpop.f32.mrf.mxu0  ;;  %7659 = vmatprep.mubr.bf16.mxu1 %v15948_v2  ;;  %7700 = vmatprep.mubr.bf16.mxu0 %v15948_v2  ;;  %v3913_v23 = vand.u32 %v15181_v9, %v16375_v26 }
 0x373   :  { %v13225_v21 = vcombine.low %v5611_v11, %v5613_v17  ;;  %v13226_v22 = vcombine.low %v5652_v12, %v5654_v18  ;;  %7723 = vmatprep.subr.bf16.mxu1 %v3877_v7  ;;  %7764 = vmatprep.subr.bf16.mxu0 %v3883_v8  ;;  %v15183_v12 = vcombine.high %v1532_v3, %v1728_v4 }
 0x374   :  { %v5615_v24 = vpop.f32.mrf.mxu1  ;;  %v5656_v25 = vpop.f32.mrf.mxu0  ;;  %v3898_v17 = vand.u32 %v15176_v5, %v16375_v26  ;;  %v3904_v18 = vand.u32 %v15178_v6, %v16375_v26 }
 0x375   :  { %v13233_v27 = vrot.slane %v13225_v21, %v16096_v42  ;;  %v13240_v28 = vrot.slane %v13226_v22, %v16096_v42  ;;  %v3919_v24 = vand.u32 %v15183_v12, %v16375_v26  ;;  %v1533_v25 = vld [vmem:[%s18736_s3 + $0x2a0] sm:$0xff] }
 0x376   :  { %v5616_v31 = vpop.f32.mrf.mxu1  ;;  %v5657_v32 = vpop.f32.mrf.mxu0 }
 0x377   :  { %v13241_v56 = vcombine.low %v13233_v27, %v13240_v28  ;;  %v1729_v27 = vld [vmem:[%s18736_s3 + $0x8c0] sm:$0x77]  ;;  %v1730_v31 = vld [vmem:[%s18736_s3 + $0x8c8] sm:$0x77]  ;;  %v15180_v32 = vcombine.low %v1531_v62, %v1727_v63 }
 0x378   :  { %v5693_v37 = vpop.f32.mrf.mxu1  ;;  %v5734_v38 = vpop.f32.mrf.mxu0  ;;  %15482 = vmatmul.mubr.msk.bf16.vlgmr.msra.gmra.mxu1 %vm3409_vm9, %v16422_v19  ;;  %15483 = vmatmul.mubr.msk.bf16.vlgmr.msra.gmra.mxu0 %vm3409_vm9, %v16422_v19  ;;  %v15185_v35 = vcombine.high %v1533_v25, %v1729_v27 }
 0x379   :  { %14797 = vst [vmem:[#allocation2 + $0x60] sm:$0xff] %v13241_v56  ;;  %7724 = vmatpush1.bf16.msra.mxu1 %v3874_v29  ;;  %7765 = vmatpush1.bf16.msra.mxu0 %v3880_v30  ;;  %v1534_v30 = vld [vmem:[%s18736_s3 + $0x2a8] sm:$0xff]  ;;  %v15182_v56 = vcombine.low %v1532_v3, %v1728_v4 }
 0x37a   :  { %v5695_v44 = vpop.f32.mrf.mxu1  ;;  %v5736_v45 = vpop.f32.mrf.mxu0  ;;  %7741 = vmatprep.mubr.bf16.mxu1 %v15948_v2  ;;  %7782 = vmatprep.mubr.bf16.mxu0 %v15948_v2  ;;  %v3925_v49 = vand.u32 %v15185_v35, %v16375_v26 }
 0x37b   :  { %v13242_v47 = vcombine.low %v5693_v37, %v5695_v44  ;;  %v13243_v48 = vcombine.low %v5734_v38, %v5736_v45  ;;  %7805 = vmatprep.subr.bf16.mxu1 %v3889_v33  ;;  %7846 = vmatprep.subr.bf16.mxu0 %v3895_v34  ;;  %v15187_v38 = vcombine.high %v1534_v30, %v1730_v31 }
 0x37c   :  { %v5697_v50 = vpop.f32.mrf.mxu1  ;;  %v5738_v51 = vpop.f32.mrf.mxu0  ;;  %v3910_v44 = vand.u32 %v15180_v32, %v16375_v26  ;;  %v3916_v45 = vand.u32 %v15182_v56, %v16375_v26 }
 0x37d   :  { %v13250_v52 = vrot.slane %v13242_v47, %v16096_v42  ;;  %v13257_v53 = vrot.slane %v13243_v48, %v16096_v42  ;;  %v3931_v50 = vand.u32 %v15187_v38, %v16375_v26  ;;  %v1535_v51 = vld [vmem:[%s18736_s3 + $0x2b0] sm:$0xff] }
 0x37e   :  { %v5698_v57 = vpop.f32.mrf.mxu1  ;;  %v5739_v58 = vpop.f32.mrf.mxu0 }
 0x37f   :  { %v13258_v59 = vcombine.low %v13250_v52, %v13257_v53  ;;  %v1731_v52 = vld [vmem:[%s18736_s3 + $0x8d0] sm:$0x77]  ;;  %v1732_v57 = vld [vmem:[%s18736_s3 + $0x8d8] sm:$0x77]  ;;  %v15184_v58 = vcombine.low %v1533_v25, %v1729_v27 }
 0x380   :  { %v5775_v0 = vpop.f32.mrf.mxu1  ;;  %v5816_v1 = vpop.f32.mrf.mxu0  ;;  %15484 = vmatmul.mubr.msk.bf16.vlgmr.msra.gmra.mxu1 %vm3409_vm9, %v16422_v19  ;;  %15485 = vmatmul.mubr.msk.bf16.vlgmr.msra.gmra.mxu0 %vm3409_vm9, %v16422_v19  ;;  %v15189_v62 = vcombine.high %v1535_v51, %v1731_v52 }
 0x381   :  { %14798 = vst [vmem:[#allocation2 + $0x68] sm:$0xff] %v13258_v59  ;;  %7806 = vmatpush1.bf16.msra.mxu1 %v3886_v54  ;;  %7847 = vmatpush1.bf16.msra.mxu0 %v3892_v55  ;;  %v1536_v55 = vld [vmem:[%s18736_s3 + $0x2b8] sm:$0xff]  ;;  %v15186_v59 = vcombine.low %v1534_v30, %v1730_v31 }
 0x382   :  { %v5777_v7 = vpop.f32.mrf.mxu1  ;;  %v5818_v8 = vpop.f32.mrf.mxu0  ;;  %7823 = vmatprep.mubr.bf16.mxu1 %v15948_v2  ;;  %7864 = vmatprep.mubr.bf16.mxu0 %v15948_v2  ;;  %v3937_v12 = vand.u32 %v15189_v62, %v16375_v26 }
 0x383   :  { %v13259_v10 = vcombine.low %v5775_v0, %v5777_v7  ;;  %v13260_v11 = vcombine.low %v5816_v1, %v5818_v8  ;;  %7887 = vmatprep.subr.bf16.mxu1 %v3901_v60  ;;  %7928 = vmatprep.subr.bf16.mxu0 %v3907_v61  ;;  %v15191_v1 = vcombine.high %v1536_v55, %v1732_v57 }
 0x384   :  { %v5779_v13 = vpop.f32.mrf.mxu1  ;;  %v5820_v14 = vpop.f32.mrf.mxu0  ;;  %v3922_v7 = vand.u32 %v15184_v58, %v16375_v26  ;;  %v3928_v8 = vand.u32 %v15186_v59, %v16375_v26 }
 0x385   :  { %v13267_v15 = vrot.slane %v13259_v10, %v16096_v42  ;;  %v13274_v16 = vrot.slane %v13260_v11, %v16096_v42  ;;  %v3943_v13 = vand.u32 %v15191_v1, %v16375_v26  ;;  %v1537_v14 = vld [vmem:[%s18736_s3 + $0x2c0] sm:$0xff] }
 0x386   :  { %v5780_v20 = vpop.f32.mrf.mxu1  ;;  %v5821_v21 = vpop.f32.mrf.mxu0 }
 0x387   :  { %v13275_v22 = vcombine.low %v13267_v15, %v13274_v16  ;;  %v1733_v15 = vld [vmem:[%s18736_s3 + $0x8e0] sm:$0x77]  ;;  %v1734_v20 = vld [vmem:[%s18736_s3 + $0x8e8] sm:$0x77]  ;;  %v15188_v21 = vcombine.low %v1535_v51, %v1731_v52 }
 0x388   :  { %v5857_v28 = vpop.f32.mrf.mxu1  ;;  %v5898_v29 = vpop.f32.mrf.mxu0  ;;  %15486 = vmatmul.mubr.msk.bf16.vlgmr.msra.gmra.mxu1 %vm3409_vm9, %v16422_v19  ;;  %15487 = vmatmul.mubr.msk.bf16.vlgmr.msra.gmra.mxu0 %vm3409_vm9, %v16422_v19  ;;  %v15193_v25 = vcombine.high %v1537_v14, %v1733_v15 }
 0x389   :  { %14799 = vst [vmem:[#allocation2 + $0x70] sm:$0xff] %v13275_v22  ;;  %7888 = vmatpush1.bf16.msra.mxu1 %v3898_v17  ;;  %7929 = vmatpush1.bf16.msra.mxu0 %v3904_v18  ;;  %v1538_v18 = vld [vmem:[%s18736_s3 + $0x2c8] sm:$0xff]  ;;  %v15190_v22 = vcombine.low %v1536_v55, %v1732_v57 }
 0x38a   :  { %v5859_v33 = vpop.f32.mrf.mxu1  ;;  %v5900_v34 = vpop.f32.mrf.mxu0  ;;  %7905 = vmatprep.mubr.bf16.mxu1 %v15948_v2  ;;  %7946 = vmatprep.mubr.bf16.mxu0 %v15948_v2  ;;  %v3949_v38 = vand.u32 %v15193_v25, %v16375_v26 }
 0x38b   :  { %v13276_v36 = vcombine.low %v5857_v28, %v5859_v33  ;;  %v13277_v37 = vcombine.low %v5898_v29, %v5900_v34  ;;  %7969 = vmatprep.subr.bf16.mxu1 %v3913_v23  ;;  %8010 = vmatprep.subr.bf16.mxu0 %v3919_v24  ;;  %v15195_v29 = vcombine.high %v1538_v18, %v1734_v20 }
 0x38c   :  { %v5861_v39 = vpop.f32.mrf.mxu1  ;;  %v5902_v40 = vpop.f32.mrf.mxu0  ;;  %v3934_v33 = vand.u32 %v15188_v21, %v16375_v26  ;;  %v3940_v34 = vand.u32 %v15190_v22, %v16375_v26 }
 0x38d   :  { %v13284_v41 = vrot.slane %v13276_v36, %v16096_v42  ;;  %v13291_v43 = vrot.slane %v13277_v37, %v16096_v42  ;;  %v3955_v39 = vand.u32 %v15195_v29, %v16375_v26  ;;  %v1539_v40 = vld [vmem:[%s18736_s3 + $0x2d0] sm:$0xff] }
 0x38e   :  { %v5862_v46 = vpop.f32.mrf.mxu1  ;;  %v5903_v47 = vpop.f32.mrf.mxu0 }
 0x38f   :  { %v13292_v48 = vcombine.low %v13284_v41, %v13291_v43  ;;  %v1735_v41 = vld [vmem:[%s18736_s3 + $0x8f0] sm:$0x77]  ;;  %v1736_v46 = vld [vmem:[%s18736_s3 + $0x8f8] sm:$0x77]  ;;  %v15192_v47 = vcombine.low %v1537_v14, %v1733_v15 }
 0x390   :  { %v5939_v53 = vpop.f32.mrf.mxu1  ;;  %v5980_v54 = vpop.f32.mrf.mxu0  ;;  %15488 = vmatmul.mubr.msk.bf16.vlgmr.msra.gmra.mxu1 %vm3409_vm9, %v16422_v19  ;;  %15489 = vmatmul.mubr.msk.bf16.vlgmr.msra.gmra.mxu0 %vm3409_vm9, %v16422_v19  ;;  %v15197_v51 = vcombine.high %v1539_v40, %v1735_v41 }
 0x391   :  { %14800 = vst [vmem:[#allocation2 + $0x78] sm:$0xff] %v13292_v48  ;;  %7970 = vmatpush1.bf16.msra.mxu1 %v3910_v44  ;;  %8011 = vmatpush1.bf16.msra.mxu0 %v3916_v45  ;;  %v1540_v45 = vld [vmem:[%s18736_s3 + $0x2d8] sm:$0xff]  ;;  %v15194_v48 = vcombine.low %v1538_v18, %v1734_v20 }
 0x392   :  { %v5941_v60 = vpop.f32.mrf.mxu1  ;;  %v5982_v61 = vpop.f32.mrf.mxu0  ;;  %7987 = vmatprep.mubr.bf16.mxu1 %v15948_v2  ;;  %8028 = vmatprep.mubr.bf16.mxu0 %v15948_v2  ;;  %v3961_v1 = vand.u32 %v15197_v51, %v16375_v26 }
 0x393   :  { %v13293_v63 = vcombine.low %v5939_v53, %v5941_v60  ;;  %v13294_v0 = vcombine.low %v5980_v54, %v5982_v61  ;;  %8051 = vmatprep.subr.bf16.mxu1 %v3925_v49  ;;  %8092 = vmatprep.subr.bf16.mxu0 %v3931_v50  ;;  %v15199_v54 = vcombine.high %v1540_v45, %v1736_v46 }
 0x394   :  { %v5943_v3 = vpop.f32.mrf.mxu1  ;;  %v5984_v4 = vpop.f32.mrf.mxu0  ;;  %v3946_v60 = vand.u32 %v15192_v47, %v16375_v26  ;;  %v3952_v61 = vand.u32 %v15194_v48, %v16375_v26 }
 0x395   :  { %v13301_v5 = vrot.slane %v13293_v63, %v16096_v42  ;;  %v13308_v6 = vrot.slane %v13294_v0, %v16096_v42  ;;  %v3967_v3 = vand.u32 %v15199_v54, %v16375_v26  ;;  %v1541_v4 = vld [vmem:[%s18736_s3 + $0x2e0] sm:$0xff] }
 0x396   :  { %v5944_v9 = vpop.f32.mrf.mxu1  ;;  %v5985_v10 = vpop.f32.mrf.mxu0 }
 0x397   :  { %v13309_v11 = vcombine.low %v13301_v5, %v13308_v6  ;;  %v1737_v5 = vld [vmem:[%s18736_s3 + $0x900] sm:$0x77]  ;;  %v1738_v9 = vld [vmem:[%s18736_s3 + $0x908] sm:$0x77]  ;;  %v15196_v10 = vcombine.low %v1539_v40, %v1735_v41 }
 0x398   :  { %v6021_v16 = vpop.f32.mrf.mxu1  ;;  %v6062_v17 = vpop.f32.mrf.mxu0  ;;  %15490 = vmatmul.mubr.msk.bf16.vlgmr.msra.gmra.mxu1 %vm3409_vm9, %v16422_v19  ;;  %15491 = vmatmul.mubr.msk.bf16.vlgmr.msra.gmra.mxu0 %vm3409_vm9, %v16422_v19  ;;  %v15201_v14 = vcombine.high %v1541_v4, %v1737_v5 }
 0x399   :  { %14801 = vst [vmem:[#allocation2 + $0x80] sm:$0xff] %v13309_v11  ;;  %8052 = vmatpush1.bf16.msra.mxu1 %v3922_v7  ;;  %8093 = vmatpush1.bf16.msra.mxu0 %v3928_v8  ;;  %v1542_v8 = vld [vmem:[%s18736_s3 + $0x2e8] sm:$0xff]  ;;  %v15198_v11 = vcombine.low %v1540_v45, %v1736_v46 }
 0x39a   :  { %v6023_v23 = vpop.f32.mrf.mxu1  ;;  %v6064_v24 = vpop.f32.mrf.mxu0  ;;  %8069 = vmatprep.mubr.bf16.mxu1 %v15948_v2  ;;  %8110 = vmatprep.mubr.bf16.mxu0 %v15948_v2  ;;  %v3973_v29 = vand.u32 %v15201_v14, %v16375_v26 }
 0x39b   :  { %v13310_v27 = vcombine.low %v6021_v16, %v6023_v23  ;;  %v13311_v28 = vcombine.low %v6062_v17, %v6064_v24  ;;  %8133 = vmatprep.subr.bf16.mxu1 %v3937_v12  ;;  %8174 = vmatprep.subr.bf16.mxu0 %v3943_v13  ;;  %v15203_v17 = vcombine.high %v1542_v8, %v1738_v9 }
 0x39c   :  { %v6025_v30 = vpop.f32.mrf.mxu1  ;;  %v6066_v31 = vpop.f32.mrf.mxu0  ;;  %v3958_v23 = vand.u32 %v15196_v10, %v16375_v26  ;;  %v3964_v24 = vand.u32 %v15198_v11, %v16375_v26 }
 0x39d   :  { %v13318_v32 = vrot.slane %v13310_v27, %v16096_v42  ;;  %v13325_v56 = vrot.slane %v13311_v28, %v16096_v42  ;;  %v3979_v30 = vand.u32 %v15203_v17, %v16375_v26  ;;  %v1543_v31 = vld [vmem:[%s18736_s3 + $0x2f0] sm:$0xff] }
 0x39e   :  { %v6026_v35 = vpop.f32.mrf.mxu1  ;;  %v6067_v36 = vpop.f32.mrf.mxu0 }
 0x39f   :  { %v13326_v37 = vcombine.low %v13318_v32, %v13325_v56  ;;  %v1739_v32 = vld [vmem:[%s18736_s3 + $0x910] sm:$0x77]  ;;  %v1740_v35 = vld [vmem:[%s18736_s3 + $0x918] sm:$0x77]  ;;  %v15200_v36 = vcombine.low %v1541_v4, %v1737_v5 }
 0x3a0   :  { %v6103_v43 = vpop.f32.mrf.mxu1  ;;  %v6144_v44 = vpop.f32.mrf.mxu0  ;;  %15492 = vmatmul.mubr.msk.bf16.vlgmr.msra.gmra.mxu1 %vm3409_vm9, %v16422_v19  ;;  %15493 = vmatmul.mubr.msk.bf16.vlgmr.msra.gmra.mxu0 %vm3409_vm9, %v16422_v19  ;;  %v15205_v40 = vcombine.high %v1543_v31, %v1739_v32 }
 0x3a1   :  { %14802 = vst [vmem:[#allocation2 + $0x88] sm:$0xff] %v13326_v37  ;;  %8134 = vmatpush1.bf16.msra.mxu1 %v3934_v33  ;;  %8175 = vmatpush1.bf16.msra.mxu0 %v3940_v34  ;;  %v1544_v34 = vld [vmem:[%s18736_s3 + $0x2f8] sm:$0xff]  ;;  %v15202_v37 = vcombine.low %v1542_v8, %v1738_v9 }
 0x3a2   :  { %v6105_v49 = vpop.f32.mrf.mxu1  ;;  %v6146_v50 = vpop.f32.mrf.mxu0  ;;  %8151 = vmatprep.mubr.bf16.mxu1 %v15948_v2  ;;  %8192 = vmatprep.mubr.bf16.mxu0 %v15948_v2  ;;  %v3985_v54 = vand.u32 %v15205_v40, %v16375_v26 }
 0x3a3   :  { %v13327_v52 = vcombine.low %v6103_v43, %v6105_v49  ;;  %v13328_v53 = vcombine.low %v6144_v44, %v6146_v50  ;;  %8215 = vmatprep.subr.bf16.mxu1 %v3949_v38  ;;  %8256 = vmatprep.subr.bf16.mxu0 %v3955_v39  ;;  %v15207_v44 = vcombine.high %v1544_v34, %v1740_v35 }
 0x3a4   :  { %v6107_v55 = vpop.f32.mrf.mxu1  ;;  %v6148_v57 = vpop.f32.mrf.mxu0  ;;  %v3970_v49 = vand.u32 %v15200_v36, %v16375_v26  ;;  %v3976_v50 = vand.u32 %v15202_v37, %v16375_v26 }
 0x3a5   :  { %v13335_v58 = vrot.slane %v13327_v52, %v16096_v42  ;;  %v13342_v59 = vrot.slane %v13328_v53, %v16096_v42  ;;  %v3991_v55 = vand.u32 %v15207_v44, %v16375_v26  ;;  %v1545_v57 = vld [vmem:[%s18736_s3 + $0x300] sm:$0xff] }
 0x3a6   :  { %v6108_v62 = vpop.f32.mrf.mxu1  ;;  %v6149_v63 = vpop.f32.mrf.mxu0 }
 0x3a7   :  { %v13343_v0 = vcombine.low %v13335_v58, %v13342_v59  ;;  %v1741_v58 = vld [vmem:[%s18736_s3 + $0x920] sm:$0x77]  ;;  %v1742_v62 = vld [vmem:[%s18736_s3 + $0x928] sm:$0x77]  ;;  %v15204_v63 = vcombine.low %v1543_v31, %v1739_v32 }
 0x3a8   :  { %v6185_v6 = vpop.f32.mrf.mxu1  ;;  %v6226_v7 = vpop.f32.mrf.mxu0  ;;  %15494 = vmatmul.mubr.msk.bf16.vlgmr.msra.gmra.mxu1 %vm3409_vm9, %v16422_v19  ;;  %15495 = vmatmul.mubr.msk.bf16.vlgmr.msra.gmra.mxu0 %vm3409_vm9, %v16422_v19  ;;  %v15209_v4 = vcombine.high %v1545_v57, %v1741_v58 }
 0x3a9   :  { %14803 = vst [vmem:[#allocation2 + $0x90] sm:$0xff] %v13343_v0  ;;  %8216 = vmatpush1.bf16.msra.mxu1 %v3946_v60  ;;  %8257 = vmatpush1.bf16.msra.mxu0 %v3952_v61  ;;  %v1546_v61 = vld [vmem:[%s18736_s3 + $0x308] sm:$0xff]  ;;  %v15206_v0 = vcombine.low %v1544_v34, %v1740_v35 }
 0x3aa   :  { %v6187_v12 = vpop.f32.mrf.mxu1  ;;  %v6228_v13 = vpop.f32.mrf.mxu0  ;;  %8233 = vmatprep.mubr.bf16.mxu1 %v15948_v2  ;;  %8274 = vmatprep.mubr.bf16.mxu0 %v15948_v2  ;;  %v3997_v17 = vand.u32 %v15209_v4, %v16375_v26 }
 0x3ab   :  { %v13344_v15 = vcombine.low %v6185_v6, %v6187_v12  ;;  %v13345_v16 = vcombine.low %v6226_v7, %v6228_v13  ;;  %8297 = vmatprep.subr.bf16.mxu1 %v3961_v1  ;;  %8338 = vmatprep.subr.bf16.mxu0 %v3967_v3  ;;  %v15211_v7 = vcombine.high %v1546_v61, %v1742_v62 }
 0x3ac   :  { %v6189_v18 = vpop.f32.mrf.mxu1  ;;  %v6230_v20 = vpop.f32.mrf.mxu0  ;;  %v3982_v12 = vand.u32 %v15204_v63, %v16375_v26  ;;  %v3988_v13 = vand.u32 %v15206_v0, %v16375_v26 }
 0x3ad   :  { %v13352_v21 = vrot.slane %v13344_v15, %v16096_v42  ;;  %v13359_v22 = vrot.slane %v13345_v16, %v16096_v42  ;;  %v4003_v18 = vand.u32 %v15211_v7, %v16375_v26  ;;  %v1547_v20 = vld [vmem:[%s18736_s3 + $0x310] sm:$0xff] }
 0x3ae   :  { %v6190_v25 = vpop.f32.mrf.mxu1  ;;  %v6231_v27 = vpop.f32.mrf.mxu0 }
 0x3af   :  { %v13360_v28 = vcombine.low %v13352_v21, %v13359_v22  ;;  %v1743_v21 = vld [vmem:[%s18736_s3 + $0x930] sm:$0x77]  ;;  %v1744_v25 = vld [vmem:[%s18736_s3 + $0x938] sm:$0x77]  ;;  %v15208_v27 = vcombine.low %v1545_v57, %v1741_v58 }
 0x3b0   :  { %v6267_v56 = vpop.f32.mrf.mxu1  ;;  %v6308_v33 = vpop.f32.mrf.mxu0  ;;  %15496 = vmatmul.mubr.msk.bf16.vlgmr.msra.gmra.mxu1 %vm3409_vm9, %v16422_v19  ;;  %15497 = vmatmul.mubr.msk.bf16.vlgmr.msra.gmra.mxu0 %vm3409_vm9, %v16422_v19  ;;  %v15213_v31 = vcombine.high %v1547_v20, %v1743_v21 }
 0x3b1   :  { %14804 = vst [vmem:[#allocation2 + $0x98] sm:$0xff] %v13360_v28  ;;  %8298 = vmatpush1.bf16.msra.mxu1 %v3958_v23  ;;  %8339 = vmatpush1.bf16.msra.mxu0 %v3964_v24  ;;  %v1548_v24 = vld [vmem:[%s18736_s3 + $0x318] sm:$0xff]  ;;  %v15210_v28 = vcombine.low %v1546_v61, %v1742_v62 }
 0x3b2   :  { %v6269_v38 = vpop.f32.mrf.mxu1  ;;  %v6310_v39 = vpop.f32.mrf.mxu0  ;;  %8315 = vmatprep.mubr.bf16.mxu1 %v15948_v2  ;;  %8356 = vmatprep.mubr.bf16.mxu0 %v15948_v2  ;;  %v4009_v44 = vand.u32 %v15213_v31, %v16375_v26 }
 0x3b3   :  { %v13361_v41 = vcombine.low %v6267_v56, %v6269_v38  ;;  %v13362_v43 = vcombine.low %v6308_v33, %v6310_v39  ;;  %8379 = vmatprep.subr.bf16.mxu1 %v3973_v29  ;;  %8420 = vmatprep.subr.bf16.mxu0 %v3979_v30  ;;  %v15215_v33 = vcombine.high %v1548_v24, %v1744_v25 }
 0x3b4   :  { %v6271_v45 = vpop.f32.mrf.mxu1  ;;  %v6312_v46 = vpop.f32.mrf.mxu0  ;;  %v3994_v38 = vand.u32 %v15208_v27, %v16375_v26  ;;  %v4000_v39 = vand.u32 %v15210_v28, %v16375_v26 }
 0x3b5   :  { %v13369_v47 = vrot.slane %v13361_v41, %v16096_v42  ;;  %v13376_v48 = vrot.slane %v13362_v43, %v16096_v42  ;;  %v4015_v45 = vand.u32 %v15215_v33, %v16375_v26  ;;  %v1549_v46 = vld [vmem:[%s18736_s3 + $0x320] sm:$0xff] }
 0x3b6   :  { %v6272_v51 = vpop.f32.mrf.mxu1  ;;  %v6313_v52 = vpop.f32.mrf.mxu0 }
 0x3b7   :  { %v13377_v53 = vcombine.low %v13369_v47, %v13376_v48  ;;  %v1745_v47 = vld [vmem:[%s18736_s3 + $0x940] sm:$0x77]  ;;  %v1746_v51 = vld [vmem:[%s18736_s3 + $0x948] sm:$0x77]  ;;  %v15212_v52 = vcombine.low %v1547_v20, %v1743_v21 }
 0x3b8   :  { %v6349_v59 = vpop.f32.mrf.mxu1  ;;  %v6390_v60 = vpop.f32.mrf.mxu0  ;;  %15498 = vmatmul.mubr.msk.bf16.vlgmr.msra.gmra.mxu1 %vm3409_vm9, %v16422_v19  ;;  %15499 = vmatmul.mubr.msk.bf16.vlgmr.msra.gmra.mxu0 %vm3409_vm9, %v16422_v19  ;;  %v15217_v57 = vcombine.high %v1549_v46, %v1745_v47 }
 0x3b9   :  { %14805 = vst [vmem:[#allocation2 + $0xa0] sm:$0xff] %v13377_v53  ;;  %8380 = vmatpush1.bf16.msra.mxu1 %v3970_v49  ;;  %8421 = vmatpush1.bf16.msra.mxu0 %v3976_v50  ;;  %v1550_v50 = vld [vmem:[%s18736_s3 + $0x328] sm:$0xff]  ;;  %v15214_v53 = vcombine.low %v1548_v24, %v1744_v25 }
 0x3ba   :  { %v6351_v1 = vpop.f32.mrf.mxu1  ;;  %v6392_v3 = vpop.f32.mrf.mxu0  ;;  %8397 = vmatprep.mubr.bf16.mxu1 %v15948_v2  ;;  %8438 = vmatprep.mubr.bf16.mxu0 %v15948_v2  ;;  %v4021_v7 = vand.u32 %v15217_v57, %v16375_v26 }
 0x3bb   :  { %v13378_v5 = vcombine.low %v6349_v59, %v6351_v1  ;;  %v13379_v6 = vcombine.low %v6390_v60, %v6392_v3  ;;  %8461 = vmatprep.subr.bf16.mxu1 %v3985_v54  ;;  %8502 = vmatprep.subr.bf16.mxu0 %v3991_v55  ;;  %v15219_v60 = vcombine.high %v1550_v50, %v1746_v51 }
 0x3bc   :  { %v6353_v8 = vpop.f32.mrf.mxu1  ;;  %v6394_v9 = vpop.f32.mrf.mxu0  ;;  %v4006_v1 = vand.u32 %v15212_v52, %v16375_v26  ;;  %v4012_v3 = vand.u32 %v15214_v53, %v16375_v26 }
 0x3bd   :  { %v13386_v10 = vrot.slane %v13378_v5, %v16096_v42  ;;  %v13393_v11 = vrot.slane %v13379_v6, %v16096_v42  ;;  %v4027_v8 = vand.u32 %v15219_v60, %v16375_v26  ;;  %v1551_v9 = vld [vmem:[%s18736_s3 + $0x330] sm:$0xff] }
 0x3be   :  { %v6354_v14 = vpop.f32.mrf.mxu1  ;;  %v6395_v15 = vpop.f32.mrf.mxu0 }
 0x3bf   :  { %v13394_v16 = vcombine.low %v13386_v10, %v13393_v11  ;;  %v1747_v10 = vld [vmem:[%s18736_s3 + $0x950] sm:$0x77]  ;;  %v1748_v14 = vld [vmem:[%s18736_s3 + $0x958] sm:$0x77]  ;;  %v15216_v15 = vcombine.low %v1549_v46, %v1745_v47 }
 0x3c0   :  { %v6431_v22 = vpop.f32.mrf.mxu1  ;;  %v6472_v23 = vpop.f32.mrf.mxu0  ;;  %15500 = vmatmul.mubr.msk.bf16.vlgmr.msra.gmra.mxu1 %vm3409_vm9, %v16422_v19  ;;  %15501 = vmatmul.mubr.msk.bf16.vlgmr.msra.gmra.mxu0 %vm3409_vm9, %v16422_v19  ;;  %v15221_v20 = vcombine.high %v1551_v9, %v1747_v10 }
 0x3c1   :  { %14806 = vst [vmem:[#allocation2 + $0xa8] sm:$0xff] %v13394_v16  ;;  %8462 = vmatpush1.bf16.msra.mxu1 %v3982_v12  ;;  %8503 = vmatpush1.bf16.msra.mxu0 %v3988_v13  ;;  %v1552_v13 = vld [vmem:[%s18736_s3 + $0x338] sm:$0xff]  ;;  %v15218_v16 = vcombine.low %v1550_v50, %v1746_v51 }
 0x3c2   :  { %v6433_v29 = vpop.f32.mrf.mxu1  ;;  %v6474_v30 = vpop.f32.mrf.mxu0  ;;  %8479 = vmatprep.mubr.bf16.mxu1 %v15948_v2  ;;  %8520 = vmatprep.mubr.bf16.mxu0 %v15948_v2  ;;  %v4033_v33 = vand.u32 %v15221_v20, %v16375_v26 }
 0x3c3   :  { %v13395_v32 = vcombine.low %v6431_v22, %v6433_v29  ;;  %v13396_v56 = vcombine.low %v6472_v23, %v6474_v30  ;;  %8543 = vmatprep.subr.bf16.mxu1 %v3997_v17  ;;  %8584 = vmatprep.subr.bf16.mxu0 %v4003_v18  ;;  %v15223_v23 = vcombine.high %v1552_v13, %v1748_v14 }
 0x3c4   :  { %v6435_v34 = vpop.f32.mrf.mxu1  ;;  %v6476_v35 = vpop.f32.mrf.mxu0  ;;  %v4018_v29 = vand.u32 %v15216_v15, %v16375_v26  ;;  %v4024_v30 = vand.u32 %v15218_v16, %v16375_v26 }
 0x3c5   :  { %v13403_v36 = vrot.slane %v13395_v32, %v16096_v42  ;;  %v13410_v37 = vrot.slane %v13396_v56, %v16096_v42  ;;  %v4039_v34 = vand.u32 %v15223_v23, %v16375_v26  ;;  %v1553_v35 = vld [vmem:[%s18736_s3 + $0x340] sm:$0xff] }
 0x3c6   :  { %v6436_v40 = vpop.f32.mrf.mxu1  ;;  %v6477_v41 = vpop.f32.mrf.mxu0 }
 0x3c7   :  { %v13411_v43 = vcombine.low %v13403_v36, %v13410_v37  ;;  %v1749_v36 = vld [vmem:[%s18736_s3 + $0x960] sm:$0x77]  ;;  %v1750_v40 = vld [vmem:[%s18736_s3 + $0x968] sm:$0x77]  ;;  %v15220_v41 = vcombine.low %v1551_v9, %v1747_v10 }
 0x3c8   :  { %v6513_v48 = vpop.f32.mrf.mxu1  ;;  %v6554_v49 = vpop.f32.mrf.mxu0  ;;  %15502 = vmatmul.mubr.msk.bf16.vlgmr.msra.gmra.mxu1 %vm3409_vm9, %v16422_v19  ;;  %15503 = vmatmul.mubr.msk.bf16.vlgmr.msra.gmra.mxu0 %vm3409_vm9, %v16422_v19  ;;  %v15225_v46 = vcombine.high %v1553_v35, %v1749_v36 }
 0x3c9   :  { %14807 = vst [vmem:[#allocation2 + $0xb0] sm:$0xff] %v13411_v43  ;;  %8544 = vmatpush1.bf16.msra.mxu1 %v3994_v38  ;;  %8585 = vmatpush1.bf16.msra.mxu0 %v4000_v39  ;;  %v1554_v39 = vld [vmem:[%s18736_s3 + $0x348] sm:$0xff]  ;;  %v15222_v43 = vcombine.low %v1552_v13, %v1748_v14 }
 0x3ca   :  { %v6515_v54 = vpop.f32.mrf.mxu1  ;;  %v6556_v55 = vpop.f32.mrf.mxu0  ;;  %8561 = vmatprep.mubr.bf16.mxu1 %v15948_v2  ;;  %8602 = vmatprep.mubr.bf16.mxu0 %v15948_v2  ;;  %v4045_v60 = vand.u32 %v15225_v46, %v16375_v26 }
 0x3cb   :  { %v13412_v58 = vcombine.low %v6513_v48, %v6515_v54  ;;  %v13413_v59 = vcombine.low %v6554_v49, %v6556_v55  ;;  %8625 = vmatprep.subr.bf16.mxu1 %v4009_v44  ;;  %8666 = vmatprep.subr.bf16.mxu0 %v4015_v45  ;;  %v15227_v49 = vcombine.high %v1554_v39, %v1750_v40 }
 0x3cc   :  { %v6517_v61 = vpop.f32.mrf.mxu1  ;;  %v6558_v62 = vpop.f32.mrf.mxu0  ;;  %v4030_v54 = vand.u32 %v15220_v41, %v16375_v26  ;;  %v4036_v55 = vand.u32 %v15222_v43, %v16375_v26 }
 0x3cd   :  { %v13420_v63 = vrot.slane %v13412_v58, %v16096_v42  ;;  %v13427_v0 = vrot.slane %v13413_v59, %v16096_v42  ;;  %v4051_v61 = vand.u32 %v15227_v49, %v16375_v26  ;;  %v1555_v62 = vld [vmem:[%s18736_s3 + $0x350] sm:$0xff] }
 0x3ce   :  { %v6518_v4 = vpop.f32.mrf.mxu1  ;;  %v6559_v5 = vpop.f32.mrf.mxu0 }
 0x3cf   :  { %v13428_v6 = vcombine.low %v13420_v63, %v13427_v0  ;;  %v1751_v63 = vld [vmem:[%s18736_s3 + $0x970] sm:$0x77]  ;;  %v1752_v4 = vld [vmem:[%s18736_s3 + $0x978] sm:$0x77]  ;;  %v15224_v5 = vcombine.low %v1553_v35, %v1749_v36 }
 0x3d0   :  { %v6595_v11 = vpop.f32.mrf.mxu1  ;;  %v6636_v12 = vpop.f32.mrf.mxu0  ;;  %15504 = vmatmul.mubr.msk.bf16.vlgmr.msra.gmra.mxu1 %vm3409_vm9, %v16422_v19  ;;  %15505 = vmatmul.mubr.msk.bf16.vlgmr.msra.gmra.mxu0 %vm3409_vm9, %v16422_v19  ;;  %v15229_v9 = vcombine.high %v1555_v62, %v1751_v63 }
 0x3d1   :  { %14808 = vst [vmem:[#allocation2 + $0xb8] sm:$0xff] %v13428_v6  ;;  %8626 = vmatpush1.bf16.msra.mxu1 %v4006_v1  ;;  %8667 = vmatpush1.bf16.msra.mxu0 %v4012_v3  ;;  %v1556_v3 = vld [vmem:[%s18736_s3 + $0x358] sm:$0xff]  ;;  %v15226_v6 = vcombine.low %v1554_v39, %v1750_v40 }
 0x3d2   :  { %v6597_v17 = vpop.f32.mrf.mxu1  ;;  %v6638_v18 = vpop.f32.mrf.mxu0  ;;  %8643 = vmatprep.mubr.bf16.mxu1 %v15948_v2  ;;  %8684 = vmatprep.mubr.bf16.mxu0 %v15948_v2  ;;  %v4057_v23 = vand.u32 %v15229_v9, %v16375_v26 }
 0x3d3   :  { %v13429_v21 = vcombine.low %v6595_v11, %v6597_v17  ;;  %v13430_v22 = vcombine.low %v6636_v12, %v6638_v18  ;;  %8707 = vmatprep.subr.bf16.mxu1 %v4021_v7  ;;  %8748 = vmatprep.subr.bf16.mxu0 %v4027_v8  ;;  %v15231_v12 = vcombine.high %v1556_v3, %v1752_v4 }
 0x3d4   :  { %v6599_v24 = vpop.f32.mrf.mxu1  ;;  %v6640_v25 = vpop.f32.mrf.mxu0  ;;  %v4042_v17 = vand.u32 %v15224_v5, %v16375_v26  ;;  %v4048_v18 = vand.u32 %v15226_v6, %v16375_v26 }
 0x3d5   :  { %v13437_v27 = vrot.slane %v13429_v21, %v16096_v42  ;;  %v13444_v28 = vrot.slane %v13430_v22, %v16096_v42  ;;  %v4063_v24 = vand.u32 %v15231_v12, %v16375_v26  ;;  %v1557_v25 = vld [vmem:[%s18736_s3 + $0x360] sm:$0xff] }
 0x3d6   :  { %v6600_v31 = vpop.f32.mrf.mxu1  ;;  %v6641_v32 = vpop.f32.mrf.mxu0 }
 0x3d7   :  { %v13445_v56 = vcombine.low %v13437_v27, %v13444_v28  ;;  %v1753_v27 = vld [vmem:[%s18736_s3 + $0x980] sm:$0x77]  ;;  %v1754_v31 = vld [vmem:[%s18736_s3 + $0x988] sm:$0x77]  ;;  %v15228_v32 = vcombine.low %v1555_v62, %v1751_v63 }
 0x3d8   :  { %v6677_v37 = vpop.f32.mrf.mxu1  ;;  %v6718_v38 = vpop.f32.mrf.mxu0  ;;  %15506 = vmatmul.mubr.msk.bf16.vlgmr.msra.gmra.mxu1 %vm3409_vm9, %v16422_v19  ;;  %15507 = vmatmul.mubr.msk.bf16.vlgmr.msra.gmra.mxu0 %vm3409_vm9, %v16422_v19  ;;  %v15233_v35 = vcombine.high %v1557_v25, %v1753_v27 }
 0x3d9   :  { %14809 = vst [vmem:[#allocation2 + $0xc0] sm:$0xff] %v13445_v56  ;;  %8708 = vmatpush1.bf16.msra.mxu1 %v4018_v29  ;;  %8749 = vmatpush1.bf16.msra.mxu0 %v4024_v30  ;;  %v1558_v30 = vld [vmem:[%s18736_s3 + $0x368] sm:$0xff]  ;;  %v15230_v56 = vcombine.low %v1556_v3, %v1752_v4 }
 0x3da   :  { %v6679_v44 = vpop.f32.mrf.mxu1  ;;  %v6720_v45 = vpop.f32.mrf.mxu0  ;;  %8725 = vmatprep.mubr.bf16.mxu1 %v15948_v2  ;;  %8766 = vmatprep.mubr.bf16.mxu0 %v15948_v2  ;;  %v4069_v49 = vand.u32 %v15233_v35, %v16375_v26 }
 0x3db   :  { %v13446_v47 = vcombine.low %v6677_v37, %v6679_v44  ;;  %v13447_v48 = vcombine.low %v6718_v38, %v6720_v45  ;;  %8789 = vmatprep.subr.bf16.mxu1 %v4033_v33  ;;  %8830 = vmatprep.subr.bf16.mxu0 %v4039_v34  ;;  %v15235_v38 = vcombine.high %v1558_v30, %v1754_v31 }
 0x3dc   :  { %v6681_v50 = vpop.f32.mrf.mxu1  ;;  %v6722_v51 = vpop.f32.mrf.mxu0  ;;  %v4054_v44 = vand.u32 %v15228_v32, %v16375_v26  ;;  %v4060_v45 = vand.u32 %v15230_v56, %v16375_v26 }
 0x3dd   :  { %v13454_v52 = vrot.slane %v13446_v47, %v16096_v42  ;;  %v13461_v53 = vrot.slane %v13447_v48, %v16096_v42  ;;  %v4075_v50 = vand.u32 %v15235_v38, %v16375_v26  ;;  %v1559_v51 = vld [vmem:[%s18736_s3 + $0x370] sm:$0xff] }
 0x3de   :  { %v6682_v57 = vpop.f32.mrf.mxu1  ;;  %v6723_v58 = vpop.f32.mrf.mxu0 }
 0x3df   :  { %v13462_v59 = vcombine.low %v13454_v52, %v13461_v53  ;;  %v1755_v52 = vld [vmem:[%s18736_s3 + $0x990] sm:$0x77]  ;;  %v1756_v57 = vld [vmem:[%s18736_s3 + $0x998] sm:$0x77]  ;;  %v15232_v58 = vcombine.low %v1557_v25, %v1753_v27 }
 0x3e0   :  { %v6759_v0 = vpop.f32.mrf.mxu1  ;;  %v6800_v1 = vpop.f32.mrf.mxu0  ;;  %15508 = vmatmul.mubr.msk.bf16.vlgmr.msra.gmra.mxu1 %vm3409_vm9, %v16422_v19  ;;  %15509 = vmatmul.mubr.msk.bf16.vlgmr.msra.gmra.mxu0 %vm3409_vm9, %v16422_v19  ;;  %v15237_v62 = vcombine.high %v1559_v51, %v1755_v52 }
 0x3e1   :  { %14810 = vst [vmem:[#allocation2 + $0xc8] sm:$0xff] %v13462_v59  ;;  %8790 = vmatpush1.bf16.msra.mxu1 %v4030_v54  ;;  %8831 = vmatpush1.bf16.msra.mxu0 %v4036_v55  ;;  %v1560_v55 = vld [vmem:[%s18736_s3 + $0x378] sm:$0xff]  ;;  %v15234_v59 = vcombine.low %v1558_v30, %v1754_v31 }
 0x3e2   :  { %v6761_v7 = vpop.f32.mrf.mxu1  ;;  %v6802_v8 = vpop.f32.mrf.mxu0  ;;  %8807 = vmatprep.mubr.bf16.mxu1 %v15948_v2  ;;  %8848 = vmatprep.mubr.bf16.mxu0 %v15948_v2  ;;  %v4081_v12 = vand.u32 %v15237_v62, %v16375_v26 }
 0x3e3   :  { %v13463_v10 = vcombine.low %v6759_v0, %v6761_v7  ;;  %v13464_v11 = vcombine.low %v6800_v1, %v6802_v8  ;;  %8871 = vmatprep.subr.bf16.mxu1 %v4045_v60  ;;  %8912 = vmatprep.subr.bf16.mxu0 %v4051_v61  ;;  %v15239_v1 = vcombine.high %v1560_v55, %v1756_v57 }
 0x3e4   :  { %v6763_v13 = vpop.f32.mrf.mxu1  ;;  %v6804_v14 = vpop.f32.mrf.mxu0  ;;  %v4066_v7 = vand.u32 %v15232_v58, %v16375_v26  ;;  %v4072_v8 = vand.u32 %v15234_v59, %v16375_v26 }
 0x3e5   :  { %v13471_v15 = vrot.slane %v13463_v10, %v16096_v42  ;;  %v13478_v16 = vrot.slane %v13464_v11, %v16096_v42  ;;  %v4087_v13 = vand.u32 %v15239_v1, %v16375_v26  ;;  %v1561_v14 = vld [vmem:[%s18736_s3 + $0x380] sm:$0xff] }
 0x3e6   :  { %v6764_v20 = vpop.f32.mrf.mxu1  ;;  %v6805_v21 = vpop.f32.mrf.mxu0 }
 0x3e7   :  { %v13479_v22 = vcombine.low %v13471_v15, %v13478_v16  ;;  %v1757_v15 = vld [vmem:[%s18736_s3 + $0x9a0] sm:$0x77]  ;;  %v1758_v20 = vld [vmem:[%s18736_s3 + $0x9a8] sm:$0x77]  ;;  %v15236_v21 = vcombine.low %v1559_v51, %v1755_v52 }
 0x3e8   :  { %v6841_v28 = vpop.f32.mrf.mxu1  ;;  %v6882_v29 = vpop.f32.mrf.mxu0  ;;  %15510 = vmatmul.mubr.msk.bf16.vlgmr.msra.gmra.mxu1 %vm3409_vm9, %v16422_v19  ;;  %15511 = vmatmul.mubr.msk.bf16.vlgmr.msra.gmra.mxu0 %vm3409_vm9, %v16422_v19  ;;  %v15241_v25 = vcombine.high %v1561_v14, %v1757_v15 }
 0x3e9   :  { %14811 = vst [vmem:[#allocation2 + $0xd0] sm:$0xff] %v13479_v22  ;;  %8872 = vmatpush1.bf16.msra.mxu1 %v4042_v17  ;;  %8913 = vmatpush1.bf16.msra.mxu0 %v4048_v18  ;;  %v1562_v18 = vld [vmem:[%s18736_s3 + $0x388] sm:$0xff]  ;;  %v15238_v22 = vcombine.low %v1560_v55, %v1756_v57 }
 0x3ea   :  { %v6843_v33 = vpop.f32.mrf.mxu1  ;;  %v6884_v34 = vpop.f32.mrf.mxu0  ;;  %8889 = vmatprep.mubr.bf16.mxu1 %v15948_v2  ;;  %8930 = vmatprep.mubr.bf16.mxu0 %v15948_v2  ;;  %v4093_v38 = vand.u32 %v15241_v25, %v16375_v26 }
 0x3eb   :  { %v13480_v36 = vcombine.low %v6841_v28, %v6843_v33  ;;  %v13481_v37 = vcombine.low %v6882_v29, %v6884_v34  ;;  %8953 = vmatprep.subr.bf16.mxu1 %v4057_v23  ;;  %8994 = vmatprep.subr.bf16.mxu0 %v4063_v24  ;;  %v15243_v29 = vcombine.high %v1562_v18, %v1758_v20 }
 0x3ec   :  { %v6845_v39 = vpop.f32.mrf.mxu1  ;;  %v6886_v40 = vpop.f32.mrf.mxu0  ;;  %v4078_v33 = vand.u32 %v15236_v21, %v16375_v26  ;;  %v4084_v34 = vand.u32 %v15238_v22, %v16375_v26 }
 0x3ed   :  { %v13488_v41 = vrot.slane %v13480_v36, %v16096_v42  ;;  %v13495_v43 = vrot.slane %v13481_v37, %v16096_v42  ;;  %v4099_v39 = vand.u32 %v15243_v29, %v16375_v26  ;;  %v1563_v40 = vld [vmem:[%s18736_s3 + $0x390] sm:$0xff] }
 0x3ee   :  { %v6846_v46 = vpop.f32.mrf.mxu1  ;;  %v6887_v47 = vpop.f32.mrf.mxu0 }
 0x3ef   :  { %v13496_v48 = vcombine.low %v13488_v41, %v13495_v43  ;;  %v1759_v41 = vld [vmem:[%s18736_s3 + $0x9b0] sm:$0x77]  ;;  %v1760_v46 = vld [vmem:[%s18736_s3 + $0x9b8] sm:$0x77]  ;;  %v15240_v47 = vcombine.low %v1561_v14, %v1757_v15 }
 0x3f0   :  { %v6923_v53 = vpop.f32.mrf.mxu1  ;;  %v6964_v54 = vpop.f32.mrf.mxu0  ;;  %15512 = vmatmul.mubr.msk.bf16.vlgmr.msra.gmra.mxu1 %vm3409_vm9, %v16422_v19  ;;  %15513 = vmatmul.mubr.msk.bf16.vlgmr.msra.gmra.mxu0 %vm3409_vm9, %v16422_v19  ;;  %v15245_v51 = vcombine.high %v1563_v40, %v1759_v41 }
 0x3f1   :  { %14812 = vst [vmem:[#allocation2 + $0xd8] sm:$0xff] %v13496_v48  ;;  %8954 = vmatpush1.bf16.msra.mxu1 %v4054_v44  ;;  %8995 = vmatpush1.bf16.msra.mxu0 %v4060_v45  ;;  %v1564_v45 = vld [vmem:[%s18736_s3 + $0x398] sm:$0xff]  ;;  %v15242_v48 = vcombine.low %v1562_v18, %v1758_v20 }
 0x3f2   :  { %v6925_v60 = vpop.f32.mrf.mxu1  ;;  %v6966_v61 = vpop.f32.mrf.mxu0  ;;  %8971 = vmatprep.mubr.bf16.mxu1 %v15948_v2  ;;  %9012 = vmatprep.mubr.bf16.mxu0 %v15948_v2  ;;  %v4105_v1 = vand.u32 %v15245_v51, %v16375_v26 }
 0x3f3   :  { %v13497_v63 = vcombine.low %v6923_v53, %v6925_v60  ;;  %v13498_v0 = vcombine.low %v6964_v54, %v6966_v61  ;;  %9035 = vmatprep.subr.bf16.mxu1 %v4069_v49  ;;  %9076 = vmatprep.subr.bf16.mxu0 %v4075_v50  ;;  %v15247_v54 = vcombine.high %v1564_v45, %v1760_v46 }
 0x3f4   :  { %v6927_v3 = vpop.f32.mrf.mxu1  ;;  %v6968_v4 = vpop.f32.mrf.mxu0  ;;  %v4090_v60 = vand.u32 %v15240_v47, %v16375_v26  ;;  %v4096_v61 = vand.u32 %v15242_v48, %v16375_v26 }
 0x3f5   :  { %v13505_v5 = vrot.slane %v13497_v63, %v16096_v42  ;;  %v13512_v6 = vrot.slane %v13498_v0, %v16096_v42  ;;  %v4111_v3 = vand.u32 %v15247_v54, %v16375_v26  ;;  %v1565_v4 = vld [vmem:[%s18736_s3 + $0x3a0] sm:$0xff] }
 0x3f6   :  { %v6928_v9 = vpop.f32.mrf.mxu1  ;;  %v6969_v10 = vpop.f32.mrf.mxu0 }
 0x3f7   :  { %v13513_v11 = vcombine.low %v13505_v5, %v13512_v6  ;;  %v1761_v5 = vld [vmem:[%s18736_s3 + $0x9c0] sm:$0x77]  ;;  %v1762_v9 = vld [vmem:[%s18736_s3 + $0x9c8] sm:$0x77]  ;;  %v15244_v10 = vcombine.low %v1563_v40, %v1759_v41 }
 0x3f8   :  { %v7005_v16 = vpop.f32.mrf.mxu1  ;;  %v7046_v17 = vpop.f32.mrf.mxu0  ;;  %15514 = vmatmul.mubr.msk.bf16.vlgmr.msra.gmra.mxu1 %vm3409_vm9, %v16422_v19  ;;  %15515 = vmatmul.mubr.msk.bf16.vlgmr.msra.gmra.mxu0 %vm3409_vm9, %v16422_v19  ;;  %v15249_v14 = vcombine.high %v1565_v4, %v1761_v5 }
 0x3f9   :  { %14813 = vst [vmem:[#allocation2 + $0xe0] sm:$0xff] %v13513_v11  ;;  %9036 = vmatpush1.bf16.msra.mxu1 %v4066_v7  ;;  %9077 = vmatpush1.bf16.msra.mxu0 %v4072_v8  ;;  %v1566_v8 = vld [vmem:[%s18736_s3 + $0x3a8] sm:$0xff]  ;;  %v15246_v11 = vcombine.low %v1564_v45, %v1760_v46 }
 0x3fa   :  { %v7007_v23 = vpop.f32.mrf.mxu1  ;;  %v7048_v24 = vpop.f32.mrf.mxu0  ;;  %9053 = vmatprep.mubr.bf16.mxu1 %v15948_v2  ;;  %9094 = vmatprep.mubr.bf16.mxu0 %v15948_v2  ;;  %v4117_v29 = vand.u32 %v15249_v14, %v16375_v26 }
 0x3fb   :  { %v13514_v27 = vcombine.low %v7005_v16, %v7007_v23  ;;  %v13515_v28 = vcombine.low %v7046_v17, %v7048_v24  ;;  %9117 = vmatprep.subr.bf16.mxu1 %v4081_v12  ;;  %9158 = vmatprep.subr.bf16.mxu0 %v4087_v13  ;;  %v15251_v17 = vcombine.high %v1566_v8, %v1762_v9 }
 0x3fc   :  { %v7009_v30 = vpop.f32.mrf.mxu1  ;;  %v7050_v31 = vpop.f32.mrf.mxu0  ;;  %v4102_v23 = vand.u32 %v15244_v10, %v16375_v26  ;;  %v4108_v24 = vand.u32 %v15246_v11, %v16375_v26 }
 0x3fd   :  { %v13522_v32 = vrot.slane %v13514_v27, %v16096_v42  ;;  %v13529_v56 = vrot.slane %v13515_v28, %v16096_v42  ;;  %v4123_v30 = vand.u32 %v15251_v17, %v16375_v26  ;;  %v1567_v31 = vld [vmem:[%s18736_s3 + $0x3b0] sm:$0xff] }
 0x3fe   :  { %v7010_v35 = vpop.f32.mrf.mxu1  ;;  %v7051_v36 = vpop.f32.mrf.mxu0 }
 0x3ff   :  { %v13530_v37 = vcombine.low %v13522_v32, %v13529_v56  ;;  %v1763_v32 = vld [vmem:[%s18736_s3 + $0x9d0] sm:$0x77]  ;;  %v1764_v35 = vld [vmem:[%s18736_s3 + $0x9d8] sm:$0x77]  ;;  %v15248_v36 = vcombine.low %v1565_v4, %v1761_v5 }
 0x400   :  { %v7087_v43 = vpop.f32.mrf.mxu1  ;;  %v7128_v44 = vpop.f32.mrf.mxu0  ;;  %15516 = vmatmul.mubr.msk.bf16.vlgmr.msra.gmra.mxu1 %vm3409_vm9, %v16422_v19  ;;  %15517 = vmatmul.mubr.msk.bf16.vlgmr.msra.gmra.mxu0 %vm3409_vm9, %v16422_v19  ;;  %v15253_v40 = vcombine.high %v1567_v31, %v1763_v32 }
 0x401   :  { %14814 = vst [vmem:[#allocation2 + $0xe8] sm:$0xff] %v13530_v37  ;;  %9118 = vmatpush1.bf16.msra.mxu1 %v4078_v33  ;;  %9159 = vmatpush1.bf16.msra.mxu0 %v4084_v34  ;;  %v1568_v34 = vld [vmem:[%s18736_s3 + $0x3b8] sm:$0xff]  ;;  %v15250_v37 = vcombine.low %v1566_v8, %v1762_v9 }
 0x402   :  { %v7089_v49 = vpop.f32.mrf.mxu1  ;;  %v7130_v50 = vpop.f32.mrf.mxu0  ;;  %9135 = vmatprep.mubr.bf16.mxu1 %v15948_v2  ;;  %9176 = vmatprep.mubr.bf16.mxu0 %v15948_v2  ;;  %v4129_v54 = vand.u32 %v15253_v40, %v16375_v26 }
 0x403   :  { %v13531_v52 = vcombine.low %v7087_v43, %v7089_v49  ;;  %v13532_v53 = vcombine.low %v7128_v44, %v7130_v50  ;;  %9199 = vmatprep.subr.bf16.mxu1 %v4093_v38  ;;  %9240 = vmatprep.subr.bf16.mxu0 %v4099_v39  ;;  %v15255_v44 = vcombine.high %v1568_v34, %v1764_v35 }
 0x404   :  { %v7091_v55 = vpop.f32.mrf.mxu1  ;;  %v7132_v57 = vpop.f32.mrf.mxu0  ;;  %v4114_v49 = vand.u32 %v15248_v36, %v16375_v26  ;;  %v4120_v50 = vand.u32 %v15250_v37, %v16375_v26 }
 0x405   :  { %v13539_v58 = vrot.slane %v13531_v52, %v16096_v42  ;;  %v13546_v59 = vrot.slane %v13532_v53, %v16096_v42  ;;  %v4135_v55 = vand.u32 %v15255_v44, %v16375_v26  ;;  %v1569_v57 = vld [vmem:[%s18736_s3 + $0x3c0] sm:$0xff] }
 0x406   :  { %v7092_v62 = vpop.f32.mrf.mxu1  ;;  %v7133_v63 = vpop.f32.mrf.mxu0 }
 0x407   :  { %v13547_v0 = vcombine.low %v13539_v58, %v13546_v59  ;;  %v1765_v58 = vld [vmem:[%s18736_s3 + $0x9e0] sm:$0x77]  ;;  %v1766_v62 = vld [vmem:[%s18736_s3 + $0x9e8] sm:$0x77]  ;;  %v15252_v63 = vcombine.low %v1567_v31, %v1763_v32 }
 0x408   :  { %v7169_v6 = vpop.f32.mrf.mxu1  ;;  %v7210_v7 = vpop.f32.mrf.mxu0  ;;  %15518 = vmatmul.mubr.msk.bf16.vlgmr.msra.gmra.mxu1 %vm3409_vm9, %v16422_v19  ;;  %15519 = vmatmul.mubr.msk.bf16.vlgmr.msra.gmra.mxu0 %vm3409_vm9, %v16422_v19  ;;  %v15257_v4 = vcombine.high %v1569_v57, %v1765_v58 }
 0x409   :  { %14815 = vst [vmem:[#allocation2 + $0xf0] sm:$0xff] %v13547_v0  ;;  %9200 = vmatpush1.bf16.msra.mxu1 %v4090_v60  ;;  %9241 = vmatpush1.bf16.msra.mxu0 %v4096_v61  ;;  %v1570_v61 = vld [vmem:[%s18736_s3 + $0x3c8] sm:$0xff]  ;;  %v15254_v0 = vcombine.low %v1568_v34, %v1764_v35 }
 0x40a   :  { %v7171_v12 = vpop.f32.mrf.mxu1  ;;  %v7212_v13 = vpop.f32.mrf.mxu0  ;;  %9217 = vmatprep.mubr.bf16.mxu1 %v15948_v2  ;;  %9258 = vmatprep.mubr.bf16.mxu0 %v15948_v2  ;;  %v4141_v17 = vand.u32 %v15257_v4, %v16375_v26 }
 0x40b   :  { %v13548_v15 = vcombine.low %v7169_v6, %v7171_v12  ;;  %v13549_v16 = vcombine.low %v7210_v7, %v7212_v13  ;;  %9281 = vmatprep.subr.bf16.mxu1 %v4105_v1  ;;  %9322 = vmatprep.subr.bf16.mxu0 %v4111_v3  ;;  %v15259_v7 = vcombine.high %v1570_v61, %v1766_v62 }
 0x40c   :  { %v7173_v18 = vpop.f32.mrf.mxu1  ;;  %v7214_v20 = vpop.f32.mrf.mxu0  ;;  %v4126_v12 = vand.u32 %v15252_v63, %v16375_v26  ;;  %v4132_v13 = vand.u32 %v15254_v0, %v16375_v26 }
 0x40d   :  { %v13556_v21 = vrot.slane %v13548_v15, %v16096_v42  ;;  %v13563_v22 = vrot.slane %v13549_v16, %v16096_v42  ;;  %v4147_v18 = vand.u32 %v15259_v7, %v16375_v26  ;;  %v1571_v20 = vld [vmem:[%s18736_s3 + $0x3d0] sm:$0xff] }
 0x40e   :  { %v7174_v25 = vpop.f32.mrf.mxu1  ;;  %v7215_v27 = vpop.f32.mrf.mxu0 }
 0x40f   :  { %v13564_v28 = vcombine.low %v13556_v21, %v13563_v22  ;;  %v1767_v21 = vld [vmem:[%s18736_s3 + $0x9f0] sm:$0x77]  ;;  %v1768_v25 = vld [vmem:[%s18736_s3 + $0x9f8] sm:$0x77]  ;;  %v15256_v27 = vcombine.low %v1569_v57, %v1765_v58 }
 0x410   :  { %v7251_v56 = vpop.f32.mrf.mxu1  ;;  %v7292_v33 = vpop.f32.mrf.mxu0  ;;  %15520 = vmatmul.mubr.msk.bf16.vlgmr.msra.gmra.mxu1 %vm3409_vm9, %v16422_v19  ;;  %15521 = vmatmul.mubr.msk.bf16.vlgmr.msra.gmra.mxu0 %vm3409_vm9, %v16422_v19  ;;  %v15261_v31 = vcombine.high %v1571_v20, %v1767_v21 }
 0x411   :  { %14816 = vst [vmem:[#allocation2 + $0xf8] sm:$0xff] %v13564_v28  ;;  %9282 = vmatpush1.bf16.msra.mxu1 %v4102_v23  ;;  %9323 = vmatpush1.bf16.msra.mxu0 %v4108_v24  ;;  %v1572_v24 = vld [vmem:[%s18736_s3 + $0x3d8] sm:$0xff]  ;;  %v15258_v28 = vcombine.low %v1570_v61, %v1766_v62 }
 0x412   :  { %v7253_v38 = vpop.f32.mrf.mxu1  ;;  %v7294_v39 = vpop.f32.mrf.mxu0  ;;  %9299 = vmatprep.mubr.bf16.mxu1 %v15948_v2  ;;  %9340 = vmatprep.mubr.bf16.mxu0 %v15948_v2  ;;  %v4153_v44 = vand.u32 %v15261_v31, %v16375_v26 }
 0x413   :  { %v13565_v41 = vcombine.low %v7251_v56, %v7253_v38  ;;  %v13566_v43 = vcombine.low %v7292_v33, %v7294_v39  ;;  %9363 = vmatprep.subr.bf16.mxu1 %v4117_v29  ;;  %9404 = vmatprep.subr.bf16.mxu0 %v4123_v30  ;;  %v15263_v33 = vcombine.high %v1572_v24, %v1768_v25 }
 0x414   :  { %v7255_v45 = vpop.f32.mrf.mxu1  ;;  %v7296_v46 = vpop.f32.mrf.mxu0  ;;  %v4138_v38 = vand.u32 %v15256_v27, %v16375_v26  ;;  %v4144_v39 = vand.u32 %v15258_v28, %v16375_v26 }
 0x415   :  { %v13573_v47 = vrot.slane %v13565_v41, %v16096_v42  ;;  %v13580_v48 = vrot.slane %v13566_v43, %v16096_v42  ;;  %v4159_v45 = vand.u32 %v15263_v33, %v16375_v26  ;;  %v1573_v46 = vld [vmem:[%s18736_s3 + $0x3e0] sm:$0xff] }
 0x416   :  { %v7256_v51 = vpop.f32.mrf.mxu1  ;;  %v7297_v52 = vpop.f32.mrf.mxu0 }
 0x417   :  { %v13581_v53 = vcombine.low %v13573_v47, %v13580_v48  ;;  %v1769_v47 = vld [vmem:[%s18736_s3 + $0xa00] sm:$0x77]  ;;  %v1770_v51 = vld [vmem:[%s18736_s3 + $0xa08] sm:$0x77]  ;;  %v15260_v52 = vcombine.low %v1571_v20, %v1767_v21 }
 0x418   :  { %v7333_v59 = vpop.f32.mrf.mxu1  ;;  %v7374_v60 = vpop.f32.mrf.mxu0  ;;  %15522 = vmatmul.mubr.msk.bf16.vlgmr.msra.gmra.mxu1 %vm3409_vm9, %v16422_v19  ;;  %15523 = vmatmul.mubr.msk.bf16.vlgmr.msra.gmra.mxu0 %vm3409_vm9, %v16422_v19  ;;  %v15265_v57 = vcombine.high %v1573_v46, %v1769_v47 }
 0x419   :  { %14817 = vst [vmem:[#allocation2 + $0x100] sm:$0xff] %v13581_v53  ;;  %9364 = vmatpush1.bf16.msra.mxu1 %v4114_v49  ;;  %9405 = vmatpush1.bf16.msra.mxu0 %v4120_v50  ;;  %v1574_v50 = vld [vmem:[%s18736_s3 + $0x3e8] sm:$0xff]  ;;  %v15262_v53 = vcombine.low %v1572_v24, %v1768_v25 }
 0x41a   :  { %v7335_v1 = vpop.f32.mrf.mxu1  ;;  %v7376_v3 = vpop.f32.mrf.mxu0  ;;  %9381 = vmatprep.mubr.bf16.mxu1 %v15948_v2  ;;  %9422 = vmatprep.mubr.bf16.mxu0 %v15948_v2  ;;  %v4165_v7 = vand.u32 %v15265_v57, %v16375_v26 }
 0x41b   :  { %v13582_v5 = vcombine.low %v7333_v59, %v7335_v1  ;;  %v13583_v6 = vcombine.low %v7374_v60, %v7376_v3  ;;  %9445 = vmatprep.subr.bf16.mxu1 %v4129_v54  ;;  %9486 = vmatprep.subr.bf16.mxu0 %v4135_v55  ;;  %v15267_v60 = vcombine.high %v1574_v50, %v1770_v51 }
 0x41c   :  { %v7337_v8 = vpop.f32.mrf.mxu1  ;;  %v7378_v9 = vpop.f32.mrf.mxu0  ;;  %v4150_v1 = vand.u32 %v15260_v52, %v16375_v26  ;;  %v4156_v3 = vand.u32 %v15262_v53, %v16375_v26 }
 0x41d   :  { %v13590_v10 = vrot.slane %v13582_v5, %v16096_v42  ;;  %v13597_v11 = vrot.slane %v13583_v6, %v16096_v42  ;;  %v4171_v8 = vand.u32 %v15267_v60, %v16375_v26  ;;  %v1575_v9 = vld [vmem:[%s18736_s3 + $0x3f0] sm:$0xff] }
 0x41e   :  { %v7338_v14 = vpop.f32.mrf.mxu1  ;;  %v7379_v15 = vpop.f32.mrf.mxu0 }
 0x41f   :  { %v13598_v16 = vcombine.low %v13590_v10, %v13597_v11  ;;  %v1771_v10 = vld [vmem:[%s18736_s3 + $0xa10] sm:$0x77]  ;;  %v1772_v14 = vld [vmem:[%s18736_s3 + $0xa18] sm:$0x77]  ;;  %v15264_v15 = vcombine.low %v1573_v46, %v1769_v47 }
 0x420   :  { %v7415_v22 = vpop.f32.mrf.mxu1  ;;  %v7456_v23 = vpop.f32.mrf.mxu0  ;;  %15524 = vmatmul.mubr.msk.bf16.vlgmr.msra.gmra.mxu1 %vm3409_vm9, %v16422_v19  ;;  %15525 = vmatmul.mubr.msk.bf16.vlgmr.msra.gmra.mxu0 %vm3409_vm9, %v16422_v19  ;;  %v15269_v20 = vcombine.high %v1575_v9, %v1771_v10 }
 0x421   :  { %14818 = vst [vmem:[#allocation2 + $0x108] sm:$0xff] %v13598_v16  ;;  %9446 = vmatpush1.bf16.msra.mxu1 %v4126_v12  ;;  %9487 = vmatpush1.bf16.msra.mxu0 %v4132_v13  ;;  %v1576_v13 = vld [vmem:[%s18736_s3 + $0x3f8] sm:$0xff]  ;;  %v15266_v16 = vcombine.low %v1574_v50, %v1770_v51 }
 0x422   :  { %v7417_v29 = vpop.f32.mrf.mxu1  ;;  %v7458_v30 = vpop.f32.mrf.mxu0  ;;  %9463 = vmatprep.mubr.bf16.mxu1 %v15948_v2  ;;  %9504 = vmatprep.mubr.bf16.mxu0 %v15948_v2  ;;  %v4177_v33 = vand.u32 %v15269_v20, %v16375_v26 }
 0x423   :  { %v13599_v32 = vcombine.low %v7415_v22, %v7417_v29  ;;  %v13600_v56 = vcombine.low %v7456_v23, %v7458_v30  ;;  %9527 = vmatprep.subr.bf16.mxu1 %v4141_v17  ;;  %9568 = vmatprep.subr.bf16.mxu0 %v4147_v18  ;;  %v15271_v23 = vcombine.high %v1576_v13, %v1772_v14 }
 0x424   :  { %v7419_v34 = vpop.f32.mrf.mxu1  ;;  %v7460_v35 = vpop.f32.mrf.mxu0  ;;  %v4162_v29 = vand.u32 %v15264_v15, %v16375_v26  ;;  %v4168_v30 = vand.u32 %v15266_v16, %v16375_v26 }
 0x425   :  { %v13607_v36 = vrot.slane %v13599_v32, %v16096_v42  ;;  %v13614_v37 = vrot.slane %v13600_v56, %v16096_v42  ;;  %v4183_v34 = vand.u32 %v15271_v23, %v16375_v26  ;;  %v1577_v35 = vld [vmem:[%s18736_s3 + $0x400] sm:$0xff] }
 0x426   :  { %v7420_v40 = vpop.f32.mrf.mxu1  ;;  %v7461_v41 = vpop.f32.mrf.mxu0 }
 0x427   :  { %v13615_v43 = vcombine.low %v13607_v36, %v13614_v37  ;;  %v1773_v36 = vld [vmem:[%s18736_s3 + $0xa20] sm:$0x77]  ;;  %v1774_v40 = vld [vmem:[%s18736_s3 + $0xa28] sm:$0x77]  ;;  %v15268_v41 = vcombine.low %v1575_v9, %v1771_v10 }
 0x428   :  { %v7497_v48 = vpop.f32.mrf.mxu1  ;;  %v7538_v49 = vpop.f32.mrf.mxu0  ;;  %15526 = vmatmul.mubr.msk.bf16.vlgmr.msra.gmra.mxu1 %vm3409_vm9, %v16422_v19  ;;  %15527 = vmatmul.mubr.msk.bf16.vlgmr.msra.gmra.mxu0 %vm3409_vm9, %v16422_v19  ;;  %v15273_v46 = vcombine.high %v1577_v35, %v1773_v36 }
 0x429   :  { %14819 = vst [vmem:[#allocation2 + $0x110] sm:$0xff] %v13615_v43  ;;  %9528 = vmatpush1.bf16.msra.mxu1 %v4138_v38  ;;  %9569 = vmatpush1.bf16.msra.mxu0 %v4144_v39  ;;  %v1578_v39 = vld [vmem:[%s18736_s3 + $0x408] sm:$0xff]  ;;  %v15270_v43 = vcombine.low %v1576_v13, %v1772_v14 }
 0x42a   :  { %v7499_v54 = vpop.f32.mrf.mxu1  ;;  %v7540_v55 = vpop.f32.mrf.mxu0  ;;  %9545 = vmatprep.mubr.bf16.mxu1 %v15948_v2  ;;  %9586 = vmatprep.mubr.bf16.mxu0 %v15948_v2  ;;  %v4189_v60 = vand.u32 %v15273_v46, %v16375_v26 }
 0x42b   :  { %v13616_v58 = vcombine.low %v7497_v48, %v7499_v54  ;;  %v13617_v59 = vcombine.low %v7538_v49, %v7540_v55  ;;  %9609 = vmatprep.subr.bf16.mxu1 %v4153_v44  ;;  %9650 = vmatprep.subr.bf16.mxu0 %v4159_v45  ;;  %v15275_v49 = vcombine.high %v1578_v39, %v1774_v40 }
 0x42c   :  { %v7501_v61 = vpop.f32.mrf.mxu1  ;;  %v7542_v62 = vpop.f32.mrf.mxu0  ;;  %v4174_v54 = vand.u32 %v15268_v41, %v16375_v26  ;;  %v4180_v55 = vand.u32 %v15270_v43, %v16375_v26 }
 0x42d   :  { %v13624_v63 = vrot.slane %v13616_v58, %v16096_v42  ;;  %v13631_v0 = vrot.slane %v13617_v59, %v16096_v42  ;;  %v4195_v61 = vand.u32 %v15275_v49, %v16375_v26  ;;  %v1579_v62 = vld [vmem:[%s18736_s3 + $0x410] sm:$0xff] }
 0x42e   :  { %v7502_v4 = vpop.f32.mrf.mxu1  ;;  %v7543_v5 = vpop.f32.mrf.mxu0 }
 0x42f   :  { %v13632_v6 = vcombine.low %v13624_v63, %v13631_v0  ;;  %v1775_v63 = vld [vmem:[%s18736_s3 + $0xa30] sm:$0x77]  ;;  %v1776_v4 = vld [vmem:[%s18736_s3 + $0xa38] sm:$0x77]  ;;  %v15272_v5 = vcombine.low %v1577_v35, %v1773_v36 }
 0x430   :  { %v7579_v11 = vpop.f32.mrf.mxu1  ;;  %v7620_v12 = vpop.f32.mrf.mxu0  ;;  %15528 = vmatmul.mubr.msk.bf16.vlgmr.msra.gmra.mxu1 %vm3409_vm9, %v16422_v19  ;;  %15529 = vmatmul.mubr.msk.bf16.vlgmr.msra.gmra.mxu0 %vm3409_vm9, %v16422_v19  ;;  %v15277_v9 = vcombine.high %v1579_v62, %v1775_v63 }
 0x431   :  { %14820 = vst [vmem:[#allocation2 + $0x118] sm:$0xff] %v13632_v6  ;;  %9610 = vmatpush1.bf16.msra.mxu1 %v4150_v1  ;;  %9651 = vmatpush1.bf16.msra.mxu0 %v4156_v3  ;;  %v1580_v3 = vld [vmem:[%s18736_s3 + $0x418] sm:$0xff]  ;;  %v15274_v6 = vcombine.low %v1578_v39, %v1774_v40 }
 0x432   :  { %v7581_v17 = vpop.f32.mrf.mxu1  ;;  %v7622_v18 = vpop.f32.mrf.mxu0  ;;  %9627 = vmatprep.mubr.bf16.mxu1 %v15948_v2  ;;  %9668 = vmatprep.mubr.bf16.mxu0 %v15948_v2  ;;  %v4201_v23 = vand.u32 %v15277_v9, %v16375_v26 }
 0x433   :  { %v13633_v21 = vcombine.low %v7579_v11, %v7581_v17  ;;  %v13634_v22 = vcombine.low %v7620_v12, %v7622_v18  ;;  %9691 = vmatprep.subr.bf16.mxu1 %v4165_v7  ;;  %9732 = vmatprep.subr.bf16.mxu0 %v4171_v8  ;;  %v15279_v12 = vcombine.high %v1580_v3, %v1776_v4 }
 0x434   :  { %v7583_v24 = vpop.f32.mrf.mxu1  ;;  %v7624_v25 = vpop.f32.mrf.mxu0  ;;  %v4186_v17 = vand.u32 %v15272_v5, %v16375_v26  ;;  %v4192_v18 = vand.u32 %v15274_v6, %v16375_v26 }
 0x435   :  { %v13641_v27 = vrot.slane %v13633_v21, %v16096_v42  ;;  %v13648_v28 = vrot.slane %v13634_v22, %v16096_v42  ;;  %v4207_v24 = vand.u32 %v15279_v12, %v16375_v26  ;;  %v1581_v25 = vld [vmem:[%s18736_s3 + $0x420] sm:$0xff] }
 0x436   :  { %v7584_v31 = vpop.f32.mrf.mxu1  ;;  %v7625_v32 = vpop.f32.mrf.mxu0 }
 0x437   :  { %v13649_v56 = vcombine.low %v13641_v27, %v13648_v28  ;;  %v1777_v27 = vld [vmem:[%s18736_s3 + $0xa40] sm:$0x77]  ;;  %v1778_v31 = vld [vmem:[%s18736_s3 + $0xa48] sm:$0x77]  ;;  %v15276_v32 = vcombine.low %v1579_v62, %v1775_v63 }
 0x438   :  { %v7661_v37 = vpop.f32.mrf.mxu1  ;;  %v7702_v38 = vpop.f32.mrf.mxu0  ;;  %15530 = vmatmul.mubr.msk.bf16.vlgmr.msra.gmra.mxu1 %vm3409_vm9, %v16422_v19  ;;  %15531 = vmatmul.mubr.msk.bf16.vlgmr.msra.gmra.mxu0 %vm3409_vm9, %v16422_v19  ;;  %v15281_v35 = vcombine.high %v1581_v25, %v1777_v27 }
 0x439   :  { %14821 = vst [vmem:[#allocation2 + $0x120] sm:$0xff] %v13649_v56  ;;  %9692 = vmatpush1.bf16.msra.mxu1 %v4162_v29  ;;  %9733 = vmatpush1.bf16.msra.mxu0 %v4168_v30  ;;  %v1582_v30 = vld [vmem:[%s18736_s3 + $0x428] sm:$0xff]  ;;  %v15278_v56 = vcombine.low %v1580_v3, %v1776_v4 }
 0x43a   :  { %v7663_v44 = vpop.f32.mrf.mxu1  ;;  %v7704_v45 = vpop.f32.mrf.mxu0  ;;  %9709 = vmatprep.mubr.bf16.mxu1 %v15948_v2  ;;  %9750 = vmatprep.mubr.bf16.mxu0 %v15948_v2  ;;  %v4213_v49 = vand.u32 %v15281_v35, %v16375_v26 }
 0x43b   :  { %v13650_v47 = vcombine.low %v7661_v37, %v7663_v44  ;;  %v13651_v48 = vcombine.low %v7702_v38, %v7704_v45  ;;  %9773 = vmatprep.subr.bf16.mxu1 %v4177_v33  ;;  %9814 = vmatprep.subr.bf16.mxu0 %v4183_v34  ;;  %v15283_v38 = vcombine.high %v1582_v30, %v1778_v31 }
 0x43c   :  { %v7665_v50 = vpop.f32.mrf.mxu1  ;;  %v7706_v51 = vpop.f32.mrf.mxu0  ;;  %v4198_v44 = vand.u32 %v15276_v32, %v16375_v26  ;;  %v4204_v45 = vand.u32 %v15278_v56, %v16375_v26 }
 0x43d   :  { %v13658_v52 = vrot.slane %v13650_v47, %v16096_v42  ;;  %v13665_v53 = vrot.slane %v13651_v48, %v16096_v42  ;;  %v4219_v50 = vand.u32 %v15283_v38, %v16375_v26  ;;  %v1583_v51 = vld [vmem:[%s18736_s3 + $0x430] sm:$0xff] }
 0x43e   :  { %v7666_v57 = vpop.f32.mrf.mxu1  ;;  %v7707_v58 = vpop.f32.mrf.mxu0 }
 0x43f   :  { %v13666_v59 = vcombine.low %v13658_v52, %v13665_v53  ;;  %v1779_v52 = vld [vmem:[%s18736_s3 + $0xa50] sm:$0x77]  ;;  %v1780_v57 = vld [vmem:[%s18736_s3 + $0xa58] sm:$0x77]  ;;  %v15280_v58 = vcombine.low %v1581_v25, %v1777_v27 }
 0x440   :  { %v7743_v0 = vpop.f32.mrf.mxu1  ;;  %v7784_v1 = vpop.f32.mrf.mxu0  ;;  %15532 = vmatmul.mubr.msk.bf16.vlgmr.msra.gmra.mxu1 %vm3409_vm9, %v16422_v19  ;;  %15533 = vmatmul.mubr.msk.bf16.vlgmr.msra.gmra.mxu0 %vm3409_vm9, %v16422_v19  ;;  %v15285_v62 = vcombine.high %v1583_v51, %v1779_v52 }
 0x441   :  { %14822 = vst [vmem:[#allocation2 + $0x128] sm:$0xff] %v13666_v59  ;;  %9774 = vmatpush1.bf16.msra.mxu1 %v4174_v54  ;;  %9815 = vmatpush1.bf16.msra.mxu0 %v4180_v55  ;;  %v1584_v55 = vld [vmem:[%s18736_s3 + $0x438] sm:$0xff]  ;;  %v15282_v59 = vcombine.low %v1582_v30, %v1778_v31 }
 0x442   :  { %v7745_v7 = vpop.f32.mrf.mxu1  ;;  %v7786_v8 = vpop.f32.mrf.mxu0  ;;  %9791 = vmatprep.mubr.bf16.mxu1 %v15948_v2  ;;  %9832 = vmatprep.mubr.bf16.mxu0 %v15948_v2  ;;  %v4225_v12 = vand.u32 %v15285_v62, %v16375_v26 }
 0x443   :  { %v13667_v10 = vcombine.low %v7743_v0, %v7745_v7  ;;  %v13668_v11 = vcombine.low %v7784_v1, %v7786_v8  ;;  %9855 = vmatprep.subr.bf16.mxu1 %v4189_v60  ;;  %9896 = vmatprep.subr.bf16.mxu0 %v4195_v61  ;;  %v15287_v1 = vcombine.high %v1584_v55, %v1780_v57 }
 0x444   :  { %v7747_v13 = vpop.f32.mrf.mxu1  ;;  %v7788_v14 = vpop.f32.mrf.mxu0  ;;  %v4210_v7 = vand.u32 %v15280_v58, %v16375_v26  ;;  %v4216_v8 = vand.u32 %v15282_v59, %v16375_v26 }
 0x445   :  { %v13675_v15 = vrot.slane %v13667_v10, %v16096_v42  ;;  %v13682_v16 = vrot.slane %v13668_v11, %v16096_v42  ;;  %v4231_v13 = vand.u32 %v15287_v1, %v16375_v26  ;;  %v1585_v14 = vld [vmem:[%s18736_s3 + $0x440] sm:$0xff] }
 0x446   :  { %v7748_v20 = vpop.f32.mrf.mxu1  ;;  %v7789_v21 = vpop.f32.mrf.mxu0 }
 0x447   :  { %v13683_v22 = vcombine.low %v13675_v15, %v13682_v16  ;;  %v1781_v15 = vld [vmem:[%s18736_s3 + $0xa60] sm:$0x77]  ;;  %v1782_v20 = vld [vmem:[%s18736_s3 + $0xa68] sm:$0x77]  ;;  %v15284_v21 = vcombine.low %v1583_v51, %v1779_v52 }
 0x448   :  { %v7825_v28 = vpop.f32.mrf.mxu1  ;;  %v7866_v29 = vpop.f32.mrf.mxu0  ;;  %15534 = vmatmul.mubr.msk.bf16.vlgmr.msra.gmra.mxu1 %vm3409_vm9, %v16422_v19  ;;  %15535 = vmatmul.mubr.msk.bf16.vlgmr.msra.gmra.mxu0 %vm3409_vm9, %v16422_v19  ;;  %v15289_v25 = vcombine.high %v1585_v14, %v1781_v15 }
 0x449   :  { %14823 = vst [vmem:[#allocation2 + $0x130] sm:$0xff] %v13683_v22  ;;  %9856 = vmatpush1.bf16.msra.mxu1 %v4186_v17  ;;  %9897 = vmatpush1.bf16.msra.mxu0 %v4192_v18  ;;  %v1586_v18 = vld [vmem:[%s18736_s3 + $0x448] sm:$0xff]  ;;  %v15286_v22 = vcombine.low %v1584_v55, %v1780_v57 }
 0x44a   :  { %v7827_v33 = vpop.f32.mrf.mxu1  ;;  %v7868_v34 = vpop.f32.mrf.mxu0  ;;  %9873 = vmatprep.mubr.bf16.mxu1 %v15948_v2  ;;  %9914 = vmatprep.mubr.bf16.mxu0 %v15948_v2  ;;  %v4237_v38 = vand.u32 %v15289_v25, %v16375_v26 }
 0x44b   :  { %v13684_v36 = vcombine.low %v7825_v28, %v7827_v33  ;;  %v13685_v37 = vcombine.low %v7866_v29, %v7868_v34  ;;  %9937 = vmatprep.subr.bf16.mxu1 %v4201_v23  ;;  %9978 = vmatprep.subr.bf16.mxu0 %v4207_v24  ;;  %v15291_v29 = vcombine.high %v1586_v18, %v1782_v20 }
 0x44c   :  { %v7829_v39 = vpop.f32.mrf.mxu1  ;;  %v7870_v40 = vpop.f32.mrf.mxu0  ;;  %v4222_v33 = vand.u32 %v15284_v21, %v16375_v26  ;;  %v4228_v34 = vand.u32 %v15286_v22, %v16375_v26 }
 0x44d   :  { %v13692_v41 = vrot.slane %v13684_v36, %v16096_v42  ;;  %v13699_v43 = vrot.slane %v13685_v37, %v16096_v42  ;;  %v4243_v39 = vand.u32 %v15291_v29, %v16375_v26  ;;  %v1587_v40 = vld [vmem:[%s18736_s3 + $0x450] sm:$0xff] }
 0x44e   :  { %v7830_v46 = vpop.f32.mrf.mxu1  ;;  %v7871_v47 = vpop.f32.mrf.mxu0 }
 0x44f   :  { %v13700_v48 = vcombine.low %v13692_v41, %v13699_v43  ;;  %v1783_v41 = vld [vmem:[%s18736_s3 + $0xa70] sm:$0x77]  ;;  %v1784_v46 = vld [vmem:[%s18736_s3 + $0xa78] sm:$0x77]  ;;  %v15288_v47 = vcombine.low %v1585_v14, %v1781_v15 }
 0x450   :  { %v7907_v53 = vpop.f32.mrf.mxu1  ;;  %v7948_v54 = vpop.f32.mrf.mxu0  ;;  %15536 = vmatmul.mubr.msk.bf16.vlgmr.msra.gmra.mxu1 %vm3409_vm9, %v16422_v19  ;;  %15537 = vmatmul.mubr.msk.bf16.vlgmr.msra.gmra.mxu0 %vm3409_vm9, %v16422_v19  ;;  %v15293_v51 = vcombine.high %v1587_v40, %v1783_v41 }
 0x451   :  { %14824 = vst [vmem:[#allocation2 + $0x138] sm:$0xff] %v13700_v48  ;;  %9938 = vmatpush1.bf16.msra.mxu1 %v4198_v44  ;;  %9979 = vmatpush1.bf16.msra.mxu0 %v4204_v45  ;;  %v1588_v45 = vld [vmem:[%s18736_s3 + $0x458] sm:$0xff]  ;;  %v15290_v48 = vcombine.low %v1586_v18, %v1782_v20 }
 0x452   :  { %v7909_v60 = vpop.f32.mrf.mxu1  ;;  %v7950_v61 = vpop.f32.mrf.mxu0  ;;  %9955 = vmatprep.mubr.bf16.mxu1 %v15948_v2  ;;  %9996 = vmatprep.mubr.bf16.mxu0 %v15948_v2  ;;  %v4249_v1 = vand.u32 %v15293_v51, %v16375_v26 }
 0x453   :  { %v13701_v63 = vcombine.low %v7907_v53, %v7909_v60  ;;  %v13702_v0 = vcombine.low %v7948_v54, %v7950_v61  ;;  %10019 = vmatprep.subr.bf16.mxu1 %v4213_v49  ;;  %10060 = vmatprep.subr.bf16.mxu0 %v4219_v50  ;;  %v15295_v54 = vcombine.high %v1588_v45, %v1784_v46 }
 0x454   :  { %v7911_v3 = vpop.f32.mrf.mxu1  ;;  %v7952_v4 = vpop.f32.mrf.mxu0  ;;  %v4234_v60 = vand.u32 %v15288_v47, %v16375_v26  ;;  %v4240_v61 = vand.u32 %v15290_v48, %v16375_v26 }
 0x455   :  { %v13709_v5 = vrot.slane %v13701_v63, %v16096_v42  ;;  %v13716_v6 = vrot.slane %v13702_v0, %v16096_v42  ;;  %v4255_v3 = vand.u32 %v15295_v54, %v16375_v26  ;;  %v1589_v4 = vld [vmem:[%s18736_s3 + $0x460] sm:$0xff] }
 0x456   :  { %v7912_v9 = vpop.f32.mrf.mxu1  ;;  %v7953_v10 = vpop.f32.mrf.mxu0 }
 0x457   :  { %v13717_v11 = vcombine.low %v13709_v5, %v13716_v6  ;;  %v1785_v5 = vld [vmem:[%s18736_s3 + $0xa80] sm:$0x77]  ;;  %v1786_v9 = vld [vmem:[%s18736_s3 + $0xa88] sm:$0x77]  ;;  %v15292_v10 = vcombine.low %v1587_v40, %v1783_v41 }
 0x458   :  { %v7989_v16 = vpop.f32.mrf.mxu1  ;;  %v8030_v17 = vpop.f32.mrf.mxu0  ;;  %15538 = vmatmul.mubr.msk.bf16.vlgmr.msra.gmra.mxu1 %vm3409_vm9, %v16422_v19  ;;  %15539 = vmatmul.mubr.msk.bf16.vlgmr.msra.gmra.mxu0 %vm3409_vm9, %v16422_v19  ;;  %v15297_v14 = vcombine.high %v1589_v4, %v1785_v5 }
 0x459   :  { %14825 = vst [vmem:[#allocation2 + $0x140] sm:$0xff] %v13717_v11  ;;  %10020 = vmatpush1.bf16.msra.mxu1 %v4210_v7  ;;  %10061 = vmatpush1.bf16.msra.mxu0 %v4216_v8  ;;  %v1590_v8 = vld [vmem:[%s18736_s3 + $0x468] sm:$0xff]  ;;  %v15294_v11 = vcombine.low %v1588_v45, %v1784_v46 }
 0x45a   :  { %v7991_v23 = vpop.f32.mrf.mxu1  ;;  %v8032_v24 = vpop.f32.mrf.mxu0  ;;  %10037 = vmatprep.mubr.bf16.mxu1 %v15948_v2  ;;  %10078 = vmatprep.mubr.bf16.mxu0 %v15948_v2  ;;  %v4261_v29 = vand.u32 %v15297_v14, %v16375_v26 }
 0x45b   :  { %v13718_v27 = vcombine.low %v7989_v16, %v7991_v23  ;;  %v13719_v28 = vcombine.low %v8030_v17, %v8032_v24  ;;  %10101 = vmatprep.subr.bf16.mxu1 %v4225_v12  ;;  %10142 = vmatprep.subr.bf16.mxu0 %v4231_v13  ;;  %v15299_v17 = vcombine.high %v1590_v8, %v1786_v9 }
 0x45c   :  { %v7993_v30 = vpop.f32.mrf.mxu1  ;;  %v8034_v31 = vpop.f32.mrf.mxu0  ;;  %v4246_v23 = vand.u32 %v15292_v10, %v16375_v26  ;;  %v4252_v24 = vand.u32 %v15294_v11, %v16375_v26 }
 0x45d   :  { %v13726_v32 = vrot.slane %v13718_v27, %v16096_v42  ;;  %v13733_v56 = vrot.slane %v13719_v28, %v16096_v42  ;;  %v4267_v30 = vand.u32 %v15299_v17, %v16375_v26  ;;  %v1591_v31 = vld [vmem:[%s18736_s3 + $0x470] sm:$0xff] }
 0x45e   :  { %v7994_v35 = vpop.f32.mrf.mxu1  ;;  %v8035_v36 = vpop.f32.mrf.mxu0 }
 0x45f   :  { %v13734_v37 = vcombine.low %v13726_v32, %v13733_v56  ;;  %v1787_v32 = vld [vmem:[%s18736_s3 + $0xa90] sm:$0x77]  ;;  %v1788_v35 = vld [vmem:[%s18736_s3 + $0xa98] sm:$0x77]  ;;  %v15296_v36 = vcombine.low %v1589_v4, %v1785_v5 }
 0x460   :  { %v8071_v43 = vpop.f32.mrf.mxu1  ;;  %v8112_v44 = vpop.f32.mrf.mxu0  ;;  %15540 = vmatmul.mubr.msk.bf16.vlgmr.msra.gmra.mxu1 %vm3409_vm9, %v16422_v19  ;;  %15541 = vmatmul.mubr.msk.bf16.vlgmr.msra.gmra.mxu0 %vm3409_vm9, %v16422_v19  ;;  %v15301_v40 = vcombine.high %v1591_v31, %v1787_v32 }
 0x461   :  { %14826 = vst [vmem:[#allocation2 + $0x148] sm:$0xff] %v13734_v37  ;;  %10102 = vmatpush1.bf16.msra.mxu1 %v4222_v33  ;;  %10143 = vmatpush1.bf16.msra.mxu0 %v4228_v34  ;;  %v1592_v34 = vld [vmem:[%s18736_s3 + $0x478] sm:$0xff]  ;;  %v15298_v37 = vcombine.low %v1590_v8, %v1786_v9 }
 0x462   :  { %v8073_v49 = vpop.f32.mrf.mxu1  ;;  %v8114_v50 = vpop.f32.mrf.mxu0  ;;  %10119 = vmatprep.mubr.bf16.mxu1 %v15948_v2  ;;  %10160 = vmatprep.mubr.bf16.mxu0 %v15948_v2  ;;  %v4273_v54 = vand.u32 %v15301_v40, %v16375_v26 }
 0x463   :  { %v13735_v52 = vcombine.low %v8071_v43, %v8073_v49  ;;  %v13736_v53 = vcombine.low %v8112_v44, %v8114_v50  ;;  %10183 = vmatprep.subr.bf16.mxu1 %v4237_v38  ;;  %10224 = vmatprep.subr.bf16.mxu0 %v4243_v39  ;;  %v15303_v44 = vcombine.high %v1592_v34, %v1788_v35 }
 0x464   :  { %v8075_v55 = vpop.f32.mrf.mxu1  ;;  %v8116_v57 = vpop.f32.mrf.mxu0  ;;  %v4258_v49 = vand.u32 %v15296_v36, %v16375_v26  ;;  %v4264_v50 = vand.u32 %v15298_v37, %v16375_v26 }
 0x465   :  { %v13743_v58 = vrot.slane %v13735_v52, %v16096_v42  ;;  %v13750_v59 = vrot.slane %v13736_v53, %v16096_v42  ;;  %v4279_v55 = vand.u32 %v15303_v44, %v16375_v26  ;;  %v1593_v57 = vld [vmem:[%s18736_s3 + $0x480] sm:$0xff] }
 0x466   :  { %v8076_v62 = vpop.f32.mrf.mxu1  ;;  %v8117_v63 = vpop.f32.mrf.mxu0 }
 0x467   :  { %v13751_v0 = vcombine.low %v13743_v58, %v13750_v59  ;;  %v1789_v58 = vld [vmem:[%s18736_s3 + $0xaa0] sm:$0x77]  ;;  %v1790_v62 = vld [vmem:[%s18736_s3 + $0xaa8] sm:$0x77]  ;;  %v15300_v63 = vcombine.low %v1591_v31, %v1787_v32 }
 0x468   :  { %v8153_v6 = vpop.f32.mrf.mxu1  ;;  %v8194_v7 = vpop.f32.mrf.mxu0  ;;  %15542 = vmatmul.mubr.msk.bf16.vlgmr.msra.gmra.mxu1 %vm3409_vm9, %v16422_v19  ;;  %15543 = vmatmul.mubr.msk.bf16.vlgmr.msra.gmra.mxu0 %vm3409_vm9, %v16422_v19  ;;  %v15305_v4 = vcombine.high %v1593_v57, %v1789_v58 }
 0x469   :  { %14827 = vst [vmem:[#allocation2 + $0x150] sm:$0xff] %v13751_v0  ;;  %10184 = vmatpush1.bf16.msra.mxu1 %v4234_v60  ;;  %10225 = vmatpush1.bf16.msra.mxu0 %v4240_v61  ;;  %v1594_v61 = vld [vmem:[%s18736_s3 + $0x488] sm:$0xff]  ;;  %v15302_v0 = vcombine.low %v1592_v34, %v1788_v35 }
 0x46a   :  { %v8155_v12 = vpop.f32.mrf.mxu1  ;;  %v8196_v13 = vpop.f32.mrf.mxu0  ;;  %10201 = vmatprep.mubr.bf16.mxu1 %v15948_v2  ;;  %10242 = vmatprep.mubr.bf16.mxu0 %v15948_v2  ;;  %v4285_v17 = vand.u32 %v15305_v4, %v16375_v26 }
 0x46b   :  { %v13752_v15 = vcombine.low %v8153_v6, %v8155_v12  ;;  %v13753_v16 = vcombine.low %v8194_v7, %v8196_v13  ;;  %10265 = vmatprep.subr.bf16.mxu1 %v4249_v1  ;;  %10306 = vmatprep.subr.bf16.mxu0 %v4255_v3  ;;  %v15307_v7 = vcombine.high %v1594_v61, %v1790_v62 }
 0x46c   :  { %v8157_v18 = vpop.f32.mrf.mxu1  ;;  %v8198_v20 = vpop.f32.mrf.mxu0  ;;  %v4270_v12 = vand.u32 %v15300_v63, %v16375_v26  ;;  %v4276_v13 = vand.u32 %v15302_v0, %v16375_v26 }
 0x46d   :  { %v13760_v21 = vrot.slane %v13752_v15, %v16096_v42  ;;  %v13767_v22 = vrot.slane %v13753_v16, %v16096_v42  ;;  %v4291_v18 = vand.u32 %v15307_v7, %v16375_v26  ;;  %v1595_v20 = vld [vmem:[%s18736_s3 + $0x490] sm:$0xff] }
 0x46e   :  { %v8158_v25 = vpop.f32.mrf.mxu1  ;;  %v8199_v27 = vpop.f32.mrf.mxu0 }
 0x46f   :  { %v13768_v28 = vcombine.low %v13760_v21, %v13767_v22  ;;  %v1791_v21 = vld [vmem:[%s18736_s3 + $0xab0] sm:$0x77]  ;;  %v1792_v25 = vld [vmem:[%s18736_s3 + $0xab8] sm:$0x77]  ;;  %v15304_v27 = vcombine.low %v1593_v57, %v1789_v58 }
 0x470   :  { %v8235_v56 = vpop.f32.mrf.mxu1  ;;  %v8276_v33 = vpop.f32.mrf.mxu0  ;;  %15544 = vmatmul.mubr.msk.bf16.vlgmr.msra.gmra.mxu1 %vm3409_vm9, %v16422_v19  ;;  %15545 = vmatmul.mubr.msk.bf16.vlgmr.msra.gmra.mxu0 %vm3409_vm9, %v16422_v19  ;;  %v15309_v31 = vcombine.high %v1595_v20, %v1791_v21 }
 0x471   :  { %14828 = vst [vmem:[#allocation2 + $0x158] sm:$0xff] %v13768_v28  ;;  %10266 = vmatpush1.bf16.msra.mxu1 %v4246_v23  ;;  %10307 = vmatpush1.bf16.msra.mxu0 %v4252_v24  ;;  %v1596_v24 = vld [vmem:[%s18736_s3 + $0x498] sm:$0xff]  ;;  %v15306_v28 = vcombine.low %v1594_v61, %v1790_v62 }
 0x472   :  { %v8237_v38 = vpop.f32.mrf.mxu1  ;;  %v8278_v39 = vpop.f32.mrf.mxu0  ;;  %10283 = vmatprep.mubr.bf16.mxu1 %v15948_v2  ;;  %10324 = vmatprep.mubr.bf16.mxu0 %v15948_v2  ;;  %v4297_v44 = vand.u32 %v15309_v31, %v16375_v26 }
 0x473   :  { %v13769_v41 = vcombine.low %v8235_v56, %v8237_v38  ;;  %v13770_v43 = vcombine.low %v8276_v33, %v8278_v39  ;;  %10347 = vmatprep.subr.bf16.mxu1 %v4261_v29  ;;  %10388 = vmatprep.subr.bf16.mxu0 %v4267_v30  ;;  %v15311_v33 = vcombine.high %v1596_v24, %v1792_v25 }
 0x474   :  { %v8239_v45 = vpop.f32.mrf.mxu1  ;;  %v8280_v46 = vpop.f32.mrf.mxu0  ;;  %v4282_v38 = vand.u32 %v15304_v27, %v16375_v26  ;;  %v4288_v39 = vand.u32 %v15306_v28, %v16375_v26 }
 0x475   :  { %v13777_v47 = vrot.slane %v13769_v41, %v16096_v42  ;;  %v13784_v48 = vrot.slane %v13770_v43, %v16096_v42  ;;  %v4303_v45 = vand.u32 %v15311_v33, %v16375_v26  ;;  %v1597_v46 = vld [vmem:[%s18736_s3 + $0x4a0] sm:$0xff] }
 0x476   :  { %v8240_v51 = vpop.f32.mrf.mxu1  ;;  %v8281_v52 = vpop.f32.mrf.mxu0 }
 0x477   :  { %v13785_v53 = vcombine.low %v13777_v47, %v13784_v48  ;;  %v1793_v47 = vld [vmem:[%s18736_s3 + $0xac0] sm:$0x77]  ;;  %v1794_v51 = vld [vmem:[%s18736_s3 + $0xac8] sm:$0x77]  ;;  %v15308_v52 = vcombine.low %v1595_v20, %v1791_v21 }
 0x478   :  { %v8317_v59 = vpop.f32.mrf.mxu1  ;;  %v8358_v60 = vpop.f32.mrf.mxu0  ;;  %15546 = vmatmul.mubr.msk.bf16.vlgmr.msra.gmra.mxu1 %vm3409_vm9, %v16422_v19  ;;  %15547 = vmatmul.mubr.msk.bf16.vlgmr.msra.gmra.mxu0 %vm3409_vm9, %v16422_v19  ;;  %v15313_v57 = vcombine.high %v1597_v46, %v1793_v47 }
 0x479   :  { %14829 = vst [vmem:[#allocation2 + $0x160] sm:$0xff] %v13785_v53  ;;  %10348 = vmatpush1.bf16.msra.mxu1 %v4258_v49  ;;  %10389 = vmatpush1.bf16.msra.mxu0 %v4264_v50  ;;  %v1598_v50 = vld [vmem:[%s18736_s3 + $0x4a8] sm:$0xff]  ;;  %v15310_v53 = vcombine.low %v1596_v24, %v1792_v25 }
 0x47a   :  { %v8319_v1 = vpop.f32.mrf.mxu1  ;;  %v8360_v3 = vpop.f32.mrf.mxu0  ;;  %10365 = vmatprep.mubr.bf16.mxu1 %v15948_v2  ;;  %10406 = vmatprep.mubr.bf16.mxu0 %v15948_v2  ;;  %v4309_v7 = vand.u32 %v15313_v57, %v16375_v26 }
 0x47b   :  { %v13786_v5 = vcombine.low %v8317_v59, %v8319_v1  ;;  %v13787_v6 = vcombine.low %v8358_v60, %v8360_v3  ;;  %10429 = vmatprep.subr.bf16.mxu1 %v4273_v54  ;;  %10470 = vmatprep.subr.bf16.mxu0 %v4279_v55  ;;  %v15315_v60 = vcombine.high %v1598_v50, %v1794_v51 }
 0x47c   :  { %v8321_v8 = vpop.f32.mrf.mxu1  ;;  %v8362_v9 = vpop.f32.mrf.mxu0  ;;  %v4294_v1 = vand.u32 %v15308_v52, %v16375_v26  ;;  %v4300_v3 = vand.u32 %v15310_v53, %v16375_v26 }
 0x47d   :  { %v13794_v10 = vrot.slane %v13786_v5, %v16096_v42  ;;  %v13801_v11 = vrot.slane %v13787_v6, %v16096_v42  ;;  %v4315_v8 = vand.u32 %v15315_v60, %v16375_v26  ;;  %v1599_v9 = vld [vmem:[%s18736_s3 + $0x4b0] sm:$0xff] }
 0x47e   :  { %v8322_v14 = vpop.f32.mrf.mxu1  ;;  %v8363_v15 = vpop.f32.mrf.mxu0 }
 0x47f   :  { %v13802_v16 = vcombine.low %v13794_v10, %v13801_v11  ;;  %v1795_v10 = vld [vmem:[%s18736_s3 + $0xad0] sm:$0x77]  ;;  %v1796_v14 = vld [vmem:[%s18736_s3 + $0xad8] sm:$0x77]  ;;  %v15312_v15 = vcombine.low %v1597_v46, %v1793_v47 }
 0x480   :  { %v8399_v22 = vpop.f32.mrf.mxu1  ;;  %v8440_v23 = vpop.f32.mrf.mxu0  ;;  %15548 = vmatmul.mubr.msk.bf16.vlgmr.msra.gmra.mxu1 %vm3409_vm9, %v16422_v19  ;;  %15549 = vmatmul.mubr.msk.bf16.vlgmr.msra.gmra.mxu0 %vm3409_vm9, %v16422_v19  ;;  %v15317_v20 = vcombine.high %v1599_v9, %v1795_v10 }
 0x481   :  { %14830 = vst [vmem:[#allocation2 + $0x168] sm:$0xff] %v13802_v16  ;;  %10430 = vmatpush1.bf16.msra.mxu1 %v4270_v12  ;;  %10471 = vmatpush1.bf16.msra.mxu0 %v4276_v13  ;;  %v1600_v13 = vld [vmem:[%s18736_s3 + $0x4b8] sm:$0xff]  ;;  %v15314_v16 = vcombine.low %v1598_v50, %v1794_v51 }
 0x482   :  { %v8401_v29 = vpop.f32.mrf.mxu1  ;;  %v8442_v30 = vpop.f32.mrf.mxu0  ;;  %10447 = vmatprep.mubr.bf16.mxu1 %v15948_v2  ;;  %10488 = vmatprep.mubr.bf16.mxu0 %v15948_v2  ;;  %v4321_v33 = vand.u32 %v15317_v20, %v16375_v26 }
 0x483   :  { %v13803_v32 = vcombine.low %v8399_v22, %v8401_v29  ;;  %v13804_v56 = vcombine.low %v8440_v23, %v8442_v30  ;;  %10511 = vmatprep.subr.bf16.mxu1 %v4285_v17  ;;  %10552 = vmatprep.subr.bf16.mxu0 %v4291_v18  ;;  %v15319_v23 = vcombine.high %v1600_v13, %v1796_v14 }
 0x484   :  { %v8403_v34 = vpop.f32.mrf.mxu1  ;;  %v8444_v35 = vpop.f32.mrf.mxu0  ;;  %v4306_v29 = vand.u32 %v15312_v15, %v16375_v26  ;;  %v4312_v30 = vand.u32 %v15314_v16, %v16375_v26 }
 0x485   :  { %v13811_v36 = vrot.slane %v13803_v32, %v16096_v42  ;;  %v13818_v37 = vrot.slane %v13804_v56, %v16096_v42  ;;  %v4327_v34 = vand.u32 %v15319_v23, %v16375_v26  ;;  %v1601_v35 = vld [vmem:[%s18736_s3 + $0x4c0] sm:$0xff] }
 0x486   :  { %v8404_v40 = vpop.f32.mrf.mxu1  ;;  %v8445_v41 = vpop.f32.mrf.mxu0 }
 0x487   :  { %v13819_v43 = vcombine.low %v13811_v36, %v13818_v37  ;;  %v1797_v36 = vld [vmem:[%s18736_s3 + $0xae0] sm:$0x77]  ;;  %v1798_v40 = vld [vmem:[%s18736_s3 + $0xae8] sm:$0x77]  ;;  %v15316_v41 = vcombine.low %v1599_v9, %v1795_v10 }
 0x488   :  { %v8481_v48 = vpop.f32.mrf.mxu1  ;;  %v8522_v49 = vpop.f32.mrf.mxu0  ;;  %15550 = vmatmul.mubr.msk.bf16.vlgmr.msra.gmra.mxu1 %vm3409_vm9, %v16422_v19  ;;  %15551 = vmatmul.mubr.msk.bf16.vlgmr.msra.gmra.mxu0 %vm3409_vm9, %v16422_v19  ;;  %v15321_v46 = vcombine.high %v1601_v35, %v1797_v36 }
 0x489   :  { %14831 = vst [vmem:[#allocation2 + $0x170] sm:$0xff] %v13819_v43  ;;  %10512 = vmatpush1.bf16.msra.mxu1 %v4282_v38  ;;  %10553 = vmatpush1.bf16.msra.mxu0 %v4288_v39  ;;  %v1602_v39 = vld [vmem:[%s18736_s3 + $0x4c8] sm:$0xff]  ;;  %v15318_v43 = vcombine.low %v1600_v13, %v1796_v14 }
 0x48a   :  { %v8483_v54 = vpop.f32.mrf.mxu1  ;;  %v8524_v55 = vpop.f32.mrf.mxu0  ;;  %10529 = vmatprep.mubr.bf16.mxu1 %v15948_v2  ;;  %10570 = vmatprep.mubr.bf16.mxu0 %v15948_v2  ;;  %v4333_v60 = vand.u32 %v15321_v46, %v16375_v26 }
 0x48b   :  { %v13820_v58 = vcombine.low %v8481_v48, %v8483_v54  ;;  %v13821_v59 = vcombine.low %v8522_v49, %v8524_v55  ;;  %10593 = vmatprep.subr.bf16.mxu1 %v4297_v44  ;;  %10634 = vmatprep.subr.bf16.mxu0 %v4303_v45  ;;  %v15323_v49 = vcombine.high %v1602_v39, %v1798_v40 }
 0x48c   :  { %v8485_v61 = vpop.f32.mrf.mxu1  ;;  %v8526_v62 = vpop.f32.mrf.mxu0  ;;  %v4318_v54 = vand.u32 %v15316_v41, %v16375_v26  ;;  %v4324_v55 = vand.u32 %v15318_v43, %v16375_v26 }
 0x48d   :  { %v13828_v63 = vrot.slane %v13820_v58, %v16096_v42  ;;  %v13835_v0 = vrot.slane %v13821_v59, %v16096_v42  ;;  %v4339_v61 = vand.u32 %v15323_v49, %v16375_v26  ;;  %v1603_v62 = vld [vmem:[%s18736_s3 + $0x4d0] sm:$0xff] }
 0x48e   :  { %v8486_v4 = vpop.f32.mrf.mxu1  ;;  %v8527_v5 = vpop.f32.mrf.mxu0 }
 0x48f   :  { %v13836_v6 = vcombine.low %v13828_v63, %v13835_v0  ;;  %v1799_v63 = vld [vmem:[%s18736_s3 + $0xaf0] sm:$0x77]  ;;  %v1800_v4 = vld [vmem:[%s18736_s3 + $0xaf8] sm:$0x77]  ;;  %v15320_v5 = vcombine.low %v1601_v35, %v1797_v36 }
 0x490   :  { %v8563_v11 = vpop.f32.mrf.mxu1  ;;  %v8604_v12 = vpop.f32.mrf.mxu0  ;;  %15552 = vmatmul.mubr.msk.bf16.vlgmr.msra.gmra.mxu1 %vm3409_vm9, %v16422_v19  ;;  %15553 = vmatmul.mubr.msk.bf16.vlgmr.msra.gmra.mxu0 %vm3409_vm9, %v16422_v19  ;;  %v15325_v9 = vcombine.high %v1603_v62, %v1799_v63 }
 0x491   :  { %14832 = vst [vmem:[#allocation2 + $0x178] sm:$0xff] %v13836_v6  ;;  %10594 = vmatpush1.bf16.msra.mxu1 %v4294_v1  ;;  %10635 = vmatpush1.bf16.msra.mxu0 %v4300_v3  ;;  %v1604_v3 = vld [vmem:[%s18736_s3 + $0x4d8] sm:$0xff]  ;;  %v15322_v6 = vcombine.low %v1602_v39, %v1798_v40 }
 0x492   :  { %v8565_v17 = vpop.f32.mrf.mxu1  ;;  %v8606_v18 = vpop.f32.mrf.mxu0  ;;  %10611 = vmatprep.mubr.bf16.mxu1 %v15948_v2  ;;  %10652 = vmatprep.mubr.bf16.mxu0 %v15948_v2  ;;  %v4345_v23 = vand.u32 %v15325_v9, %v16375_v26 }
 0x493   :  { %v13837_v21 = vcombine.low %v8563_v11, %v8565_v17  ;;  %v13838_v22 = vcombine.low %v8604_v12, %v8606_v18  ;;  %10675 = vmatprep.subr.bf16.mxu1 %v4309_v7  ;;  %10716 = vmatprep.subr.bf16.mxu0 %v4315_v8  ;;  %v15327_v12 = vcombine.high %v1604_v3, %v1800_v4 }
 0x494   :  { %v8567_v24 = vpop.f32.mrf.mxu1  ;;  %v8608_v25 = vpop.f32.mrf.mxu0  ;;  %v4330_v17 = vand.u32 %v15320_v5, %v16375_v26  ;;  %v4336_v18 = vand.u32 %v15322_v6, %v16375_v26 }
 0x495   :  { %v13845_v27 = vrot.slane %v13837_v21, %v16096_v42  ;;  %v13852_v28 = vrot.slane %v13838_v22, %v16096_v42  ;;  %v4351_v24 = vand.u32 %v15327_v12, %v16375_v26  ;;  %v1605_v25 = vld [vmem:[%s18736_s3 + $0x4e0] sm:$0xff] }
 0x496   :  { %v8568_v31 = vpop.f32.mrf.mxu1  ;;  %v8609_v32 = vpop.f32.mrf.mxu0 }
 0x497   :  { %v13853_v56 = vcombine.low %v13845_v27, %v13852_v28  ;;  %v1801_v27 = vld [vmem:[%s18736_s3 + $0xb00] sm:$0x77]  ;;  %v1802_v31 = vld [vmem:[%s18736_s3 + $0xb08] sm:$0x77]  ;;  %v15324_v32 = vcombine.low %v1603_v62, %v1799_v63 }
 0x498   :  { %v8645_v37 = vpop.f32.mrf.mxu1  ;;  %v8686_v38 = vpop.f32.mrf.mxu0  ;;  %15554 = vmatmul.mubr.msk.bf16.vlgmr.msra.gmra.mxu1 %vm3409_vm9, %v16422_v19  ;;  %15555 = vmatmul.mubr.msk.bf16.vlgmr.msra.gmra.mxu0 %vm3409_vm9, %v16422_v19  ;;  %v15329_v35 = vcombine.high %v1605_v25, %v1801_v27 }
 0x499   :  { %14833 = vst [vmem:[#allocation2 + $0x180] sm:$0xff] %v13853_v56  ;;  %10676 = vmatpush1.bf16.msra.mxu1 %v4306_v29  ;;  %10717 = vmatpush1.bf16.msra.mxu0 %v4312_v30  ;;  %v1606_v30 = vld [vmem:[%s18736_s3 + $0x4e8] sm:$0xff]  ;;  %v15326_v56 = vcombine.low %v1604_v3, %v1800_v4 }
 0x49a   :  { %v8647_v44 = vpop.f32.mrf.mxu1  ;;  %v8688_v45 = vpop.f32.mrf.mxu0  ;;  %10693 = vmatprep.mubr.bf16.mxu1 %v15948_v2  ;;  %10734 = vmatprep.mubr.bf16.mxu0 %v15948_v2  ;;  %v4357_v49 = vand.u32 %v15329_v35, %v16375_v26 }
 0x49b   :  { %v13854_v47 = vcombine.low %v8645_v37, %v8647_v44  ;;  %v13855_v48 = vcombine.low %v8686_v38, %v8688_v45  ;;  %10757 = vmatprep.subr.bf16.mxu1 %v4321_v33  ;;  %10798 = vmatprep.subr.bf16.mxu0 %v4327_v34  ;;  %v15331_v38 = vcombine.high %v1606_v30, %v1802_v31 }
 0x49c   :  { %v8649_v50 = vpop.f32.mrf.mxu1  ;;  %v8690_v51 = vpop.f32.mrf.mxu0  ;;  %v4342_v44 = vand.u32 %v15324_v32, %v16375_v26  ;;  %v4348_v45 = vand.u32 %v15326_v56, %v16375_v26 }
 0x49d   :  { %v13862_v52 = vrot.slane %v13854_v47, %v16096_v42  ;;  %v13869_v53 = vrot.slane %v13855_v48, %v16096_v42  ;;  %v4363_v50 = vand.u32 %v15331_v38, %v16375_v26  ;;  %v1607_v51 = vld [vmem:[%s18736_s3 + $0x4f0] sm:$0xff] }
 0x49e   :  { %v8650_v57 = vpop.f32.mrf.mxu1  ;;  %v8691_v58 = vpop.f32.mrf.mxu0 }
 0x49f   :  { %v13870_v59 = vcombine.low %v13862_v52, %v13869_v53  ;;  %v1803_v52 = vld [vmem:[%s18736_s3 + $0xb10] sm:$0x77]  ;;  %v1804_v57 = vld [vmem:[%s18736_s3 + $0xb18] sm:$0x77]  ;;  %v15328_v58 = vcombine.low %v1605_v25, %v1801_v27 }
 0x4a0   :  { %v8727_v0 = vpop.f32.mrf.mxu1  ;;  %v8768_v1 = vpop.f32.mrf.mxu0  ;;  %15556 = vmatmul.mubr.msk.bf16.vlgmr.msra.gmra.mxu1 %vm3409_vm9, %v16422_v19  ;;  %15557 = vmatmul.mubr.msk.bf16.vlgmr.msra.gmra.mxu0 %vm3409_vm9, %v16422_v19  ;;  %v15333_v62 = vcombine.high %v1607_v51, %v1803_v52 }
 0x4a1   :  { %14834 = vst [vmem:[#allocation2 + $0x188] sm:$0xff] %v13870_v59  ;;  %10758 = vmatpush1.bf16.msra.mxu1 %v4318_v54  ;;  %10799 = vmatpush1.bf16.msra.mxu0 %v4324_v55  ;;  %v1608_v55 = vld [vmem:[%s18736_s3 + $0x4f8] sm:$0xff]  ;;  %v15330_v59 = vcombine.low %v1606_v30, %v1802_v31 }
 0x4a2   :  { %v8729_v7 = vpop.f32.mrf.mxu1  ;;  %v8770_v8 = vpop.f32.mrf.mxu0  ;;  %10775 = vmatprep.mubr.bf16.mxu1 %v15948_v2  ;;  %10816 = vmatprep.mubr.bf16.mxu0 %v15948_v2  ;;  %v4369_v12 = vand.u32 %v15333_v62, %v16375_v26 }
 0x4a3   :  { %v13871_v10 = vcombine.low %v8727_v0, %v8729_v7  ;;  %v13872_v11 = vcombine.low %v8768_v1, %v8770_v8  ;;  %10839 = vmatprep.subr.bf16.mxu1 %v4333_v60  ;;  %10880 = vmatprep.subr.bf16.mxu0 %v4339_v61  ;;  %v15335_v1 = vcombine.high %v1608_v55, %v1804_v57 }
 0x4a4   :  { %v8731_v13 = vpop.f32.mrf.mxu1  ;;  %v8772_v14 = vpop.f32.mrf.mxu0  ;;  %v4354_v7 = vand.u32 %v15328_v58, %v16375_v26  ;;  %v4360_v8 = vand.u32 %v15330_v59, %v16375_v26 }
 0x4a5   :  { %v13879_v15 = vrot.slane %v13871_v10, %v16096_v42  ;;  %v13886_v16 = vrot.slane %v13872_v11, %v16096_v42  ;;  %v4375_v13 = vand.u32 %v15335_v1, %v16375_v26  ;;  %v1609_v14 = vld [vmem:[%s18736_s3 + $0x500] sm:$0xff] }
 0x4a6   :  { %v8732_v20 = vpop.f32.mrf.mxu1  ;;  %v8773_v21 = vpop.f32.mrf.mxu0 }
 0x4a7   :  { %v13887_v22 = vcombine.low %v13879_v15, %v13886_v16  ;;  %v1805_v15 = vld [vmem:[%s18736_s3 + $0xb20] sm:$0x77]  ;;  %v1806_v20 = vld [vmem:[%s18736_s3 + $0xb28] sm:$0x77]  ;;  %v15332_v21 = vcombine.low %v1607_v51, %v1803_v52 }
 0x4a8   :  { %v8809_v28 = vpop.f32.mrf.mxu1  ;;  %v8850_v29 = vpop.f32.mrf.mxu0  ;;  %15558 = vmatmul.mubr.msk.bf16.vlgmr.msra.gmra.mxu1 %vm3409_vm9, %v16422_v19  ;;  %15559 = vmatmul.mubr.msk.bf16.vlgmr.msra.gmra.mxu0 %vm3409_vm9, %v16422_v19  ;;  %v15337_v25 = vcombine.high %v1609_v14, %v1805_v15 }
 0x4a9   :  { %14835 = vst [vmem:[#allocation2 + $0x190] sm:$0xff] %v13887_v22  ;;  %10840 = vmatpush1.bf16.msra.mxu1 %v4330_v17  ;;  %10881 = vmatpush1.bf16.msra.mxu0 %v4336_v18  ;;  %v1610_v18 = vld [vmem:[%s18736_s3 + $0x508] sm:$0xff]  ;;  %v15334_v22 = vcombine.low %v1608_v55, %v1804_v57 }
 0x4aa   :  { %v8811_v33 = vpop.f32.mrf.mxu1  ;;  %v8852_v34 = vpop.f32.mrf.mxu0  ;;  %10857 = vmatprep.mubr.bf16.mxu1 %v15948_v2  ;;  %10898 = vmatprep.mubr.bf16.mxu0 %v15948_v2  ;;  %v4381_v38 = vand.u32 %v15337_v25, %v16375_v26 }
 0x4ab   :  { %v13888_v36 = vcombine.low %v8809_v28, %v8811_v33  ;;  %v13889_v37 = vcombine.low %v8850_v29, %v8852_v34  ;;  %10921 = vmatprep.subr.bf16.mxu1 %v4345_v23  ;;  %10962 = vmatprep.subr.bf16.mxu0 %v4351_v24  ;;  %v15339_v29 = vcombine.high %v1610_v18, %v1806_v20 }
 0x4ac   :  { %v8813_v39 = vpop.f32.mrf.mxu1  ;;  %v8854_v40 = vpop.f32.mrf.mxu0  ;;  %v4366_v33 = vand.u32 %v15332_v21, %v16375_v26  ;;  %v4372_v34 = vand.u32 %v15334_v22, %v16375_v26 }
 0x4ad   :  { %v13896_v41 = vrot.slane %v13888_v36, %v16096_v42  ;;  %v13903_v43 = vrot.slane %v13889_v37, %v16096_v42  ;;  %v4387_v39 = vand.u32 %v15339_v29, %v16375_v26  ;;  %v1611_v40 = vld [vmem:[%s18736_s3 + $0x510] sm:$0xff] }
 0x4ae   :  { %v8814_v46 = vpop.f32.mrf.mxu1  ;;  %v8855_v47 = vpop.f32.mrf.mxu0 }
 0x4af   :  { %v13904_v48 = vcombine.low %v13896_v41, %v13903_v43  ;;  %v1807_v41 = vld [vmem:[%s18736_s3 + $0xb30] sm:$0x77]  ;;  %v1808_v46 = vld [vmem:[%s18736_s3 + $0xb38] sm:$0x77]  ;;  %v15336_v47 = vcombine.low %v1609_v14, %v1805_v15 }
 0x4b0   :  { %v8891_v53 = vpop.f32.mrf.mxu1  ;;  %v8932_v54 = vpop.f32.mrf.mxu0  ;;  %15560 = vmatmul.mubr.msk.bf16.vlgmr.msra.gmra.mxu1 %vm3409_vm9, %v16422_v19  ;;  %15561 = vmatmul.mubr.msk.bf16.vlgmr.msra.gmra.mxu0 %vm3409_vm9, %v16422_v19  ;;  %v15341_v51 = vcombine.high %v1611_v40, %v1807_v41 }
 0x4b1   :  { %14836 = vst [vmem:[#allocation2 + $0x198] sm:$0xff] %v13904_v48  ;;  %10922 = vmatpush1.bf16.msra.mxu1 %v4342_v44  ;;  %10963 = vmatpush1.bf16.msra.mxu0 %v4348_v45  ;;  %v1612_v45 = vld [vmem:[%s18736_s3 + $0x518] sm:$0xff]  ;;  %v15338_v48 = vcombine.low %v1610_v18, %v1806_v20 }
 0x4b2   :  { %v8893_v60 = vpop.f32.mrf.mxu1  ;;  %v8934_v61 = vpop.f32.mrf.mxu0  ;;  %10939 = vmatprep.mubr.bf16.mxu1 %v15948_v2  ;;  %10980 = vmatprep.mubr.bf16.mxu0 %v15948_v2  ;;  %v4393_v1 = vand.u32 %v15341_v51, %v16375_v26 }
 0x4b3   :  { %v13905_v63 = vcombine.low %v8891_v53, %v8893_v60  ;;  %v13906_v0 = vcombine.low %v8932_v54, %v8934_v61  ;;  %11003 = vmatprep.subr.bf16.mxu1 %v4357_v49  ;;  %11044 = vmatprep.subr.bf16.mxu0 %v4363_v50  ;;  %v15343_v54 = vcombine.high %v1612_v45, %v1808_v46 }
 0x4b4   :  { %v8895_v3 = vpop.f32.mrf.mxu1  ;;  %v8936_v4 = vpop.f32.mrf.mxu0  ;;  %v4378_v60 = vand.u32 %v15336_v47, %v16375_v26  ;;  %v4384_v61 = vand.u32 %v15338_v48, %v16375_v26 }
 0x4b5   :  { %v13913_v5 = vrot.slane %v13905_v63, %v16096_v42  ;;  %v13920_v6 = vrot.slane %v13906_v0, %v16096_v42  ;;  %v4399_v3 = vand.u32 %v15343_v54, %v16375_v26  ;;  %v1613_v4 = vld [vmem:[%s18736_s3 + $0x520] sm:$0xff] }
 0x4b6   :  { %v8896_v9 = vpop.f32.mrf.mxu1  ;;  %v8937_v10 = vpop.f32.mrf.mxu0 }
 0x4b7   :  { %v13921_v11 = vcombine.low %v13913_v5, %v13920_v6  ;;  %v1809_v5 = vld [vmem:[%s18736_s3 + $0xb40] sm:$0x77]  ;;  %v1810_v9 = vld [vmem:[%s18736_s3 + $0xb48] sm:$0x77]  ;;  %v15340_v10 = vcombine.low %v1611_v40, %v1807_v41 }
 0x4b8   :  { %v8973_v16 = vpop.f32.mrf.mxu1  ;;  %v9014_v17 = vpop.f32.mrf.mxu0  ;;  %15562 = vmatmul.mubr.msk.bf16.vlgmr.msra.gmra.mxu1 %vm3409_vm9, %v16422_v19  ;;  %15563 = vmatmul.mubr.msk.bf16.vlgmr.msra.gmra.mxu0 %vm3409_vm9, %v16422_v19  ;;  %v15345_v14 = vcombine.high %v1613_v4, %v1809_v5 }
 0x4b9   :  { %14837 = vst [vmem:[#allocation2 + $0x1a0] sm:$0xff] %v13921_v11  ;;  %11004 = vmatpush1.bf16.msra.mxu1 %v4354_v7  ;;  %11045 = vmatpush1.bf16.msra.mxu0 %v4360_v8  ;;  %v1614_v8 = vld [vmem:[%s18736_s3 + $0x528] sm:$0xff]  ;;  %v15342_v11 = vcombine.low %v1612_v45, %v1808_v46 }
 0x4ba   :  { %v8975_v23 = vpop.f32.mrf.mxu1  ;;  %v9016_v24 = vpop.f32.mrf.mxu0  ;;  %11021 = vmatprep.mubr.bf16.mxu1 %v15948_v2  ;;  %11062 = vmatprep.mubr.bf16.mxu0 %v15948_v2  ;;  %v4405_v29 = vand.u32 %v15345_v14, %v16375_v26 }
 0x4bb   :  { %v13922_v27 = vcombine.low %v8973_v16, %v8975_v23  ;;  %v13923_v28 = vcombine.low %v9014_v17, %v9016_v24  ;;  %11085 = vmatprep.subr.bf16.mxu1 %v4369_v12  ;;  %11126 = vmatprep.subr.bf16.mxu0 %v4375_v13  ;;  %v15347_v17 = vcombine.high %v1614_v8, %v1810_v9 }
 0x4bc   :  { %v8977_v30 = vpop.f32.mrf.mxu1  ;;  %v9018_v31 = vpop.f32.mrf.mxu0  ;;  %v4390_v23 = vand.u32 %v15340_v10, %v16375_v26  ;;  %v4396_v24 = vand.u32 %v15342_v11, %v16375_v26 }
 0x4bd   :  { %v13930_v32 = vrot.slane %v13922_v27, %v16096_v42  ;;  %v13937_v56 = vrot.slane %v13923_v28, %v16096_v42  ;;  %v4411_v30 = vand.u32 %v15347_v17, %v16375_v26  ;;  %v1615_v31 = vld [vmem:[%s18736_s3 + $0x530] sm:$0xff] }
 0x4be   :  { %v8978_v35 = vpop.f32.mrf.mxu1  ;;  %v9019_v36 = vpop.f32.mrf.mxu0 }
 0x4bf   :  { %v13938_v37 = vcombine.low %v13930_v32, %v13937_v56  ;;  %v1811_v32 = vld [vmem:[%s18736_s3 + $0xb50] sm:$0x77]  ;;  %v1812_v35 = vld [vmem:[%s18736_s3 + $0xb58] sm:$0x77]  ;;  %v15344_v36 = vcombine.low %v1613_v4, %v1809_v5 }
 0x4c0   :  { %v9055_v43 = vpop.f32.mrf.mxu1  ;;  %v9096_v44 = vpop.f32.mrf.mxu0  ;;  %15564 = vmatmul.mubr.msk.bf16.vlgmr.msra.gmra.mxu1 %vm3409_vm9, %v16422_v19  ;;  %15565 = vmatmul.mubr.msk.bf16.vlgmr.msra.gmra.mxu0 %vm3409_vm9, %v16422_v19  ;;  %v15349_v40 = vcombine.high %v1615_v31, %v1811_v32 }
 0x4c1   :  { %14838 = vst [vmem:[#allocation2 + $0x1a8] sm:$0xff] %v13938_v37  ;;  %11086 = vmatpush1.bf16.msra.mxu1 %v4366_v33  ;;  %11127 = vmatpush1.bf16.msra.mxu0 %v4372_v34  ;;  %v1616_v34 = vld [vmem:[%s18736_s3 + $0x538] sm:$0xff]  ;;  %v15346_v37 = vcombine.low %v1614_v8, %v1810_v9 }
 0x4c2   :  { %v9057_v49 = vpop.f32.mrf.mxu1  ;;  %v9098_v50 = vpop.f32.mrf.mxu0  ;;  %11103 = vmatprep.mubr.bf16.mxu1 %v15948_v2  ;;  %11144 = vmatprep.mubr.bf16.mxu0 %v15948_v2  ;;  %v4417_v54 = vand.u32 %v15349_v40, %v16375_v26 }
 0x4c3   :  { %v13939_v52 = vcombine.low %v9055_v43, %v9057_v49  ;;  %v13940_v53 = vcombine.low %v9096_v44, %v9098_v50  ;;  %11167 = vmatprep.subr.bf16.mxu1 %v4381_v38  ;;  %11208 = vmatprep.subr.bf16.mxu0 %v4387_v39  ;;  %v15351_v44 = vcombine.high %v1616_v34, %v1812_v35 }
 0x4c4   :  { %v9059_v55 = vpop.f32.mrf.mxu1  ;;  %v9100_v57 = vpop.f32.mrf.mxu0  ;;  %v4402_v49 = vand.u32 %v15344_v36, %v16375_v26  ;;  %v4408_v50 = vand.u32 %v15346_v37, %v16375_v26 }
 0x4c5   :  { %v13947_v58 = vrot.slane %v13939_v52, %v16096_v42  ;;  %v13954_v59 = vrot.slane %v13940_v53, %v16096_v42  ;;  %v4423_v55 = vand.u32 %v15351_v44, %v16375_v26  ;;  %v1617_v57 = vld [vmem:[%s18736_s3 + $0x540] sm:$0xff] }
 0x4c6   :  { %v9060_v62 = vpop.f32.mrf.mxu1  ;;  %v9101_v63 = vpop.f32.mrf.mxu0 }
 0x4c7   :  { %v13955_v0 = vcombine.low %v13947_v58, %v13954_v59  ;;  %v1813_v58 = vld [vmem:[%s18736_s3 + $0xb60] sm:$0x77]  ;;  %v1814_v62 = vld [vmem:[%s18736_s3 + $0xb68] sm:$0x77]  ;;  %v15348_v63 = vcombine.low %v1615_v31, %v1811_v32 }
 0x4c8   :  { %v9137_v6 = vpop.f32.mrf.mxu1  ;;  %v9178_v7 = vpop.f32.mrf.mxu0  ;;  %15566 = vmatmul.mubr.msk.bf16.vlgmr.msra.gmra.mxu1 %vm3409_vm9, %v16422_v19  ;;  %15567 = vmatmul.mubr.msk.bf16.vlgmr.msra.gmra.mxu0 %vm3409_vm9, %v16422_v19  ;;  %v15353_v4 = vcombine.high %v1617_v57, %v1813_v58 }
 0x4c9   :  { %14839 = vst [vmem:[#allocation2 + $0x1b0] sm:$0xff] %v13955_v0  ;;  %11168 = vmatpush1.bf16.msra.mxu1 %v4378_v60  ;;  %11209 = vmatpush1.bf16.msra.mxu0 %v4384_v61  ;;  %v1618_v61 = vld [vmem:[%s18736_s3 + $0x548] sm:$0xff]  ;;  %v15350_v0 = vcombine.low %v1616_v34, %v1812_v35 }
 0x4ca   :  { %v9139_v12 = vpop.f32.mrf.mxu1  ;;  %v9180_v13 = vpop.f32.mrf.mxu0  ;;  %11185 = vmatprep.mubr.bf16.mxu1 %v15948_v2  ;;  %11226 = vmatprep.mubr.bf16.mxu0 %v15948_v2  ;;  %v4429_v17 = vand.u32 %v15353_v4, %v16375_v26 }
 0x4cb   :  { %v13956_v15 = vcombine.low %v9137_v6, %v9139_v12  ;;  %v13957_v16 = vcombine.low %v9178_v7, %v9180_v13  ;;  %11249 = vmatprep.subr.bf16.mxu1 %v4393_v1  ;;  %11290 = vmatprep.subr.bf16.mxu0 %v4399_v3  ;;  %v15355_v7 = vcombine.high %v1618_v61, %v1814_v62 }
 0x4cc   :  { %v9141_v18 = vpop.f32.mrf.mxu1  ;;  %v9182_v20 = vpop.f32.mrf.mxu0  ;;  %v4414_v12 = vand.u32 %v15348_v63, %v16375_v26  ;;  %v4420_v13 = vand.u32 %v15350_v0, %v16375_v26 }
 0x4cd   :  { %v13964_v21 = vrot.slane %v13956_v15, %v16096_v42  ;;  %v13971_v22 = vrot.slane %v13957_v16, %v16096_v42  ;;  %v4435_v18 = vand.u32 %v15355_v7, %v16375_v26  ;;  %v1619_v20 = vld [vmem:[%s18736_s3 + $0x550] sm:$0xff] }
 0x4ce   :  { %v9142_v25 = vpop.f32.mrf.mxu1  ;;  %v9183_v27 = vpop.f32.mrf.mxu0 }
 0x4cf   :  { %v13972_v28 = vcombine.low %v13964_v21, %v13971_v22  ;;  %v1815_v21 = vld [vmem:[%s18736_s3 + $0xb70] sm:$0x77]  ;;  %v1816_v25 = vld [vmem:[%s18736_s3 + $0xb78] sm:$0x77]  ;;  %v15352_v27 = vcombine.low %v1617_v57, %v1813_v58 }
 0x4d0   :  { %v9219_v56 = vpop.f32.mrf.mxu1  ;;  %v9260_v33 = vpop.f32.mrf.mxu0  ;;  %15568 = vmatmul.mubr.msk.bf16.vlgmr.msra.gmra.mxu1 %vm3409_vm9, %v16422_v19  ;;  %15569 = vmatmul.mubr.msk.bf16.vlgmr.msra.gmra.mxu0 %vm3409_vm9, %v16422_v19  ;;  %v15357_v31 = vcombine.high %v1619_v20, %v1815_v21 }
 0x4d1   :  { %14840 = vst [vmem:[#allocation2 + $0x1b8] sm:$0xff] %v13972_v28  ;;  %11250 = vmatpush1.bf16.msra.mxu1 %v4390_v23  ;;  %11291 = vmatpush1.bf16.msra.mxu0 %v4396_v24  ;;  %v1620_v24 = vld [vmem:[%s18736_s3 + $0x558] sm:$0xff]  ;;  %v15354_v28 = vcombine.low %v1618_v61, %v1814_v62 }
 0x4d2   :  { %v9221_v38 = vpop.f32.mrf.mxu1  ;;  %v9262_v39 = vpop.f32.mrf.mxu0  ;;  %11267 = vmatprep.mubr.bf16.mxu1 %v15948_v2  ;;  %11308 = vmatprep.mubr.bf16.mxu0 %v15948_v2  ;;  %v4441_v44 = vand.u32 %v15357_v31, %v16375_v26 }
 0x4d3   :  { %v13973_v41 = vcombine.low %v9219_v56, %v9221_v38  ;;  %v13974_v43 = vcombine.low %v9260_v33, %v9262_v39  ;;  %11331 = vmatprep.subr.bf16.mxu1 %v4405_v29  ;;  %11372 = vmatprep.subr.bf16.mxu0 %v4411_v30  ;;  %v15359_v33 = vcombine.high %v1620_v24, %v1816_v25 }
 0x4d4   :  { %v9223_v45 = vpop.f32.mrf.mxu1  ;;  %v9264_v46 = vpop.f32.mrf.mxu0  ;;  %v4426_v38 = vand.u32 %v15352_v27, %v16375_v26  ;;  %v4432_v39 = vand.u32 %v15354_v28, %v16375_v26 }
 0x4d5   :  { %v13981_v47 = vrot.slane %v13973_v41, %v16096_v42  ;;  %v13988_v48 = vrot.slane %v13974_v43, %v16096_v42  ;;  %v4447_v45 = vand.u32 %v15359_v33, %v16375_v26  ;;  %v1621_v46 = vld [vmem:[%s18736_s3 + $0x560] sm:$0xff] }
 0x4d6   :  { %v9224_v51 = vpop.f32.mrf.mxu1  ;;  %v9265_v52 = vpop.f32.mrf.mxu0 }
 0x4d7   :  { %v13989_v53 = vcombine.low %v13981_v47, %v13988_v48  ;;  %v1817_v47 = vld [vmem:[%s18736_s3 + $0xb80] sm:$0x77]  ;;  %v1818_v51 = vld [vmem:[%s18736_s3 + $0xb88] sm:$0x77]  ;;  %v15356_v52 = vcombine.low %v1619_v20, %v1815_v21 }
 0x4d8   :  { %v9301_v59 = vpop.f32.mrf.mxu1  ;;  %v9342_v60 = vpop.f32.mrf.mxu0  ;;  %15570 = vmatmul.mubr.msk.bf16.vlgmr.msra.gmra.mxu1 %vm3409_vm9, %v16422_v19  ;;  %15571 = vmatmul.mubr.msk.bf16.vlgmr.msra.gmra.mxu0 %vm3409_vm9, %v16422_v19  ;;  %v15361_v57 = vcombine.high %v1621_v46, %v1817_v47 }
 0x4d9   :  { %14841 = vst [vmem:[#allocation2 + $0x1c0] sm:$0xff] %v13989_v53  ;;  %11332 = vmatpush1.bf16.msra.mxu1 %v4402_v49  ;;  %11373 = vmatpush1.bf16.msra.mxu0 %v4408_v50  ;;  %v1622_v50 = vld [vmem:[%s18736_s3 + $0x568] sm:$0xff]  ;;  %v15358_v53 = vcombine.low %v1620_v24, %v1816_v25 }
 0x4da   :  { %v9303_v1 = vpop.f32.mrf.mxu1  ;;  %v9344_v3 = vpop.f32.mrf.mxu0  ;;  %11349 = vmatprep.mubr.bf16.mxu1 %v15948_v2  ;;  %11390 = vmatprep.mubr.bf16.mxu0 %v15948_v2  ;;  %v4453_v7 = vand.u32 %v15361_v57, %v16375_v26 }
 0x4db   :  { %v13990_v5 = vcombine.low %v9301_v59, %v9303_v1  ;;  %v13991_v6 = vcombine.low %v9342_v60, %v9344_v3  ;;  %11413 = vmatprep.subr.bf16.mxu1 %v4417_v54  ;;  %11454 = vmatprep.subr.bf16.mxu0 %v4423_v55  ;;  %v15363_v60 = vcombine.high %v1622_v50, %v1818_v51 }
 0x4dc   :  { %v9305_v8 = vpop.f32.mrf.mxu1  ;;  %v9346_v9 = vpop.f32.mrf.mxu0  ;;  %v4438_v1 = vand.u32 %v15356_v52, %v16375_v26  ;;  %v4444_v3 = vand.u32 %v15358_v53, %v16375_v26 }
 0x4dd   :  { %v13998_v10 = vrot.slane %v13990_v5, %v16096_v42  ;;  %v14005_v11 = vrot.slane %v13991_v6, %v16096_v42  ;;  %v4459_v8 = vand.u32 %v15363_v60, %v16375_v26  ;;  %v1623_v9 = vld [vmem:[%s18736_s3 + $0x570] sm:$0xff] }
 0x4de   :  { %v9306_v14 = vpop.f32.mrf.mxu1  ;;  %v9347_v15 = vpop.f32.mrf.mxu0 }
 0x4df   :  { %v14006_v16 = vcombine.low %v13998_v10, %v14005_v11  ;;  %v1819_v10 = vld [vmem:[%s18736_s3 + $0xb90] sm:$0x77]  ;;  %v1820_v14 = vld [vmem:[%s18736_s3 + $0xb98] sm:$0x77]  ;;  %v15360_v15 = vcombine.low %v1621_v46, %v1817_v47 }
 0x4e0   :  { %v9383_v22 = vpop.f32.mrf.mxu1  ;;  %v9424_v23 = vpop.f32.mrf.mxu0  ;;  %15572 = vmatmul.mubr.msk.bf16.vlgmr.msra.gmra.mxu1 %vm3409_vm9, %v16422_v19  ;;  %15573 = vmatmul.mubr.msk.bf16.vlgmr.msra.gmra.mxu0 %vm3409_vm9, %v16422_v19  ;;  %v15365_v20 = vcombine.high %v1623_v9, %v1819_v10 }
 0x4e1   :  { %14842 = vst [vmem:[#allocation2 + $0x1c8] sm:$0xff] %v14006_v16  ;;  %11414 = vmatpush1.bf16.msra.mxu1 %v4414_v12  ;;  %11455 = vmatpush1.bf16.msra.mxu0 %v4420_v13  ;;  %v1624_v13 = vld [vmem:[%s18736_s3 + $0x578] sm:$0xff]  ;;  %v15362_v16 = vcombine.low %v1622_v50, %v1818_v51 }
 0x4e2   :  { %v9385_v29 = vpop.f32.mrf.mxu1  ;;  %v9426_v30 = vpop.f32.mrf.mxu0  ;;  %11431 = vmatprep.mubr.bf16.mxu1 %v15948_v2  ;;  %11472 = vmatprep.mubr.bf16.mxu0 %v15948_v2  ;;  %v4465_v33 = vand.u32 %v15365_v20, %v16375_v26 }
 0x4e3   :  { %v14007_v32 = vcombine.low %v9383_v22, %v9385_v29  ;;  %v14008_v56 = vcombine.low %v9424_v23, %v9426_v30  ;;  %11495 = vmatprep.subr.bf16.mxu1 %v4429_v17  ;;  %11536 = vmatprep.subr.bf16.mxu0 %v4435_v18  ;;  %v15367_v23 = vcombine.high %v1624_v13, %v1820_v14 }
 0x4e4   :  { %v9387_v34 = vpop.f32.mrf.mxu1  ;;  %v9428_v35 = vpop.f32.mrf.mxu0  ;;  %v4450_v29 = vand.u32 %v15360_v15, %v16375_v26  ;;  %v4456_v30 = vand.u32 %v15362_v16, %v16375_v26 }
 0x4e5   :  { %v14015_v36 = vrot.slane %v14007_v32, %v16096_v42  ;;  %v14022_v37 = vrot.slane %v14008_v56, %v16096_v42  ;;  %v4471_v34 = vand.u32 %v15367_v23, %v16375_v26  ;;  %v1625_v35 = vld [vmem:[%s18736_s3 + $0x580] sm:$0xff] }
 0x4e6   :  { %v9388_v40 = vpop.f32.mrf.mxu1  ;;  %v9429_v41 = vpop.f32.mrf.mxu0 }
 0x4e7   :  { %v14023_v43 = vcombine.low %v14015_v36, %v14022_v37  ;;  %v1821_v36 = vld [vmem:[%s18736_s3 + $0xba0] sm:$0x77]  ;;  %v1822_v40 = vld [vmem:[%s18736_s3 + $0xba8] sm:$0x77]  ;;  %v15364_v41 = vcombine.low %v1623_v9, %v1819_v10 }
 0x4e8   :  { %v9465_v48 = vpop.f32.mrf.mxu1  ;;  %v9506_v49 = vpop.f32.mrf.mxu0  ;;  %15574 = vmatmul.mubr.msk.bf16.vlgmr.msra.gmra.mxu1 %vm3409_vm9, %v16422_v19  ;;  %15575 = vmatmul.mubr.msk.bf16.vlgmr.msra.gmra.mxu0 %vm3409_vm9, %v16422_v19  ;;  %v15369_v46 = vcombine.high %v1625_v35, %v1821_v36 }
 0x4e9   :  { %14843 = vst [vmem:[#allocation2 + $0x1d0] sm:$0xff] %v14023_v43  ;;  %11496 = vmatpush1.bf16.msra.mxu1 %v4426_v38  ;;  %11537 = vmatpush1.bf16.msra.mxu0 %v4432_v39  ;;  %v1626_v39 = vld [vmem:[%s18736_s3 + $0x588] sm:$0xff]  ;;  %v15366_v43 = vcombine.low %v1624_v13, %v1820_v14 }
 0x4ea   :  { %v9467_v54 = vpop.f32.mrf.mxu1  ;;  %v9508_v55 = vpop.f32.mrf.mxu0  ;;  %11513 = vmatprep.mubr.bf16.mxu1 %v15948_v2  ;;  %11554 = vmatprep.mubr.bf16.mxu0 %v15948_v2  ;;  %v4477_v60 = vand.u32 %v15369_v46, %v16375_v26 }
 0x4eb   :  { %v14024_v58 = vcombine.low %v9465_v48, %v9467_v54  ;;  %v14025_v59 = vcombine.low %v9506_v49, %v9508_v55  ;;  %11577 = vmatprep.subr.bf16.mxu1 %v4441_v44  ;;  %11618 = vmatprep.subr.bf16.mxu0 %v4447_v45  ;;  %v15371_v49 = vcombine.high %v1626_v39, %v1822_v40 }
 0x4ec   :  { %v9469_v61 = vpop.f32.mrf.mxu1  ;;  %v9510_v62 = vpop.f32.mrf.mxu0  ;;  %v4462_v54 = vand.u32 %v15364_v41, %v16375_v26  ;;  %v4468_v55 = vand.u32 %v15366_v43, %v16375_v26 }
 0x4ed   :  { %v14032_v63 = vrot.slane %v14024_v58, %v16096_v42  ;;  %v14039_v0 = vrot.slane %v14025_v59, %v16096_v42  ;;  %v4483_v61 = vand.u32 %v15371_v49, %v16375_v26  ;;  %v1627_v62 = vld [vmem:[%s18736_s3 + $0x590] sm:$0xff] }
 0x4ee   :  { %v9470_v4 = vpop.f32.mrf.mxu1  ;;  %v9511_v5 = vpop.f32.mrf.mxu0 }
 0x4ef   :  { %v14040_v6 = vcombine.low %v14032_v63, %v14039_v0  ;;  %v1823_v63 = vld [vmem:[%s18736_s3 + $0xbb0] sm:$0x77]  ;;  %v1824_v4 = vld [vmem:[%s18736_s3 + $0xbb8] sm:$0x77]  ;;  %v15368_v5 = vcombine.low %v1625_v35, %v1821_v36 }
 0x4f0   :  { %v9547_v11 = vpop.f32.mrf.mxu1  ;;  %v9588_v12 = vpop.f32.mrf.mxu0  ;;  %15576 = vmatmul.mubr.msk.bf16.vlgmr.msra.gmra.mxu1 %vm3409_vm9, %v16422_v19  ;;  %15577 = vmatmul.mubr.msk.bf16.vlgmr.msra.gmra.mxu0 %vm3409_vm9, %v16422_v19  ;;  %v15373_v9 = vcombine.high %v1627_v62, %v1823_v63 }
 0x4f1   :  { %14844 = vst [vmem:[#allocation2 + $0x1d8] sm:$0xff] %v14040_v6  ;;  %11578 = vmatpush1.bf16.msra.mxu1 %v4438_v1  ;;  %11619 = vmatpush1.bf16.msra.mxu0 %v4444_v3  ;;  %v1628_v3 = vld [vmem:[%s18736_s3 + $0x598] sm:$0xff]  ;;  %v15370_v6 = vcombine.low %v1626_v39, %v1822_v40 }
 0x4f2   :  { %v9549_v17 = vpop.f32.mrf.mxu1  ;;  %v9590_v18 = vpop.f32.mrf.mxu0  ;;  %11595 = vmatprep.mubr.bf16.mxu1 %v15948_v2  ;;  %11636 = vmatprep.mubr.bf16.mxu0 %v15948_v2  ;;  %v4489_v23 = vand.u32 %v15373_v9, %v16375_v26 }
 0x4f3   :  { %v14041_v21 = vcombine.low %v9547_v11, %v9549_v17  ;;  %v14042_v22 = vcombine.low %v9588_v12, %v9590_v18  ;;  %11659 = vmatprep.subr.bf16.mxu1 %v4453_v7  ;;  %11700 = vmatprep.subr.bf16.mxu0 %v4459_v8  ;;  %v15375_v12 = vcombine.high %v1628_v3, %v1824_v4 }
 0x4f4   :  { %v9551_v24 = vpop.f32.mrf.mxu1  ;;  %v9592_v25 = vpop.f32.mrf.mxu0  ;;  %v4474_v17 = vand.u32 %v15368_v5, %v16375_v26  ;;  %v4480_v18 = vand.u32 %v15370_v6, %v16375_v26 }
 0x4f5   :  { %v14049_v27 = vrot.slane %v14041_v21, %v16096_v42  ;;  %v14056_v28 = vrot.slane %v14042_v22, %v16096_v42  ;;  %v4495_v24 = vand.u32 %v15375_v12, %v16375_v26  ;;  %v1629_v25 = vld [vmem:[%s18736_s3 + $0x5a0] sm:$0xff] }
 0x4f6   :  { %v9552_v31 = vpop.f32.mrf.mxu1  ;;  %v9593_v32 = vpop.f32.mrf.mxu0 }
 0x4f7   :  { %v14057_v56 = vcombine.low %v14049_v27, %v14056_v28  ;;  %v1825_v27 = vld [vmem:[%s18736_s3 + $0xbc0] sm:$0x77]  ;;  %v1826_v31 = vld [vmem:[%s18736_s3 + $0xbc8] sm:$0x77]  ;;  %v15372_v32 = vcombine.low %v1627_v62, %v1823_v63 }
 0x4f8   :  { %v9629_v37 = vpop.f32.mrf.mxu1  ;;  %v9670_v38 = vpop.f32.mrf.mxu0  ;;  %15578 = vmatmul.mubr.msk.bf16.vlgmr.msra.gmra.mxu1 %vm3409_vm9, %v16422_v19  ;;  %15579 = vmatmul.mubr.msk.bf16.vlgmr.msra.gmra.mxu0 %vm3409_vm9, %v16422_v19  ;;  %v15377_v35 = vcombine.high %v1629_v25, %v1825_v27 }
 0x4f9   :  { %14845 = vst [vmem:[#allocation2 + $0x1e0] sm:$0xff] %v14057_v56  ;;  %11660 = vmatpush1.bf16.msra.mxu1 %v4450_v29  ;;  %11701 = vmatpush1.bf16.msra.mxu0 %v4456_v30  ;;  %v1630_v30 = vld [vmem:[%s18736_s3 + $0x5a8] sm:$0xff]  ;;  %v15374_v56 = vcombine.low %v1628_v3, %v1824_v4 }
 0x4fa   :  { %v9631_v44 = vpop.f32.mrf.mxu1  ;;  %v9672_v45 = vpop.f32.mrf.mxu0  ;;  %11677 = vmatprep.mubr.bf16.mxu1 %v15948_v2  ;;  %11718 = vmatprep.mubr.bf16.mxu0 %v15948_v2  ;;  %v4501_v49 = vand.u32 %v15377_v35, %v16375_v26 }
 0x4fb   :  { %v14058_v47 = vcombine.low %v9629_v37, %v9631_v44  ;;  %v14059_v48 = vcombine.low %v9670_v38, %v9672_v45  ;;  %11741 = vmatprep.subr.bf16.mxu1 %v4465_v33  ;;  %11782 = vmatprep.subr.bf16.mxu0 %v4471_v34  ;;  %v15379_v38 = vcombine.high %v1630_v30, %v1826_v31 }
 0x4fc   :  { %v9633_v50 = vpop.f32.mrf.mxu1  ;;  %v9674_v51 = vpop.f32.mrf.mxu0  ;;  %v4486_v44 = vand.u32 %v15372_v32, %v16375_v26  ;;  %v4492_v45 = vand.u32 %v15374_v56, %v16375_v26 }
 0x4fd   :  { %v14066_v52 = vrot.slane %v14058_v47, %v16096_v42  ;;  %v14073_v53 = vrot.slane %v14059_v48, %v16096_v42  ;;  %v4507_v50 = vand.u32 %v15379_v38, %v16375_v26  ;;  %v1631_v51 = vld [vmem:[%s18736_s3 + $0x5b0] sm:$0xff] }
 0x4fe   :  { %v9634_v57 = vpop.f32.mrf.mxu1  ;;  %v9675_v58 = vpop.f32.mrf.mxu0 }
 0x4ff   :  { %v14074_v59 = vcombine.low %v14066_v52, %v14073_v53  ;;  %v1827_v52 = vld [vmem:[%s18736_s3 + $0xbd0] sm:$0x77]  ;;  %v1828_v57 = vld [vmem:[%s18736_s3 + $0xbd8] sm:$0x77]  ;;  %v15376_v58 = vcombine.low %v1629_v25, %v1825_v27 }
 0x500   :  { %v9711_v0 = vpop.f32.mrf.mxu1  ;;  %v9752_v1 = vpop.f32.mrf.mxu0  ;;  %15580 = vmatmul.mubr.msk.bf16.vlgmr.msra.gmra.mxu1 %vm3409_vm9, %v16422_v19  ;;  %15581 = vmatmul.mubr.msk.bf16.vlgmr.msra.gmra.mxu0 %vm3409_vm9, %v16422_v19  ;;  %v15381_v62 = vcombine.high %v1631_v51, %v1827_v52 }
 0x501   :  { %14846 = vst [vmem:[#allocation2 + $0x1e8] sm:$0xff] %v14074_v59  ;;  %11742 = vmatpush1.bf16.msra.mxu1 %v4462_v54  ;;  %11783 = vmatpush1.bf16.msra.mxu0 %v4468_v55  ;;  %v1632_v55 = vld [vmem:[%s18736_s3 + $0x5b8] sm:$0xff]  ;;  %v15378_v59 = vcombine.low %v1630_v30, %v1826_v31 }
 0x502   :  { %v9713_v7 = vpop.f32.mrf.mxu1  ;;  %v9754_v8 = vpop.f32.mrf.mxu0  ;;  %11759 = vmatprep.mubr.bf16.mxu1 %v15948_v2  ;;  %11800 = vmatprep.mubr.bf16.mxu0 %v15948_v2  ;;  %v4513_v12 = vand.u32 %v15381_v62, %v16375_v26 }
 0x503   :  { %v14075_v10 = vcombine.low %v9711_v0, %v9713_v7  ;;  %v14076_v11 = vcombine.low %v9752_v1, %v9754_v8  ;;  %11823 = vmatprep.subr.bf16.mxu1 %v4477_v60  ;;  %11864 = vmatprep.subr.bf16.mxu0 %v4483_v61  ;;  %v15383_v1 = vcombine.high %v1632_v55, %v1828_v57 }
 0x504   :  { %v9715_v13 = vpop.f32.mrf.mxu1  ;;  %v9756_v14 = vpop.f32.mrf.mxu0  ;;  %v4498_v7 = vand.u32 %v15376_v58, %v16375_v26  ;;  %v4504_v8 = vand.u32 %v15378_v59, %v16375_v26 }
 0x505   :  { %v14083_v15 = vrot.slane %v14075_v10, %v16096_v42  ;;  %v14090_v16 = vrot.slane %v14076_v11, %v16096_v42  ;;  %v4519_v13 = vand.u32 %v15383_v1, %v16375_v26  ;;  %v1633_v14 = vld [vmem:[%s18736_s3 + $0x5c0] sm:$0xff] }
 0x506   :  { %v9716_v20 = vpop.f32.mrf.mxu1  ;;  %v9757_v21 = vpop.f32.mrf.mxu0 }
 0x507   :  { %v14091_v22 = vcombine.low %v14083_v15, %v14090_v16  ;;  %v1829_v15 = vld [vmem:[%s18736_s3 + $0xbe0] sm:$0x77]  ;;  %v1830_v20 = vld [vmem:[%s18736_s3 + $0xbe8] sm:$0x77]  ;;  %v15380_v21 = vcombine.low %v1631_v51, %v1827_v52 }
 0x508   :  { %v9793_v28 = vpop.f32.mrf.mxu1  ;;  %v9834_v29 = vpop.f32.mrf.mxu0  ;;  %15582 = vmatmul.mubr.msk.bf16.vlgmr.msra.gmra.mxu1 %vm3409_vm9, %v16422_v19  ;;  %15583 = vmatmul.mubr.msk.bf16.vlgmr.msra.gmra.mxu0 %vm3409_vm9, %v16422_v19  ;;  %v15385_v25 = vcombine.high %v1633_v14, %v1829_v15 }
 0x509   :  { %14847 = vst [vmem:[#allocation2 + $0x1f0] sm:$0xff] %v14091_v22  ;;  %11824 = vmatpush1.bf16.msra.mxu1 %v4474_v17  ;;  %11865 = vmatpush1.bf16.msra.mxu0 %v4480_v18  ;;  %v1634_v18 = vld [vmem:[%s18736_s3 + $0x5c8] sm:$0xff]  ;;  %v15382_v22 = vcombine.low %v1632_v55, %v1828_v57 }
 0x50a   :  { %v9795_v33 = vpop.f32.mrf.mxu1  ;;  %v9836_v34 = vpop.f32.mrf.mxu0  ;;  %11841 = vmatprep.mubr.bf16.mxu1 %v15948_v2  ;;  %11882 = vmatprep.mubr.bf16.mxu0 %v15948_v2  ;;  %v4525_v38 = vand.u32 %v15385_v25, %v16375_v26 }
 0x50b   :  { %v14092_v36 = vcombine.low %v9793_v28, %v9795_v33  ;;  %v14093_v37 = vcombine.low %v9834_v29, %v9836_v34  ;;  %11905 = vmatprep.subr.bf16.mxu1 %v4489_v23  ;;  %11946 = vmatprep.subr.bf16.mxu0 %v4495_v24  ;;  %v15387_v29 = vcombine.high %v1634_v18, %v1830_v20 }
 0x50c   :  { %v9797_v39 = vpop.f32.mrf.mxu1  ;;  %v9838_v40 = vpop.f32.mrf.mxu0  ;;  %v4510_v33 = vand.u32 %v15380_v21, %v16375_v26  ;;  %v4516_v34 = vand.u32 %v15382_v22, %v16375_v26 }
 0x50d   :  { %v14100_v41 = vrot.slane %v14092_v36, %v16096_v42  ;;  %v14107_v43 = vrot.slane %v14093_v37, %v16096_v42  ;;  %v4531_v39 = vand.u32 %v15387_v29, %v16375_v26  ;;  %v1635_v40 = vld [vmem:[%s18736_s3 + $0x5d0] sm:$0xff] }
 0x50e   :  { %v9798_v46 = vpop.f32.mrf.mxu1  ;;  %v9839_v47 = vpop.f32.mrf.mxu0 }
 0x50f   :  { %v14108_v48 = vcombine.low %v14100_v41, %v14107_v43  ;;  %v1831_v41 = vld [vmem:[%s18736_s3 + $0xbf0] sm:$0x77]  ;;  %v1832_v46 = vld [vmem:[%s18736_s3 + $0xbf8] sm:$0x77]  ;;  %v15384_v47 = vcombine.low %v1633_v14, %v1829_v15 }
 0x510   :  { %v9875_v53 = vpop.f32.mrf.mxu1  ;;  %v9916_v54 = vpop.f32.mrf.mxu0  ;;  %15584 = vmatmul.mubr.msk.bf16.vlgmr.msra.gmra.mxu1 %vm3409_vm9, %v16422_v19  ;;  %15585 = vmatmul.mubr.msk.bf16.vlgmr.msra.gmra.mxu0 %vm3409_vm9, %v16422_v19  ;;  %v15389_v51 = vcombine.high %v1635_v40, %v1831_v41 }
 0x511   :  { %14848 = vst [vmem:[#allocation2 + $0x1f8] sm:$0xff] %v14108_v48  ;;  %11906 = vmatpush1.bf16.msra.mxu1 %v4486_v44  ;;  %11947 = vmatpush1.bf16.msra.mxu0 %v4492_v45  ;;  %v1636_v45 = vld [vmem:[%s18736_s3 + $0x5d8] sm:$0xff]  ;;  %v15386_v48 = vcombine.low %v1634_v18, %v1830_v20 }
 0x512   :  { %v9877_v60 = vpop.f32.mrf.mxu1  ;;  %v9918_v61 = vpop.f32.mrf.mxu0  ;;  %11923 = vmatprep.mubr.bf16.mxu1 %v15948_v2  ;;  %11964 = vmatprep.mubr.bf16.mxu0 %v15948_v2  ;;  %v4537_v1 = vand.u32 %v15389_v51, %v16375_v26 }
 0x513   :  { %v14109_v63 = vcombine.low %v9875_v53, %v9877_v60  ;;  %v14110_v0 = vcombine.low %v9916_v54, %v9918_v61  ;;  %11987 = vmatprep.subr.bf16.mxu1 %v4501_v49  ;;  %12028 = vmatprep.subr.bf16.mxu0 %v4507_v50  ;;  %v15391_v54 = vcombine.high %v1636_v45, %v1832_v46 }
 0x514   :  { %v9879_v3 = vpop.f32.mrf.mxu1  ;;  %v9920_v4 = vpop.f32.mrf.mxu0  ;;  %v4522_v60 = vand.u32 %v15384_v47, %v16375_v26  ;;  %v4528_v61 = vand.u32 %v15386_v48, %v16375_v26 }
 0x515   :  { %v14117_v5 = vrot.slane %v14109_v63, %v16096_v42  ;;  %v14124_v6 = vrot.slane %v14110_v0, %v16096_v42  ;;  %v4543_v3 = vand.u32 %v15391_v54, %v16375_v26  ;;  %v1637_v4 = vld [vmem:[%s18736_s3 + $0x5e0] sm:$0xff] }
 0x516   :  { %v9880_v9 = vpop.f32.mrf.mxu1  ;;  %v9921_v10 = vpop.f32.mrf.mxu0 }
 0x517   :  { %v14125_v11 = vcombine.low %v14117_v5, %v14124_v6  ;;  %v1833_v5 = vld [vmem:[%s18736_s3 + $0xc00] sm:$0x77]  ;;  %v1834_v9 = vld [vmem:[%s18736_s3 + $0xc08] sm:$0x77]  ;;  %v15388_v10 = vcombine.low %v1635_v40, %v1831_v41 }
 0x518   :  { %v9957_v16 = vpop.f32.mrf.mxu1  ;;  %v9998_v17 = vpop.f32.mrf.mxu0  ;;  %15586 = vmatmul.mubr.msk.bf16.vlgmr.msra.gmra.mxu1 %vm3409_vm9, %v16422_v19  ;;  %15587 = vmatmul.mubr.msk.bf16.vlgmr.msra.gmra.mxu0 %vm3409_vm9, %v16422_v19  ;;  %v15393_v14 = vcombine.high %v1637_v4, %v1833_v5 }
 0x519   :  { %14849 = vst [vmem:[#allocation2 + $0x200] sm:$0xff] %v14125_v11  ;;  %11988 = vmatpush1.bf16.msra.mxu1 %v4498_v7  ;;  %12029 = vmatpush1.bf16.msra.mxu0 %v4504_v8  ;;  %v1638_v8 = vld [vmem:[%s18736_s3 + $0x5e8] sm:$0xff]  ;;  %v15390_v11 = vcombine.low %v1636_v45, %v1832_v46 }
 0x51a   :  { %v9959_v23 = vpop.f32.mrf.mxu1  ;;  %v10000_v24 = vpop.f32.mrf.mxu0  ;;  %12005 = vmatprep.mubr.bf16.mxu1 %v15948_v2  ;;  %12046 = vmatprep.mubr.bf16.mxu0 %v15948_v2  ;;  %v4549_v29 = vand.u32 %v15393_v14, %v16375_v26 }
 0x51b   :  { %v14126_v27 = vcombine.low %v9957_v16, %v9959_v23  ;;  %v14127_v28 = vcombine.low %v9998_v17, %v10000_v24  ;;  %12069 = vmatprep.subr.bf16.mxu1 %v4513_v12  ;;  %12110 = vmatprep.subr.bf16.mxu0 %v4519_v13  ;;  %v15395_v17 = vcombine.high %v1638_v8, %v1834_v9 }
 0x51c   :  { %v9961_v30 = vpop.f32.mrf.mxu1  ;;  %v10002_v31 = vpop.f32.mrf.mxu0  ;;  %v4534_v23 = vand.u32 %v15388_v10, %v16375_v26  ;;  %v4540_v24 = vand.u32 %v15390_v11, %v16375_v26 }
 0x51d   :  { %v14134_v32 = vrot.slane %v14126_v27, %v16096_v42  ;;  %v14141_v56 = vrot.slane %v14127_v28, %v16096_v42  ;;  %v4555_v30 = vand.u32 %v15395_v17, %v16375_v26  ;;  %v1639_v31 = vld [vmem:[%s18736_s3 + $0x5f0] sm:$0xff] }
 0x51e   :  { %v9962_v35 = vpop.f32.mrf.mxu1  ;;  %v10003_v36 = vpop.f32.mrf.mxu0 }
 0x51f   :  { %v14142_v37 = vcombine.low %v14134_v32, %v14141_v56  ;;  %v1835_v32 = vld [vmem:[%s18736_s3 + $0xc10] sm:$0x77]  ;;  %v1836_v35 = vld [vmem:[%s18736_s3 + $0xc18] sm:$0x77]  ;;  %v15392_v36 = vcombine.low %v1637_v4, %v1833_v5 }
 0x520   :  { %v10039_v43 = vpop.f32.mrf.mxu1  ;;  %v10080_v44 = vpop.f32.mrf.mxu0  ;;  %15588 = vmatmul.mubr.msk.bf16.vlgmr.msra.gmra.mxu1 %vm3409_vm9, %v16422_v19  ;;  %15589 = vmatmul.mubr.msk.bf16.vlgmr.msra.gmra.mxu0 %vm3409_vm9, %v16422_v19  ;;  %v15397_v40 = vcombine.high %v1639_v31, %v1835_v32 }
 0x521   :  { %14850 = vst [vmem:[#allocation2 + $0x208] sm:$0xff] %v14142_v37  ;;  %12070 = vmatpush1.bf16.msra.mxu1 %v4510_v33  ;;  %12111 = vmatpush1.bf16.msra.mxu0 %v4516_v34  ;;  %v1640_v34 = vld [vmem:[%s18736_s3 + $0x5f8] sm:$0xff]  ;;  %v15394_v37 = vcombine.low %v1638_v8, %v1834_v9 }
 0x522   :  { %v10041_v49 = vpop.f32.mrf.mxu1  ;;  %v10082_v50 = vpop.f32.mrf.mxu0  ;;  %12087 = vmatprep.mubr.bf16.mxu1 %v15948_v2  ;;  %12128 = vmatprep.mubr.bf16.mxu0 %v15948_v2  ;;  %v4561_v54 = vand.u32 %v15397_v40, %v16375_v26 }
 0x523   :  { %v14143_v52 = vcombine.low %v10039_v43, %v10041_v49  ;;  %v14144_v53 = vcombine.low %v10080_v44, %v10082_v50  ;;  %12151 = vmatprep.subr.bf16.mxu1 %v4525_v38  ;;  %12192 = vmatprep.subr.bf16.mxu0 %v4531_v39  ;;  %v15399_v44 = vcombine.high %v1640_v34, %v1836_v35 }
 0x524   :  { %v10043_v55 = vpop.f32.mrf.mxu1  ;;  %v10084_v57 = vpop.f32.mrf.mxu0  ;;  %v4546_v49 = vand.u32 %v15392_v36, %v16375_v26  ;;  %v4552_v50 = vand.u32 %v15394_v37, %v16375_v26 }
 0x525   :  { %v14151_v58 = vrot.slane %v14143_v52, %v16096_v42  ;;  %v14158_v59 = vrot.slane %v14144_v53, %v16096_v42  ;;  %v4567_v55 = vand.u32 %v15399_v44, %v16375_v26  ;;  %v1641_v57 = vld [vmem:[%s18736_s3 + $0x600] sm:$0xff] }
 0x526   :  { %v10044_v62 = vpop.f32.mrf.mxu1  ;;  %v10085_v63 = vpop.f32.mrf.mxu0 }
 0x527   :  { %v14159_v0 = vcombine.low %v14151_v58, %v14158_v59  ;;  %v1837_v58 = vld [vmem:[%s18736_s3 + $0xc20] sm:$0x77]  ;;  %v1838_v62 = vld [vmem:[%s18736_s3 + $0xc28] sm:$0x77]  ;;  %v15396_v63 = vcombine.low %v1639_v31, %v1835_v32 }
 0x528   :  { %v10121_v6 = vpop.f32.mrf.mxu1  ;;  %v10162_v7 = vpop.f32.mrf.mxu0  ;;  %15590 = vmatmul.mubr.msk.bf16.vlgmr.msra.gmra.mxu1 %vm3409_vm9, %v16422_v19  ;;  %15591 = vmatmul.mubr.msk.bf16.vlgmr.msra.gmra.mxu0 %vm3409_vm9, %v16422_v19  ;;  %v15401_v4 = vcombine.high %v1641_v57, %v1837_v58 }
 0x529   :  { %14851 = vst [vmem:[#allocation2 + $0x210] sm:$0xff] %v14159_v0  ;;  %12152 = vmatpush1.bf16.msra.mxu1 %v4522_v60  ;;  %12193 = vmatpush1.bf16.msra.mxu0 %v4528_v61  ;;  %v1642_v61 = vld [vmem:[%s18736_s3 + $0x608] sm:$0xff]  ;;  %v15398_v0 = vcombine.low %v1640_v34, %v1836_v35 }
 0x52a   :  { %v10123_v12 = vpop.f32.mrf.mxu1  ;;  %v10164_v13 = vpop.f32.mrf.mxu0  ;;  %12169 = vmatprep.mubr.bf16.mxu1 %v15948_v2  ;;  %12210 = vmatprep.mubr.bf16.mxu0 %v15948_v2  ;;  %v4573_v17 = vand.u32 %v15401_v4, %v16375_v26 }
 0x52b   :  { %v14160_v15 = vcombine.low %v10121_v6, %v10123_v12  ;;  %v14161_v16 = vcombine.low %v10162_v7, %v10164_v13  ;;  %12233 = vmatprep.subr.bf16.mxu1 %v4537_v1  ;;  %12274 = vmatprep.subr.bf16.mxu0 %v4543_v3  ;;  %v15403_v7 = vcombine.high %v1642_v61, %v1838_v62 }
 0x52c   :  { %v10125_v18 = vpop.f32.mrf.mxu1  ;;  %v10166_v20 = vpop.f32.mrf.mxu0  ;;  %v4558_v12 = vand.u32 %v15396_v63, %v16375_v26  ;;  %v4564_v13 = vand.u32 %v15398_v0, %v16375_v26 }
 0x52d   :  { %v14168_v21 = vrot.slane %v14160_v15, %v16096_v42  ;;  %v14175_v22 = vrot.slane %v14161_v16, %v16096_v42  ;;  %v4579_v18 = vand.u32 %v15403_v7, %v16375_v26  ;;  %v1643_v20 = vld [vmem:[%s18736_s3 + $0x610] sm:$0xff] }
 0x52e   :  { %v10126_v25 = vpop.f32.mrf.mxu1  ;;  %v10167_v27 = vpop.f32.mrf.mxu0 }
 0x52f   :  { %v14176_v28 = vcombine.low %v14168_v21, %v14175_v22  ;;  %v1839_v21 = vld [vmem:[%s18736_s3 + $0xc30] sm:$0x77]  ;;  %v1840_v25 = vld [vmem:[%s18736_s3 + $0xc38] sm:$0x77]  ;;  %v15400_v27 = vcombine.low %v1641_v57, %v1837_v58 }
 0x530   :  { %v10203_v56 = vpop.f32.mrf.mxu1  ;;  %v10244_v33 = vpop.f32.mrf.mxu0  ;;  %15592 = vmatmul.mubr.msk.bf16.vlgmr.msra.gmra.mxu1 %vm3409_vm9, %v16422_v19  ;;  %15593 = vmatmul.mubr.msk.bf16.vlgmr.msra.gmra.mxu0 %vm3409_vm9, %v16422_v19  ;;  %v15405_v31 = vcombine.high %v1643_v20, %v1839_v21 }
 0x531   :  { %14852 = vst [vmem:[#allocation2 + $0x218] sm:$0xff] %v14176_v28  ;;  %12234 = vmatpush1.bf16.msra.mxu1 %v4534_v23  ;;  %12275 = vmatpush1.bf16.msra.mxu0 %v4540_v24  ;;  %v1644_v24 = vld [vmem:[%s18736_s3 + $0x618] sm:$0xff]  ;;  %v15402_v28 = vcombine.low %v1642_v61, %v1838_v62  ;;  %s15964_s3 = smov [#allocation2]  }
 0x532   :  { %v10205_v38 = vpop.f32.mrf.mxu1  ;;  %v10246_v39 = vpop.f32.mrf.mxu0  ;;  %12251 = vmatprep.mubr.bf16.mxu1 %v15948_v2  ;;  %12292 = vmatprep.mubr.bf16.mxu0 %v15948_v2  ;;  %v4585_v44 = vand.u32 %v15405_v31, %v16375_v26  ;;  %s14889_s9 = sshll.u32 %s15964_s3, 4  ;;  %s14890_s9 = int_to_ptr.vmem [resolvable:$true] %s14889_s9 }
 0x533   :  { %v14177_v41 = vcombine.low %v10203_v56, %v10205_v38  ;;  %v14178_v43 = vcombine.low %v10244_v33, %v10246_v39  ;;  %12315 = vmatprep.subr.bf16.mxu1 %v4549_v29  ;;  %12356 = vmatprep.subr.bf16.mxu0 %v4555_v30  ;;  %v15407_v33 = vcombine.high %v1644_v24, %v1840_v25  ;;  %s15926_s10 = scalar_lea.vmem %s14890_s9, 12544  ;;  %p15931_p1 = scmp.lt.s32.totalorder %s14890_s9, %s14890_s9 }
 0x534   :  { %v10207_v45 = vpop.f32.mrf.mxu1  ;;  %v10248_v46 = vpop.f32.mrf.mxu0  ;;  %v4570_v38 = vand.u32 %v15400_v27, %v16375_v26  ;;  %v4576_v39 = vand.u32 %v15402_v28, %v16375_v26  ;;  %p15927_p0 = scmp.ne.s32.totalorder %s14890_s9, %s15926_s10  ;;  %p15932_p2 = scmp.lt.s32.totalorder %s15926_s10, %s15926_s10 }
 0x535   :  { %v14185_v47 = vrot.slane %v14177_v41, %v16096_v42  ;;  %v14192_v48 = vrot.slane %v14178_v43, %v16096_v42  ;;  %v4591_v45 = vand.u32 %v15407_v33, %v16375_v26 }
 0x536   :  { %v10208_v51 = vpop.f32.mrf.mxu1  ;;  %v10249_v52 = vpop.f32.mrf.mxu0  ;;  %p15933_p3 = por %p15932_p2, %p15931_p1 }
 0x537   :  { %v14193_v53 = vcombine.low %v14185_v47, %v14192_v48  ;;  %v15404_v48 = vcombine.low %v1643_v20, %v1839_v21 }
 0x538   :  { %v10285_v59 = vpop.f32.mrf.mxu1  ;;  %v10326_v60 = vpop.f32.mrf.mxu0  ;;  %15594 = vmatmul.mubr.msk.bf16.vlgmr.msra.gmra.mxu1 %vm3409_vm9, %v16422_v19  ;;  %15595 = vmatmul.mubr.msk.bf16.vlgmr.msra.gmra.mxu0 %vm3409_vm9, %v16422_v19  ;;  %p15934_p4 = pnand %p15933_p3, %p15927_p0 }
 0x539   :  { %14853 = vst [vmem:[#allocation2 + $0x220] sm:$0xff] %v14193_v53  ;;  %12316 = vmatpush1.bf16.msra.mxu1 %v4546_v49  ;;  %12357 = vmatpush1.bf16.msra.mxu0 %v4552_v50  ;;  %v15406_v49 = vcombine.low %v1644_v24, %v1840_v25 }
 0x53a   :  { %v10287_v1 = vpop.f32.mrf.mxu1  ;;  %v10328_v3 = vpop.f32.mrf.mxu0  ;;  %12333 = vmatprep.mubr.bf16.mxu1 %v15948_v2  ;;  %12374 = vmatprep.mubr.bf16.mxu0 %v15948_v2 }
 0x53b   :  { %v14194_v5 = vcombine.low %v10285_v59, %v10287_v1  ;;  %v14195_v6 = vcombine.low %v10326_v60, %v10328_v3  ;;  %12397 = vmatprep.subr.bf16.mxu1 %v4561_v54  ;;  %12438 = vmatprep.subr.bf16.mxu0 %v4567_v55  ;;  %v4582_v59 = vand.u32 %v15404_v48, %v16375_v26 }
 0x53c   :  { %v10289_v8 = vpop.f32.mrf.mxu1  ;;  %v10330_v9 = vpop.f32.mrf.mxu0  ;;  %v4588_v60 = vand.u32 %v15406_v49, %v16375_v26 }
 0x53d   :  { %v14202_v10 = vrot.slane %v14194_v5, %v16096_v42  ;;  %v14209_v11 = vrot.slane %v14195_v6, %v16096_v42 }
 0x53e   :  { %v10290_v14 = vpop.f32.mrf.mxu1  ;;  %v10331_v15 = vpop.f32.mrf.mxu0 }
 0x53f   :  { %v14210_v16 = vcombine.low %v14202_v10, %v14209_v11 }
 0x540   :  { %v10367_v22 = vpop.f32.mrf.mxu1  ;;  %v10408_v23 = vpop.f32.mrf.mxu0  ;;  %15596 = vmatmul.mubr.msk.bf16.vlgmr.msra.gmra.mxu1 %vm3409_vm9, %v16422_v19  ;;  %15597 = vmatmul.mubr.msk.bf16.vlgmr.msra.gmra.mxu0 %vm3409_vm9, %v16422_v19 }
 0x541   :  { %14854 = vst [vmem:[#allocation2 + $0x228] sm:$0xff] %v14210_v16  ;;  %12398 = vmatpush1.bf16.msra.mxu1 %v4558_v12  ;;  %12439 = vmatpush1.bf16.msra.mxu0 %v4564_v13 }
 0x542   :  { %v10369_v29 = vpop.f32.mrf.mxu1  ;;  %v10410_v30 = vpop.f32.mrf.mxu0  ;;  %12415 = vmatprep.mubr.bf16.mxu1 %v15948_v2  ;;  %12456 = vmatprep.mubr.bf16.mxu0 %v15948_v2 }
 0x543   :  { %v14211_v32 = vcombine.low %v10367_v22, %v10369_v29  ;;  %v14212_v56 = vcombine.low %v10408_v23, %v10410_v30  ;;  %12479 = vmatprep.subr.bf16.mxu1 %v4573_v17  ;;  %12520 = vmatprep.subr.bf16.mxu0 %v4579_v18 }
 0x544   :  { %v10371_v34 = vpop.f32.mrf.mxu1  ;;  %v10412_v35 = vpop.f32.mrf.mxu0 }
 0x545   :  { %v14219_v36 = vrot.slane %v14211_v32, %v16096_v42  ;;  %v14226_v37 = vrot.slane %v14212_v56, %v16096_v42 }
 0x546   :  { %v10372_v40 = vpop.f32.mrf.mxu1  ;;  %v10413_v41 = vpop.f32.mrf.mxu0 }
 0x547   :  { %v14227_v43 = vcombine.low %v14219_v36, %v14226_v37 }
 0x548   :  { %v10449_v46 = vpop.f32.mrf.mxu1  ;;  %v10490_v47 = vpop.f32.mrf.mxu0  ;;  %15598 = vmatmul.mubr.msk.bf16.vlgmr.msra.gmra.mxu1 %vm3409_vm9, %v16422_v19  ;;  %15599 = vmatmul.mubr.msk.bf16.vlgmr.msra.gmra.mxu0 %vm3409_vm9, %v16422_v19 }
 0x549   :  { %14855 = vst [vmem:[#allocation2 + $0x230] sm:$0xff] %v14227_v43  ;;  %12480 = vmatpush1.bf16.msra.mxu1 %v4570_v38  ;;  %12521 = vmatpush1.bf16.msra.mxu0 %v4576_v39 }
 0x54a   :  { %v10451_v50 = vpop.f32.mrf.mxu1  ;;  %v10492_v51 = vpop.f32.mrf.mxu0  ;;  %12497 = vmatprep.mubr.bf16.mxu1 %v15948_v2  ;;  %12538 = vmatprep.mubr.bf16.mxu0 %v15948_v2 }
 0x54b   :  { %v14228_v52 = vcombine.low %v10449_v46, %v10451_v50  ;;  %v14229_v53 = vcombine.low %v10490_v47, %v10492_v51  ;;  %12561 = vmatprep.subr.bf16.mxu1 %v4585_v44  ;;  %12602 = vmatprep.subr.bf16.mxu0 %v4591_v45 }
 0x54c   :  { %v10453_v54 = vpop.f32.mrf.mxu1  ;;  %v10494_v55 = vpop.f32.mrf.mxu0 }
 0x54d   :  { %v14236_v57 = vrot.slane %v14228_v52, %v16096_v42  ;;  %v14243_v58 = vrot.slane %v14229_v53, %v16096_v42 }
 0x54e   :  { %v10454_v61 = vpop.f32.mrf.mxu1  ;;  %v10495_v62 = vpop.f32.mrf.mxu0 }
 0x54f   :  { %v14244_v63 = vcombine.low %v14236_v57, %v14243_v58 }
 0x550   :  { %v10531_v0 = vpop.f32.mrf.mxu1  ;;  %v10572_v1 = vpop.f32.mrf.mxu0  ;;  %15600 = vmatmul.mubr.msk.bf16.vlgmr.msra.gmra.mxu1 %vm3409_vm9, %v16422_v19  ;;  %15601 = vmatmul.mubr.msk.bf16.vlgmr.msra.gmra.mxu0 %vm3409_vm9, %v16422_v19 }
 0x551   :  { %14856 = vst [vmem:[#allocation2 + $0x238] sm:$0xff] %v14244_v63  ;;  %12562 = vmatpush1.bf16.msra.mxu1 %v4582_v59  ;;  %12603 = vmatpush1.bf16.msra.mxu0 %v4588_v60 }
 0x552   :  { %v10533_v3 = vpop.f32.mrf.mxu1  ;;  %v10574_v4 = vpop.f32.mrf.mxu0  ;;  %12579 = vmatprep.mubr.bf16.mxu1 %v15948_v2  ;;  %12620 = vmatprep.mubr.bf16.mxu0 %v15948_v2 }
 0x553   :  { %v14245_v26 = vcombine.low %v10531_v0, %v10533_v3  ;;  %v14246_v5 = vcombine.low %v10572_v1, %v10574_v4 }
 0x554   :  { %v10535_v6 = vpop.f32.mrf.mxu1  ;;  %v10576_v7 = vpop.f32.mrf.mxu0 }
 0x555   :  { %v14253_v8 = vrot.slane %v14245_v26, %v16096_v42  ;;  %v14260_v9 = vrot.slane %v14246_v5, %v16096_v42 }
 0x556   :  { %v10536_v10 = vpop.f32.mrf.mxu1  ;;  %v10577_v11 = vpop.f32.mrf.mxu0 }
 0x557   :  { %v14261_v12 = vcombine.low %v14253_v8, %v14260_v9 }
 0x558   :  { %v10613_v13 = vpop.f32.mrf.mxu1  ;;  %v10654_v14 = vpop.f32.mrf.mxu0  ;;  %15602 = vmatmul.mubr.msk.bf16.vlgmr.msra.gmra.mxu1 %vm3409_vm9, %v16422_v19  ;;  %15603 = vmatmul.mubr.msk.bf16.vlgmr.msra.gmra.mxu0 %vm3409_vm9, %v16422_v19 }
 0x559   :  { %14857 = vst [vmem:[#allocation2 + $0x240] sm:$0xff] %v14261_v12 }
 0x55a   :  { %v10615_v2 = vpop.f32.mrf.mxu1  ;;  %v10656_v15 = vpop.f32.mrf.mxu0 }
 0x55b   :  { %v14262_v16 = vcombine.low %v10613_v13, %v10615_v2  ;;  %v14263_v17 = vcombine.low %v10654_v14, %v10656_v15 }
 0x55c   :  { %v10617_v18 = vpop.f32.mrf.mxu1  ;;  %v10658_v20 = vpop.f32.mrf.mxu0 }
 0x55d   :  { %v14270_v21 = vrot.slane %v14262_v16, %v16096_v42  ;;  %v14277_v22 = vrot.slane %v14263_v17, %v16096_v42 }
 0x55e   :  { %v10618_v23 = vpop.f32.mrf.mxu1  ;;  %v10659_v24 = vpop.f32.mrf.mxu0 }
 0x55f   :  { %v14278_v25 = vcombine.low %v14270_v21, %v14277_v22 }
 0x560   :  { %v10695_v27 = vpop.f32.mrf.mxu1  ;;  %v10736_v28 = vpop.f32.mrf.mxu0 }
 0x561   :  { %14858 = vst [vmem:[#allocation2 + $0x248] sm:$0xff] %v14278_v25 }
 0x562   :  { %v10697_v29 = vpop.f32.mrf.mxu1  ;;  %v10738_v30 = vpop.f32.mrf.mxu0 }
 0x563   :  { %v14279_v19 = vcombine.low %v10695_v27, %v10697_v29  ;;  %v14280_v31 = vcombine.low %v10736_v28, %v10738_v30 }
 0x564   :  { %v10699_v32 = vpop.f32.mrf.mxu1  ;;  %v10740_v56 = vpop.f32.mrf.mxu0 }
 0x565   :  { %v14287_v33 = vrot.slane %v14279_v19, %v16096_v42  ;;  %v14294_v34 = vrot.slane %v14280_v31, %v16096_v42 }
 0x566   :  { %v10700_v35 = vpop.f32.mrf.mxu1  ;;  %v10741_v36 = vpop.f32.mrf.mxu0 }
 0x567   :  { %v14295_v37 = vcombine.low %v14287_v33, %v14294_v34 }
 0x568   :  { %v10777_v38 = vpop.f32.mrf.mxu1  ;;  %v10818_v39 = vpop.f32.mrf.mxu0 }
 0x569   :  { %14859 = vst [vmem:[#allocation2 + $0x250] sm:$0xff] %v14295_v37 }
 0x56a   :  { %v10779_v40 = vpop.f32.mrf.mxu1  ;;  %v10820_v41 = vpop.f32.mrf.mxu0 }
 0x56b   :  { %v14296_v43 = vcombine.low %v10777_v38, %v10779_v40  ;;  %v14297_v44 = vcombine.low %v10818_v39, %v10820_v41 }
 0x56c   :  { %v10781_v45 = vpop.f32.mrf.mxu1  ;;  %v10822_v46 = vpop.f32.mrf.mxu0 }
 0x56d   :  { %v14304_v47 = vrot.slane %v14296_v43, %v16096_v42  ;;  %v14311_v48 = vrot.slane %v14297_v44, %v16096_v42 }
 0x56e   :  { %v10782_v49 = vpop.f32.mrf.mxu1  ;;  %v10823_v50 = vpop.f32.mrf.mxu0 }
 0x56f   :  { %v14312_v51 = vcombine.low %v14304_v47, %v14311_v48 }
 0x570   :  { %v10859_v52 = vpop.f32.mrf.mxu1  ;;  %v10900_v53 = vpop.f32.mrf.mxu0 }
 0x571   :  { %14860 = vst [vmem:[#allocation2 + $0x258] sm:$0xff] %v14312_v51 }
 0x572   :  { %v10861_v54 = vpop.f32.mrf.mxu1  ;;  %v10902_v55 = vpop.f32.mrf.mxu0 }
 0x573   :  { %v14313_v57 = vcombine.low %v10859_v52, %v10861_v54  ;;  %v14314_v58 = vcombine.low %v10900_v53, %v10902_v55 }
 0x574   :  { %v10863_v59 = vpop.f32.mrf.mxu1  ;;  %v10904_v60 = vpop.f32.mrf.mxu0 }
 0x575   :  { %v14321_v61 = vrot.slane %v14313_v57, %v16096_v42  ;;  %v14328_v62 = vrot.slane %v14314_v58, %v16096_v42 }
 0x576   :  { %v10864_v63 = vpop.f32.mrf.mxu1  ;;  %v10905_v0 = vpop.f32.mrf.mxu0 }
 0x577   :  { %v14329_v1 = vcombine.low %v14321_v61, %v14328_v62 }
 0x578   :  { %v10941_v3 = vpop.f32.mrf.mxu1  ;;  %v10982_v4 = vpop.f32.mrf.mxu0 }
 0x579   :  { %14861 = vst [vmem:[#allocation2 + $0x260] sm:$0xff] %v14329_v1 }
 0x57a   :  { %v10943_v26 = vpop.f32.mrf.mxu1  ;;  %v10984_v5 = vpop.f32.mrf.mxu0 }
 0x57b   :  { %v14330_v6 = vcombine.low %v10941_v3, %v10943_v26  ;;  %v14331_v7 = vcombine.low %v10982_v4, %v10984_v5 }
 0x57c   :  { %v10945_v8 = vpop.f32.mrf.mxu1  ;;  %v10986_v9 = vpop.f32.mrf.mxu0 }
 0x57d   :  { %v14338_v10 = vrot.slane %v14330_v6, %v16096_v42  ;;  %v14345_v11 = vrot.slane %v14331_v7, %v16096_v42 }
 0x57e   :  { %v10946_v12 = vpop.f32.mrf.mxu1  ;;  %v10987_v13 = vpop.f32.mrf.mxu0 }
 0x57f   :  { %v14346_v14 = vcombine.low %v14338_v10, %v14345_v11 }
 0x580   :  { %v11023_v2 = vpop.f32.mrf.mxu1  ;;  %v11064_v15 = vpop.f32.mrf.mxu0 }
 0x581   :  { %14862 = vst [vmem:[#allocation2 + $0x268] sm:$0xff] %v14346_v14 }
 0x582   :  { %v11025_v16 = vpop.f32.mrf.mxu1  ;;  %v11066_v17 = vpop.f32.mrf.mxu0 }
 0x583   :  { %v14347_v18 = vcombine.low %v11023_v2, %v11025_v16  ;;  %v14348_v20 = vcombine.low %v11064_v15, %v11066_v17 }
 0x584   :  { %v11027_v21 = vpop.f32.mrf.mxu1  ;;  %v11068_v22 = vpop.f32.mrf.mxu0 }
 0x585   :  { %v14355_v23 = vrot.slane %v14347_v18, %v16096_v42  ;;  %v14362_v24 = vrot.slane %v14348_v20, %v16096_v42 }
 0x586   :  { %v11028_v25 = vpop.f32.mrf.mxu1  ;;  %v11069_v27 = vpop.f32.mrf.mxu0 }
 0x587   :  { %v14363_v28 = vcombine.low %v14355_v23, %v14362_v24 }
 0x588   :  { %v11105_v29 = vpop.f32.mrf.mxu1  ;;  %v11146_v30 = vpop.f32.mrf.mxu0 }
 0x589   :  { %14863 = vst [vmem:[#allocation2 + $0x270] sm:$0xff] %v14363_v28 }
 0x58a   :  { %v11107_v19 = vpop.f32.mrf.mxu1  ;;  %v11148_v31 = vpop.f32.mrf.mxu0 }
 0x58b   :  { %v14364_v32 = vcombine.low %v11105_v29, %v11107_v19  ;;  %v14365_v56 = vcombine.low %v11146_v30, %v11148_v31 }
 0x58c   :  { %v11109_v33 = vpop.f32.mrf.mxu1  ;;  %v11150_v34 = vpop.f32.mrf.mxu0 }
 0x58d   :  { %v14372_v35 = vrot.slane %v14364_v32, %v16096_v42  ;;  %v14379_v36 = vrot.slane %v14365_v56, %v16096_v42 }
 0x58e   :  { %v11110_v37 = vpop.f32.mrf.mxu1  ;;  %v11151_v38 = vpop.f32.mrf.mxu0 }
 0x58f   :  { %v14380_v39 = vcombine.low %v14372_v35, %v14379_v36 }
 0x590   :  { %v11187_v40 = vpop.f32.mrf.mxu1  ;;  %v11228_v41 = vpop.f32.mrf.mxu0 }
 0x591   :  { %14864 = vst [vmem:[#allocation2 + $0x278] sm:$0xff] %v14380_v39 }
 0x592   :  { %v11189_v43 = vpop.f32.mrf.mxu1  ;;  %v11230_v44 = vpop.f32.mrf.mxu0 }
 0x593   :  { %v14381_v45 = vcombine.low %v11187_v40, %v11189_v43  ;;  %v14382_v46 = vcombine.low %v11228_v41, %v11230_v44 }
 0x594   :  { %v11191_v47 = vpop.f32.mrf.mxu1  ;;  %v11232_v48 = vpop.f32.mrf.mxu0 }
 0x595   :  { %v14389_v49 = vrot.slane %v14381_v45, %v16096_v42  ;;  %v14396_v50 = vrot.slane %v14382_v46, %v16096_v42 }
 0x596   :  { %v11192_v51 = vpop.f32.mrf.mxu1  ;;  %v11233_v52 = vpop.f32.mrf.mxu0 }
 0x597   :  { %v14397_v53 = vcombine.low %v14389_v49, %v14396_v50 }
 0x598   :  { %v11269_v54 = vpop.f32.mrf.mxu1  ;;  %v11310_v55 = vpop.f32.mrf.mxu0 }
 0x599   :  { %14865 = vst [vmem:[#allocation2 + $0x280] sm:$0xff] %v14397_v53 }
 0x59a   :  { %v11271_v57 = vpop.f32.mrf.mxu1  ;;  %v11312_v58 = vpop.f32.mrf.mxu0 }
 0x59b   :  { %v14398_v59 = vcombine.low %v11269_v54, %v11271_v57  ;;  %v14399_v60 = vcombine.low %v11310_v55, %v11312_v58 }
 0x59c   :  { %v11273_v61 = vpop.f32.mrf.mxu1  ;;  %v11314_v62 = vpop.f32.mrf.mxu0 }
 0x59d   :  { %v14406_v63 = vrot.slane %v14398_v59, %v16096_v42  ;;  %v14413_v0 = vrot.slane %v14399_v60, %v16096_v42 }
 0x59e   :  { %v11274_v1 = vpop.f32.mrf.mxu1  ;;  %v11315_v3 = vpop.f32.mrf.mxu0 }
 0x59f   :  { %v14414_v4 = vcombine.low %v14406_v63, %v14413_v0 }
 0x5a0   :  { %v11351_v26 = vpop.f32.mrf.mxu1  ;;  %v11392_v5 = vpop.f32.mrf.mxu0 }
 0x5a1   :  { %14866 = vst [vmem:[#allocation2 + $0x288] sm:$0xff] %v14414_v4 }
 0x5a2   :  { %v11353_v6 = vpop.f32.mrf.mxu1  ;;  %v11394_v7 = vpop.f32.mrf.mxu0 }
 0x5a3   :  { %v14415_v8 = vcombine.low %v11351_v26, %v11353_v6  ;;  %v14416_v9 = vcombine.low %v11392_v5, %v11394_v7 }
 0x5a4   :  { %v11355_v10 = vpop.f32.mrf.mxu1  ;;  %v11396_v11 = vpop.f32.mrf.mxu0 }
 0x5a5   :  { %v14423_v12 = vrot.slane %v14415_v8, %v16096_v42  ;;  %v14430_v13 = vrot.slane %v14416_v9, %v16096_v42 }
 0x5a6   :  { %v11356_v14 = vpop.f32.mrf.mxu1  ;;  %v11397_v2 = vpop.f32.mrf.mxu0 }
 0x5a7   :  { %v14431_v15 = vcombine.low %v14423_v12, %v14430_v13 }
 0x5a8   :  { %v11433_v16 = vpop.f32.mrf.mxu1  ;;  %v11474_v17 = vpop.f32.mrf.mxu0 }
 0x5a9   :  { %14867 = vst [vmem:[#allocation2 + $0x290] sm:$0xff] %v14431_v15 }
 0x5aa   :  { %v11435_v18 = vpop.f32.mrf.mxu1  ;;  %v11476_v20 = vpop.f32.mrf.mxu0 }
 0x5ab   :  { %v14432_v21 = vcombine.low %v11433_v16, %v11435_v18  ;;  %v14433_v22 = vcombine.low %v11474_v17, %v11476_v20 }
 0x5ac   :  { %v11437_v23 = vpop.f32.mrf.mxu1  ;;  %v11478_v24 = vpop.f32.mrf.mxu0 }
 0x5ad   :  { %v14440_v25 = vrot.slane %v14432_v21, %v16096_v42  ;;  %v14447_v27 = vrot.slane %v14433_v22, %v16096_v42 }
 0x5ae   :  { %v11438_v28 = vpop.f32.mrf.mxu1  ;;  %v11479_v29 = vpop.f32.mrf.mxu0 }
 0x5af   :  { %v14448_v30 = vcombine.low %v14440_v25, %v14447_v27 }
 0x5b0   :  { %v11515_v19 = vpop.f32.mrf.mxu1  ;;  %v11556_v31 = vpop.f32.mrf.mxu0 }
 0x5b1   :  { %14868 = vst [vmem:[#allocation2 + $0x298] sm:$0xff] %v14448_v30 }
 0x5b2   :  { %v11517_v32 = vpop.f32.mrf.mxu1  ;;  %v11558_v56 = vpop.f32.mrf.mxu0 }
 0x5b3   :  { %v14449_v33 = vcombine.low %v11515_v19, %v11517_v32  ;;  %v14450_v34 = vcombine.low %v11556_v31, %v11558_v56 }
 0x5b4   :  { %v11519_v35 = vpop.f32.mrf.mxu1  ;;  %v11560_v36 = vpop.f32.mrf.mxu0 }
 0x5b5   :  { %v14457_v37 = vrot.slane %v14449_v33, %v16096_v42  ;;  %v14464_v38 = vrot.slane %v14450_v34, %v16096_v42 }
 0x5b6   :  { %v11520_v39 = vpop.f32.mrf.mxu1  ;;  %v11561_v40 = vpop.f32.mrf.mxu0 }
 0x5b7   :  { %v14465_v41 = vcombine.low %v14457_v37, %v14464_v38 }
 0x5b8   :  { %v11597_v43 = vpop.f32.mrf.mxu1  ;;  %v11638_v44 = vpop.f32.mrf.mxu0 }
 0x5b9   :  { %14869 = vst [vmem:[#allocation2 + $0x2a0] sm:$0xff] %v14465_v41 }
 0x5ba   :  { %v11599_v45 = vpop.f32.mrf.mxu1  ;;  %v11640_v46 = vpop.f32.mrf.mxu0 }
 0x5bb   :  { %v14466_v47 = vcombine.low %v11597_v43, %v11599_v45  ;;  %v14467_v48 = vcombine.low %v11638_v44, %v11640_v46 }
 0x5bc   :  { %v11601_v49 = vpop.f32.mrf.mxu1  ;;  %v11642_v50 = vpop.f32.mrf.mxu0 }
 0x5bd   :  { %v14474_v51 = vrot.slane %v14466_v47, %v16096_v42  ;;  %v14481_v52 = vrot.slane %v14467_v48, %v16096_v42 }
 0x5be   :  { %v11602_v53 = vpop.f32.mrf.mxu1  ;;  %v11643_v54 = vpop.f32.mrf.mxu0 }
 0x5bf   :  { %v14482_v55 = vcombine.low %v14474_v51, %v14481_v52 }
 0x5c0   :  { %v11679_v57 = vpop.f32.mrf.mxu1  ;;  %v11720_v58 = vpop.f32.mrf.mxu0 }
 0x5c1   :  { %14870 = vst [vmem:[#allocation2 + $0x2a8] sm:$0xff] %v14482_v55 }
 0x5c2   :  { %v11681_v59 = vpop.f32.mrf.mxu1  ;;  %v11722_v60 = vpop.f32.mrf.mxu0 }
 0x5c3   :  { %v14483_v61 = vcombine.low %v11679_v57, %v11681_v59  ;;  %v14484_v62 = vcombine.low %v11720_v58, %v11722_v60 }
 0x5c4   :  { %v11683_v63 = vpop.f32.mrf.mxu1  ;;  %v11724_v0 = vpop.f32.mrf.mxu0 }
 0x5c5   :  { %v14491_v1 = vrot.slane %v14483_v61, %v16096_v42  ;;  %v14498_v3 = vrot.slane %v14484_v62, %v16096_v42 }
 0x5c6   :  { %v11684_v4 = vpop.f32.mrf.mxu1  ;;  %v11725_v26 = vpop.f32.mrf.mxu0 }
 0x5c7   :  { %v14499_v5 = vcombine.low %v14491_v1, %v14498_v3 }
 0x5c8   :  { %v11761_v6 = vpop.f32.mrf.mxu1  ;;  %v11802_v7 = vpop.f32.mrf.mxu0 }
 0x5c9   :  { %14871 = vst [vmem:[#allocation2 + $0x2b0] sm:$0xff] %v14499_v5 }
 0x5ca   :  { %v11763_v8 = vpop.f32.mrf.mxu1  ;;  %v11804_v9 = vpop.f32.mrf.mxu0 }
 0x5cb   :  { %v14500_v10 = vcombine.low %v11761_v6, %v11763_v8  ;;  %v14501_v11 = vcombine.low %v11802_v7, %v11804_v9 }
 0x5cc   :  { %v11765_v12 = vpop.f32.mrf.mxu1  ;;  %v11806_v13 = vpop.f32.mrf.mxu0 }
 0x5cd   :  { %v14508_v14 = vrot.slane %v14500_v10, %v16096_v42  ;;  %v14515_v2 = vrot.slane %v14501_v11, %v16096_v42 }
 0x5ce   :  { %v11766_v15 = vpop.f32.mrf.mxu1  ;;  %v11807_v16 = vpop.f32.mrf.mxu0 }
 0x5cf   :  { %v14516_v17 = vcombine.low %v14508_v14, %v14515_v2 }
 0x5d0   :  { %v11843_v18 = vpop.f32.mrf.mxu1  ;;  %v11884_v20 = vpop.f32.mrf.mxu0 }
 0x5d1   :  { %14872 = vst [vmem:[#allocation2 + $0x2b8] sm:$0xff] %v14516_v17 }
 0x5d2   :  { %v11845_v21 = vpop.f32.mrf.mxu1  ;;  %v11886_v22 = vpop.f32.mrf.mxu0 }
 0x5d3   :  { %v14517_v23 = vcombine.low %v11843_v18, %v11845_v21  ;;  %v14518_v24 = vcombine.low %v11884_v20, %v11886_v22 }
 0x5d4   :  { %v11847_v25 = vpop.f32.mrf.mxu1  ;;  %v11888_v27 = vpop.f32.mrf.mxu0 }
 0x5d5   :  { %v14525_v28 = vrot.slane %v14517_v23, %v16096_v42  ;;  %v14532_v29 = vrot.slane %v14518_v24, %v16096_v42 }
 0x5d6   :  { %v11848_v30 = vpop.f32.mrf.mxu1  ;;  %v11889_v19 = vpop.f32.mrf.mxu0 }
 0x5d7   :  { %v14533_v31 = vcombine.low %v14525_v28, %v14532_v29 }
 0x5d8   :  { %v11925_v32 = vpop.f32.mrf.mxu1  ;;  %v11966_v56 = vpop.f32.mrf.mxu0 }
 0x5d9   :  { %14873 = vst [vmem:[#allocation2 + $0x2c0] sm:$0xff] %v14533_v31 }
 0x5da   :  { %v11927_v33 = vpop.f32.mrf.mxu1  ;;  %v11968_v34 = vpop.f32.mrf.mxu0 }
 0x5db   :  { %v14534_v35 = vcombine.low %v11925_v32, %v11927_v33  ;;  %v14535_v36 = vcombine.low %v11966_v56, %v11968_v34 }
 0x5dc   :  { %v11929_v37 = vpop.f32.mrf.mxu1  ;;  %v11970_v38 = vpop.f32.mrf.mxu0 }
 0x5dd   :  { %v14542_v39 = vrot.slane %v14534_v35, %v16096_v42  ;;  %v14549_v40 = vrot.slane %v14535_v36, %v16096_v42 }
 0x5de   :  { %v11930_v41 = vpop.f32.mrf.mxu1  ;;  %v11971_v43 = vpop.f32.mrf.mxu0 }
 0x5df   :  { %v14550_v44 = vcombine.low %v14542_v39, %v14549_v40 }
 0x5e0   :  { %v12007_v45 = vpop.f32.mrf.mxu1  ;;  %v12048_v46 = vpop.f32.mrf.mxu0 }
 0x5e1   :  { %14874 = vst [vmem:[#allocation2 + $0x2c8] sm:$0xff] %v14550_v44 }
 0x5e2   :  { %v12009_v47 = vpop.f32.mrf.mxu1  ;;  %v12050_v48 = vpop.f32.mrf.mxu0 }
 0x5e3   :  { %v14551_v49 = vcombine.low %v12007_v45, %v12009_v47  ;;  %v14552_v50 = vcombine.low %v12048_v46, %v12050_v48 }
 0x5e4   :  { %v12011_v51 = vpop.f32.mrf.mxu1  ;;  %v12052_v52 = vpop.f32.mrf.mxu0 }
 0x5e5   :  { %v14559_v53 = vrot.slane %v14551_v49, %v16096_v42  ;;  %v14566_v54 = vrot.slane %v14552_v50, %v16096_v42 }
 0x5e6   :  { %v12012_v55 = vpop.f32.mrf.mxu1  ;;  %v12053_v57 = vpop.f32.mrf.mxu0 }
 0x5e7   :  { %v14567_v58 = vcombine.low %v14559_v53, %v14566_v54 }
 0x5e8   :  { %v12089_v59 = vpop.f32.mrf.mxu1  ;;  %v12130_v60 = vpop.f32.mrf.mxu0 }
 0x5e9   :  { %14875 = vst [vmem:[#allocation2 + $0x2d0] sm:$0xff] %v14567_v58 }
 0x5ea   :  { %v12091_v61 = vpop.f32.mrf.mxu1  ;;  %v12132_v62 = vpop.f32.mrf.mxu0 }
 0x5eb   :  { %v14568_v63 = vcombine.low %v12089_v59, %v12091_v61  ;;  %v14569_v0 = vcombine.low %v12130_v60, %v12132_v62 }
 0x5ec   :  { %v12093_v1 = vpop.f32.mrf.mxu1  ;;  %v12134_v3 = vpop.f32.mrf.mxu0 }
 0x5ed   :  { %v14576_v4 = vrot.slane %v14568_v63, %v16096_v42  ;;  %v14583_v26 = vrot.slane %v14569_v0, %v16096_v42 }
 0x5ee   :  { %v12094_v5 = vpop.f32.mrf.mxu1  ;;  %v12135_v6 = vpop.f32.mrf.mxu0 }
 0x5ef   :  { %v14584_v7 = vcombine.low %v14576_v4, %v14583_v26 }
 0x5f0   :  { %v12171_v8 = vpop.f32.mrf.mxu1  ;;  %v12212_v9 = vpop.f32.mrf.mxu0 }
 0x5f1   :  { %14876 = vst [vmem:[#allocation2 + $0x2d8] sm:$0xff] %v14584_v7 }
 0x5f2   :  { %v12173_v10 = vpop.f32.mrf.mxu1  ;;  %v12214_v11 = vpop.f32.mrf.mxu0 }
 0x5f3   :  { %v14585_v12 = vcombine.low %v12171_v8, %v12173_v10  ;;  %v14586_v13 = vcombine.low %v12212_v9, %v12214_v11 }
 0x5f4   :  { %v12175_v14 = vpop.f32.mrf.mxu1  ;;  %v12216_v2 = vpop.f32.mrf.mxu0 }
 0x5f5   :  { %v14593_v15 = vrot.slane %v14585_v12, %v16096_v42  ;;  %v14600_v16 = vrot.slane %v14586_v13, %v16096_v42 }
 0x5f6   :  { %v12176_v17 = vpop.f32.mrf.mxu1  ;;  %v12217_v18 = vpop.f32.mrf.mxu0 }
 0x5f7   :  { %v14601_v20 = vcombine.low %v14593_v15, %v14600_v16 }
 0x5f8   :  { %v12253_v21 = vpop.f32.mrf.mxu1  ;;  %v12294_v22 = vpop.f32.mrf.mxu0 }
 0x5f9   :  { %14877 = vst [vmem:[#allocation2 + $0x2e0] sm:$0xff] %v14601_v20 }
 0x5fa   :  { %v12255_v23 = vpop.f32.mrf.mxu1  ;;  %v12296_v24 = vpop.f32.mrf.mxu0 }
 0x5fb   :  { %v14602_v25 = vcombine.low %v12253_v21, %v12255_v23  ;;  %v14603_v27 = vcombine.low %v12294_v22, %v12296_v24 }
 0x5fc   :  { %v12257_v28 = vpop.f32.mrf.mxu1  ;;  %v12298_v29 = vpop.f32.mrf.mxu0 }
 0x5fd   :  { %v14610_v30 = vrot.slane %v14602_v25, %v16096_v42  ;;  %v14617_v19 = vrot.slane %v14603_v27, %v16096_v42 }
 0x5fe   :  { %v12258_v31 = vpop.f32.mrf.mxu1  ;;  %v12299_v32 = vpop.f32.mrf.mxu0 }
 0x5ff   :  { %v14618_v56 = vcombine.low %v14610_v30, %v14617_v19 }
 0x600   :  { %v12335_v33 = vpop.f32.mrf.mxu1  ;;  %v12376_v34 = vpop.f32.mrf.mxu0 }
 0x601   :  { %14878 = vst [vmem:[#allocation2 + $0x2e8] sm:$0xff] %v14618_v56 }
 0x602   :  { %v12337_v35 = vpop.f32.mrf.mxu1  ;;  %v12378_v36 = vpop.f32.mrf.mxu0 }
 0x603   :  { %v14619_v37 = vcombine.low %v12335_v33, %v12337_v35  ;;  %v14620_v38 = vcombine.low %v12376_v34, %v12378_v36 }
 0x604   :  { %v12339_v39 = vpop.f32.mrf.mxu1  ;;  %v12380_v40 = vpop.f32.mrf.mxu0 }
 0x605   :  { %v14627_v41 = vrot.slane %v14619_v37, %v16096_v42  ;;  %v14634_v43 = vrot.slane %v14620_v38, %v16096_v42 }
 0x606   :  { %v12340_v44 = vpop.f32.mrf.mxu1  ;;  %v12381_v45 = vpop.f32.mrf.mxu0 }
 0x607   :  { %v14635_v46 = vcombine.low %v14627_v41, %v14634_v43 }
 0x608   :  { %v12417_v47 = vpop.f32.mrf.mxu1  ;;  %v12458_v48 = vpop.f32.mrf.mxu0 }
 0x609   :  { %14879 = vst [vmem:[#allocation2 + $0x2f0] sm:$0xff] %v14635_v46 }
 0x60a   :  { %v12419_v49 = vpop.f32.mrf.mxu1  ;;  %v12460_v50 = vpop.f32.mrf.mxu0 }
 0x60b   :  { %v14636_v51 = vcombine.low %v12417_v47, %v12419_v49  ;;  %v14637_v52 = vcombine.low %v12458_v48, %v12460_v50 }
 0x60c   :  { %v12421_v53 = vpop.f32.mrf.mxu1  ;;  %v12462_v54 = vpop.f32.mrf.mxu0 }
 0x60d   :  { %v14644_v55 = vrot.slane %v14636_v51, %v16096_v42  ;;  %v14651_v57 = vrot.slane %v14637_v52, %v16096_v42 }
 0x60e   :  { %v12422_v58 = vpop.f32.mrf.mxu1  ;;  %v12463_v59 = vpop.f32.mrf.mxu0 }
 0x60f   :  { %v14652_v60 = vcombine.low %v14644_v55, %v14651_v57 }
 0x610   :  { %v12499_v61 = vpop.f32.mrf.mxu1  ;;  %v12540_v62 = vpop.f32.mrf.mxu0 }
 0x611   :  { %14880 = vst [vmem:[#allocation2 + $0x2f8] sm:$0xff] %v14652_v60 }
 0x612   :  { %v12501_v63 = vpop.f32.mrf.mxu1  ;;  %v12542_v0 = vpop.f32.mrf.mxu0 }
 0x613   :  { %v14653_v1 = vcombine.low %v12499_v61, %v12501_v63  ;;  %v14654_v3 = vcombine.low %v12540_v62, %v12542_v0 }
 0x614   :  { %v12503_v4 = vpop.f32.mrf.mxu1  ;;  %v12544_v26 = vpop.f32.mrf.mxu0 }
 0x615   :  { %v14661_v5 = vrot.slane %v14653_v1, %v16096_v42  ;;  %v14668_v6 = vrot.slane %v14654_v3, %v16096_v42 }
 0x616   :  { %v12504_v7 = vpop.f32.mrf.mxu1  ;;  %v12545_v8 = vpop.f32.mrf.mxu0 }
 0x617   :  { %v14669_v9 = vcombine.low %v14661_v5, %v14668_v6 }
 0x618   :  { %v12581_v10 = vpop.f32.mrf.mxu1  ;;  %v12622_v11 = vpop.f32.mrf.mxu0 }
 0x619   :  { %14881 = vst [vmem:[#allocation2 + $0x300] sm:$0xff] %v14669_v9 }
 0x61a   :  { %v12583_v12 = vpop.f32.mrf.mxu1  ;;  %v12624_v13 = vpop.f32.mrf.mxu0 }
 0x61b   :  { %v14670_v14 = vcombine.low %v12581_v10, %v12583_v12  ;;  %v14671_v2 = vcombine.low %v12622_v11, %v12624_v13 }
 0x61c   :  { %v12585_v15 = vpop.f32.mrf.mxu1  ;;  %v12626_v16 = vpop.f32.mrf.mxu0 }
 0x61d   :  { %v14678_v17 = vrot.slane %v14670_v14, %v16096_v42  ;;  %v14685_v18 = vrot.slane %v14671_v2, %v16096_v42 }
 0x61e   :  { %v12586_v20 = vpop.f32.mrf.mxu1  ;;  %v12627_v21 = vpop.f32.mrf.mxu0 }
 0x61f   :  { %v14686_v22 = vcombine.low %v14678_v17, %v14685_v18 }
 0x621   :  { %14882 = vst [vmem:[#allocation2 + $0x308] sm:$0xff] %v14686_v22 }
 0x622   :  { %15937 = shalt.err (!%p15934_p4)
}
 0x623   :  { %14892 = dma.vmem_to_hbm [thread:$0]  %s14890_s9, 12544, %s18737_s4, [#allocation3]  }
 0x624   :  { %15946 = dma.done.wait [#allocation3], 12544  }
 0x625   :  { %15947 = vsyncadd [#allocation3], 4294954752 }
 0x626   :  { %14896 = vsyncpa [#allocation3], 1 }

</bundles_post_ra>
